<compile_context>
chip_gen: v6e
topology: v6e:2x2x1
jax: 0.10.0
libtpu: 0.0.40
codegen_flags: <defaults>
</compile_context>

<pallas_src>
import functools
import math

import jax
import jax.numpy as jnp
from jax.experimental import pallas as pl
from jax.experimental.pallas import tpu as pltpu


# ----------------------------- per-generation config ---------------------------

def _detect_phys_vmem_bytes():
    try:
        info = pltpu.get_tpu_info()
        for attr in ("vmem_capacity_bytes", "vmem_bytes", "vmem_size_bytes"):
            v = getattr(info, attr, None)
            if v:
                return int(v)
    except Exception:
        pass
    return 64 * 1024 * 1024            # conservative (v7x-sized) fallback


_PHYS_VMEM = _detect_phys_vmem_bytes()
if _PHYS_VMEM >= 128 * 1024 * 1024:     # v5e / v6e: 128 MiB physical VMEM
    VMEM_LIMIT_BYTES = 100 * 1024 * 1024
    ROW_TILE_TARGET = 512
else:                                   # v7x: 64 MiB physical VMEM
    VMEM_LIMIT_BYTES = 48 * 1024 * 1024
    ROW_TILE_TARGET = 256


# ----------------------------- tiling helpers ---------------------------------

def _pick_row_tile(m, target=None):
    """Largest row tile <= target that divides m and keeps (8,128) tiling legal."""
    if target is None:
        target = ROW_TILE_TARGET
    target = min(target, max(8, m // 2))          # >=2 row blocks when m is big enough
    if m <= target:
        return m
    for t in range(target, 7, -1):
        if m % t == 0 and t % 8 == 0:
            return t
    return m


def _pick_time_chunk(t_len, target=64):
    def _largest_divisor_leq(n, cap):
        for t in range(min(cap, n), 0, -1):
            if n % t == 0:
                return t
        return 1
    tc = _largest_divisor_leq(t_len, target)
    if tc == t_len and t_len > 1:                 # force >=2 chunks so the carry pipelines
        tc = _largest_divisor_leq(t_len, max(1, t_len // 2))
    return tc


def _cparams(dims):
    return pltpu.CompilerParams(dimension_semantics=dims,
                                vmem_limit_bytes=VMEM_LIMIT_BYTES)


# ----------------------------- in-kernel math helpers --------------------------

def _layer_norm(x, gamma, beta, eps=1e-12):
    mean = jnp.mean(x, axis=-1, keepdims=True)
    var = jnp.mean((x - mean) ** 2, axis=-1, keepdims=True)
    return (x - mean) * jax.lax.rsqrt(var + eps) * gamma + beta


def _gelu(x):
    # tanh approximation (EUP transcendental), f32 math.
    # TODO(synk): HF bert-base-uncased uses the exact erf GELU.
    c = 0.7978845608028654  # sqrt(2/pi)
    return 0.5 * x * (1.0 + jnp.tanh(c * (x + 0.044715 * x * x * x)))


def _bf16(x):
    return x.astype(jnp.bfloat16)


# ----------------------------- Pallas kernels ----------------------------------

def _layernorm_kernel(x_ref, g_ref, b_ref, o_ref):
    o_ref[...] = _layer_norm(x_ref[...], g_ref[...], b_ref[...])


def _gemm_bias_kernel(x_ref, w_ref, b_ref, o_ref):
    o_ref[...] = (jnp.dot(_bf16(x_ref[...]), w_ref[...],
                          preferred_element_type=jnp.float32)
                  + b_ref[...]).astype(o_ref.dtype)


def _attention_kernel(qkv_ref, o_ref, *, n_heads):
    """Per-batch multi-head attention on the natural (S, 3D) bf16 layout.

    Heads are statically-unrolled lane slices of the resident block, so there
    are no HBM transposes and no lane-splitting reshapes.
    1/sqrt(hd) is already folded into wq/bq at init.
    TODO(synk): flash-style q-row tiling per head for long sequences on v7x.
    """
    S, D3 = qkv_ref.shape[1], qkv_ref.shape[2]
    D = D3 // 3
    hd = D // n_heads
    outs = []
    for h in range(n_heads):
        q = qkv_ref[0, :, h * hd:(h + 1) * hd]               # (S, hd) bf16
        k = qkv_ref[0, :, D + h * hd:D + (h + 1) * hd]
        v = qkv_ref[0, :, 2 * D + h * hd:2 * D + (h + 1) * hd]
        s = jax.lax.dot_general(q, k, (((1,), (1,)), ((), ())),
                                preferred_element_type=jnp.float32)   # (S, S) f32
        s = s - jnp.max(s, axis=-1, keepdims=True)
        p = jnp.exp(s)
        p = p * pl.reciprocal(jnp.sum(p, axis=-1, keepdims=True), approx=True)
        outs.append(jnp.dot(_bf16(p), v, preferred_element_type=jnp.float32))
    o_ref[0] = jnp.concatenate(outs, axis=-1).astype(o_ref.dtype)     # lane-dense store


def _attn_out_kernel(x_ref, ctx_ref, wo_ref, bo_ref, g_ref, b_ref, o_ref):
    attn = (jnp.dot(ctx_ref[...], wo_ref[...],
                    preferred_element_type=jnp.float32) + bo_ref[...])
    o_ref[...] = _layer_norm(x_ref[...] + attn, g_ref[...], b_ref[...])


def _ffn_kernel(x_ref, w1_ref, b1_ref, w2_ref, b2_ref, g_ref, be_ref, o_ref):
    """Residual FFN with fully-resident weights (constant index_maps -> one DMA)."""
    x = x_ref[...]
    inter = _gelu(jnp.dot(_bf16(x), w1_ref[...],
                          preferred_element_type=jnp.float32) + b1_ref[...])
    y = jnp.dot(_bf16(inter), w2_ref[...],
                preferred_element_type=jnp.float32) + b2_ref[...]
    o_ref[...] = _layer_norm(x + y, g_ref[...], be_ref[...])


def _gru_proj1_kernel(x_ref, w_ref, b_ref, gi_ref):
    """Hoisted GRU input projection (both directions fused into one GEMM)."""
    g3 = gi_ref.shape[2]
    gi = (jnp.dot(_bf16(x_ref[...]), w_ref[...],
                  preferred_element_type=jnp.float32) + b_ref[...])
    gi_ref[0] = gi[:, 0:g3]
    gi_ref[1] = gi[:, g3:2 * g3]


def _gru_proj2_kernel(y_ref, wa_ref, wb_ref, b_ref, gi_ref):
    """Same, for layers >= 2: input is [y_fwd | y_bwd] kept as two streams."""
    g3 = gi_ref.shape[2]
    gi = (jnp.dot(_bf16(y_ref[0]), wa_ref[...], preferred_element_type=jnp.float32)
          + jnp.dot(_bf16(y_ref[1]), wb_ref[...], preferred_element_type=jnp.float32)
          + b_ref[...])
    gi_ref[0] = gi[:, 0:g3]
    gi_ref[1] = gi[:, g3:2 * g3]


def _bigru_rec_kernel(gi_ref, whh_ref, bhh_ref, y_ref, hT_ref, h_ref):
    """GRU recurrence over one (direction, time-chunk) grid point.

    Direction is a parallel grid axis (splits across TensorCores on v7x);
    the backward direction walks time in reverse via its BlockSpec + in-chunk
    reversal.  gi_ref: (tc, B, 3H) f32, whh_ref: (H, 3H) bf16, bhh_ref: (1, 3H),
    y_ref: (tc, B, H), hT_ref: (B, H), h_ref: VMEM scratch (B, H) carry.
    Gate order is [r, z, n] (torch).
    """
    tc, _, g3 = gi_ref.shape
    H = g3 // 3
    d = pl.program_id(0)
    i = pl.program_id(1)

    @pl.when(i == 0)
    def _():
        h_ref[...] = jnp.zeros_like(h_ref)

    whh = whh_ref[...]
    bhh = bhh_ref[...]

    def step(s, h):                                          # h: (B, H) f32
        t = s * (1 - 2 * d) + d * (tc - 1)                   # fwd: s, bwd: tc-1-s
        gi = gi_ref[t]                                       # (B, 3H)
        # TODO(synk): the per-step bf16 cast of h drifts slightly vs fp32 torch.
        gh = jnp.dot(_bf16(h), whh, preferred_element_type=jnp.float32) + bhh
        r = jax.nn.sigmoid(gi[:, 0:H] + gh[:, 0:H])
        z = jax.nn.sigmoid(gi[:, H:2 * H] + gh[:, H:2 * H])
        n = jnp.tanh(gi[:, 2 * H:3 * H] + r * gh[:, 2 * H:3 * H])
        h_new = (1.0 - z) * n + z * h
        y_ref[t] = h_new
        return h_new

    if tc <= 8:
        unroll = tc
    elif tc % 4 == 0:
        unroll = 4
    elif tc % 2 == 0:
        unroll = 2
    else:
        unroll = 1
    try:
        h_last = jax.lax.fori_loop(0, tc, step, h_ref[...], unroll=unroll)
    except TypeError:                                        # very old jax: no unroll kwarg
        h_last = jax.lax.fori_loop(0, tc, step, h_ref[...])
    h_ref[...] = h_last

    @pl.when(i == pl.num_programs(1) - 1)
    def _():
        hT_ref[...] = h_last     # d=0 -> hidden[-2] (fwd), d=1 -> hidden[-1] (bwd)


def _head_kernel(h_ref, w_ref, b_ref, o_ref):
    """out = cat(h_fwd, h_bwd) @ W + b, consumed directly from (2, B, H)."""
    o_ref[...] = (jnp.dot(_bf16(h_ref[0]), w_ref[0], preferred_element_type=jnp.float32)
                  + jnp.dot(_bf16(h_ref[1]), w_ref[1], preferred_element_type=jnp.float32)
                  + b_ref[...])


# ----------------------------- pallas_call wrappers ----------------------------

def layer_norm_rows(x, g, b):
    M, D = x.shape
    tm = _pick_row_tile(M)
    row = pl.BlockSpec((tm, D), lambda i: (i, 0))
    vec = pl.BlockSpec((1, D), lambda i: (0, 0))
    return pl.pallas_call(
        _layernorm_kernel,
        out_shape=jax.ShapeDtypeStruct((M, D), jnp.float32),
        grid=(M // tm,),
        in_specs=[row, vec, vec],
        out_specs=row,
        compiler_params=_cparams(("parallel",)),
    )(x, g, b)


def gemm_bias(x, w, b, out_dtype=jnp.float32):
    M, K = x.shape
    N = w.shape[1]
    tm = _pick_row_tile(M)
    return pl.pallas_call(
        _gemm_bias_kernel,
        out_shape=jax.ShapeDtypeStruct((M, N), out_dtype),
        grid=(M // tm,),
        in_specs=[pl.BlockSpec((tm, K), lambda i: (i, 0)),
                  pl.BlockSpec((K, N), lambda i: (0, 0)),    # resident weight
                  pl.BlockSpec((1, N), lambda i: (0, 0))],
        out_specs=pl.BlockSpec((tm, N), lambda i: (i, 0)),
        compiler_params=_cparams(("parallel",)),
        cost_estimate=pl.CostEstimate(flops=2 * M * K * N, transcendentals=0,
                                      bytes_accessed=M * K * 4 + M * N * 2 + K * N * 2),
    )(x, w, b)


def attention(qkv, n_heads):
    B, S, D3 = qkv.shape
    D = D3 // 3
    kern = functools.partial(_attention_kernel, n_heads=n_heads)
    return pl.pallas_call(
        kern,
        out_shape=jax.ShapeDtypeStruct((B, S, D), jnp.bfloat16),
        grid=(B,),
        in_specs=[pl.BlockSpec((1, S, D3), lambda b: (b, 0, 0))],
        out_specs=pl.BlockSpec((1, S, D), lambda b: (b, 0, 0)),
        compiler_params=_cparams(("parallel",)),
        cost_estimate=pl.CostEstimate(flops=4 * B * S * S * D,
                                      transcendentals=B * n_heads * S * S,
                                      bytes_accessed=(B * S * D3 + B * S * D) * 2),
    )(qkv)


def attn_out(x, ctx, wo, bo, g, b):
    M, D = x.shape
    tm = _pick_row_tile(M)
    row_f32 = pl.BlockSpec((tm, D), lambda i: (i, 0))
    vec = pl.BlockSpec((1, D), lambda i: (0, 0))
    return pl.pallas_call(
        _attn_out_kernel,
        out_shape=jax.ShapeDtypeStruct((M, D), jnp.float32),
        grid=(M // tm,),
        in_specs=[row_f32,
                  pl.BlockSpec((tm, D), lambda i: (i, 0)),        # ctx (bf16)
                  pl.BlockSpec((D, D), lambda i: (0, 0)),
                  vec, vec, vec],
        out_specs=row_f32,
        compiler_params=_cparams(("parallel",)),
    )(x, ctx, wo, bo, g, b)


def ffn(x, w1, b1, w2, b2, g, be):
    M, D = x.shape
    dff = w1.shape[1]
    # Keep the (tm, dff) f32 intermediate under ~1/4 of the VMEM limit.
    cap = max(8, (VMEM_LIMIT_BYTES // 4) // max(1, dff * 4))
    tm = _pick_row_tile(M, target=min(ROW_TILE_TARGET, cap))
    return pl.pallas_call(
        _ffn_kernel,
        out_shape=jax.ShapeDtypeStruct((M, D), jnp.float32),
        grid=(M // tm,),
        in_specs=[pl.BlockSpec((tm, D), lambda i: (i, 0)),
                  pl.BlockSpec((D, dff), lambda i: (0, 0)),       # resident weights
                  pl.BlockSpec((1, dff), lambda i: (0, 0)),
                  pl.BlockSpec((dff, D), lambda i: (0, 0)),
                  pl.BlockSpec((1, D), lambda i: (0, 0)),
                  pl.BlockSpec((1, D), lambda i: (0, 0)),
                  pl.BlockSpec((1, D), lambda i: (0, 0))],
        out_specs=pl.BlockSpec((tm, D), lambda i: (i, 0)),
        compiler_params=_cparams(("parallel",)),
        cost_estimate=pl.CostEstimate(flops=4 * M * D * dff,
                                      transcendentals=M * dff,
                                      bytes_accessed=2 * M * D * 4 + 2 * D * dff * 2),
    )(x, w1, b1, w2, b2, g, be)


def gru_in_proj1(x, wih, bih):
    M, K = x.shape
    g6 = wih.shape[1]
    g3 = g6 // 2
    tm = _pick_row_tile(M)
    return pl.pallas_call(
        _gru_proj1_kernel,
        out_shape=jax.ShapeDtypeStruct((2, M, g3), jnp.float32),
        grid=(M // tm,),
        in_specs=[pl.BlockSpec((tm, K), lambda i: (i, 0)),
                  pl.BlockSpec((K, g6), lambda i: (0, 0)),
                  pl.BlockSpec((1, g6), lambda i: (0, 0))],
        out_specs=pl.BlockSpec((2, tm, g3), lambda i: (0, i, 0)),
        compiler_params=_cparams(("parallel",)),
    )(x, wih, bih)


def gru_in_proj2(y2, wa, wb, bih):
    _, M, Hp = y2.shape
    g6 = wa.shape[1]
    g3 = g6 // 2
    tm = _pick_row_tile(M)
    return pl.pallas_call(
        _gru_proj2_kernel,
        out_shape=jax.ShapeDtypeStruct((2, M, g3), jnp.float32),
        grid=(M // tm,),
        in_specs=[pl.BlockSpec((2, tm, Hp), lambda i: (0, i, 0)),
                  pl.BlockSpec((Hp, g6), lambda i: (0, 0)),
                  pl.BlockSpec((Hp, g6), lambda i: (0, 0)),
                  pl.BlockSpec((1, g6), lambda i: (0, 0))],
        out_specs=pl.BlockSpec((2, tm, g3), lambda i: (0, i, 0)),
        compiler_params=_cparams(("parallel",)),
    )(y2, wa, wb, bih)


def bigru_recurrence(gi, whh, bhh):
    """gi: (2, T, B, 3H) f32 -> (y (2,T,B,H), hT (2,B,H)).  grid=(direction, time)."""
    _, T, B, g3 = gi.shape
    H = g3 // 3
    tc = _pick_time_chunk(T)
    nT = T // tc

    def t_idx(d, i):                    # fwd: i, bwd: nT-1-i
        return d * (nT - 1) + (1 - 2 * d) * i

    return pl.pallas_call(
        _bigru_rec_kernel,
        out_shape=(jax.ShapeDtypeStruct((2, T, B, H), jnp.float32),
                   jax.ShapeDtypeStruct((2, B, H), jnp.float32)),
        grid=(2, nT),
        in_specs=[pl.BlockSpec((None, tc, B, g3), lambda d, i: (d, t_idx(d, i), 0, 0)),
                  pl.BlockSpec((None, H, g3), lambda d, i: (d, 0, 0)),   # resident whh[d]
                  pl.BlockSpec((None, 1, g3), lambda d, i: (d, 0, 0))],
        out_specs=(pl.BlockSpec((None, tc, B, H), lambda d, i: (d, t_idx(d, i), 0, 0)),
                   pl.BlockSpec((None, B, H), lambda d, i: (d, 0, 0))),
        scratch_shapes=[pltpu.VMEM((B, H), jnp.float32)],
        # direction axis shards across TensorCores (v7x); time axis is sequential.
        compiler_params=_cparams(("parallel", "arbitrary")),
    )(gi, whh, bhh)


def linear_head(hT, w, b):
    _, B, H = hT.shape
    out_dim = w.shape[2]
    return pl.pallas_call(
        _head_kernel,
        out_shape=jax.ShapeDtypeStruct((B, out_dim), jnp.float32),
        grid=(1,),
        in_specs=[pl.BlockSpec((2, B, H), lambda i: (0, 0, 0)),
                  pl.BlockSpec((2, H, out_dim), lambda i: (0, 0, 0)),
                  pl.BlockSpec((1, out_dim), lambda i: (0, 0))],
        out_specs=pl.BlockSpec((B, out_dim), lambda i: (0, 0)),
        compiler_params=_cparams(("arbitrary",)),
    )(hT, w, b)


# ----------------------------- model glue --------------------------------------

def bert_layer(x2d, lp, B, S, n_heads):
    M, D = x2d.shape
    qkv = gemm_bias(x2d, lp['wqkv'], lp['bqkv'], out_dtype=jnp.bfloat16)   # (M, 3D) bf16
    ctx = attention(qkv.reshape(B, S, 3 * D), n_heads)                     # (B, S, D) bf16
    h1 = attn_out(x2d, ctx.reshape(M, D), lp['wo'], lp['bo'],
                  lp['ln1_g'], lp['ln1_b'])
    return ffn(h1, lp['w1'], lp['b1'], lp['w2'], lp['b2'], lp['ln2_g'], lp['ln2_b'])


def bert_gru_sentiment_forward(params, token_ids, *, n_heads):
    B, S = token_ids.shape
    D = params['word_emb'].shape[1]
    M = B * S

    # BERT embeddings (gathers/adds are XLA glue; LayerNorm is a row-tiled kernel).
    # TODO(synk): fuse this LN into the first layer's QKV GEMM prologue.
    emb = (params['word_emb'][token_ids]
           + params['pos_emb'][:S][None, :, :]
           + params['type_emb'][0][None, None, :]).astype(jnp.float32)
    x = layer_norm_rows(emb.reshape(M, D), params['emb_ln_g'], params['emb_ln_b'])

    # BERT encoder (frozen / torch.no_grad): embedded = bert(text)[0].
    # forward() passes no attention_mask, so no mask is applied here either.
    for lp in params['bert_layers']:
        x = bert_layer(x, lp, B, S, n_heads)

    # Bidirectional multi-layer GRU, time-major recurrence.
    T = S
    xt = jnp.transpose(x.reshape(B, S, D), (1, 0, 2)).reshape(T * B, D)
    y = None
    hT = None
    for li, gp in enumerate(params['gru']):
        H = gp['whh'].shape[1]
        if li == 0:
            gi = gru_in_proj1(xt, gp['wih'], gp['bih'])                      # (2, T*B, 3H)
        else:
            gi = gru_in_proj2(y.reshape(2, T * B, -1),
                              gp['wih_a'], gp['wih_b'], gp['bih'])
        # TODO(synk): gf/gb could be stored bf16 on v7x to halve this HBM hand-off.
        y, hT = bigru_recurrence(gi.reshape(2, T, B, 3 * H), gp['whh'], gp['bhh'])
        # nn.GRU inter-layer dropout: identity at inference.

    # hidden = cat(hidden[-2], hidden[-1]) == [fwd final | bwd final]; dropout = identity.
    return linear_head(hT, params['out_w'], params['out_b'])


# ----------------------------- parameters --------------------------------------

def init_params(key, *, vocab, max_pos, d_model, n_bert_layers, n_heads, d_ff,
                hidden_dim, n_gru_layers, output_dim):
    keys = iter(jax.random.split(key, 1024))

    def w(shape, scale=0.05):
        return (scale * jax.random.normal(next(keys), shape)).astype(jnp.float32)

    def wb(shape, scale=0.05):           # MXU-operand weights stored in bf16
        return w(shape, scale).astype(jnp.bfloat16)

    hd = d_model // n_heads
    qk_scale = 1.0 / math.sqrt(hd)

    p = {
        'word_emb': w((vocab, d_model)),
        'pos_emb': w((max_pos, d_model)),
        'type_emb': w((2, d_model)),
        'emb_ln_g': jnp.ones((1, d_model), jnp.float32),
        'emb_ln_b': jnp.zeros((1, d_model), jnp.float32),
        'bert_layers': [],
        'gru': [],
    }

    for _ in range(n_bert_layers):
        wq, wk, wv = w((d_model, d_model)), w((d_model, d_model)), w((d_model, d_model))
        bq, bk, bv = w((1, d_model)), w((1, d_model)), w((1, d_model))
        # fold 1/sqrt(hd) into the q projection once (removes a (S,S) VALU mul per head).
        wqkv = jnp.concatenate([wq * qk_scale, wk, wv], axis=1).astype(jnp.bfloat16)
        bqkv = jnp.concatenate([bq * qk_scale, bk, bv], axis=1)
        p['bert_layers'].append(dict(
            wqkv=wqkv, bqkv=bqkv,
            wo=wb((d_model, d_model)), bo=w((1, d_model)),
            ln1_g=jnp.ones((1, d_model), jnp.float32),
            ln1_b=jnp.zeros((1, d_model), jnp.float32),
            w1=wb((d_model, d_ff)), b1=w((1, d_ff)),
            w2=wb((d_ff, d_model)), b2=w((1, d_model)),
            ln2_g=jnp.ones((1, d_model), jnp.float32),
            ln2_b=jnp.zeros((1, d_model), jnp.float32)))

    in_dim = d_model
    H = hidden_dim
    for layer in range(n_gru_layers):
        wih_f, wih_b = w((in_dim, 3 * H)), w((in_dim, 3 * H))
        bih = jnp.concatenate([w((1, 3 * H)), w((1, 3 * H))], axis=1)        # (1, 6H)
        whh = jnp.stack([w((H, 3 * H)), w((H, 3 * H))], axis=0).astype(jnp.bfloat16)
        bhh = jnp.stack([w((1, 3 * H)), w((1, 3 * H))], axis=0)              # (2, 1, 3H)
        gp = dict(bih=bih, whh=whh, bhh=bhh)
        wih = jnp.concatenate([wih_f, wih_b], axis=1)                        # (in_dim, 6H)
        if layer == 0:
            gp['wih'] = wih.astype(jnp.bfloat16)
        else:
            # layer input is [y_fwd | y_bwd]; split rows so the projection consumes the
            # two direction streams directly (no HBM concat of the GRU outputs).
            gp['wih_a'] = wih[0:H].astype(jnp.bfloat16)
            gp['wih_b'] = wih[H:2 * H].astype(jnp.bfloat16)
        p['gru'].append(gp)
        in_dim = 2 * H

    # head consumes hT (2, B, H) directly: slice 0 multiplies fwd state, 1 the bwd state.
    p['out_w'] = wb((2, H, output_dim))
    p['out_b'] = w((1, output_dim))
    return p


# ----------------------------- demo ---------------------------------------------

if __name__ == "__main__":
    B, S = 2, 16
    VOCAB, D_MODEL, N_BERT_LAYERS, N_HEADS, D_FF = 100, 64, 2, 2, 256
    HIDDEN_DIM, N_GRU_LAYERS, OUTPUT_DIM = 32, 2, 3

    key = jax.random.PRNGKey(0)
    pkey, tkey = jax.random.split(key)
    params = init_params(pkey, vocab=VOCAB, max_pos=S, d_model=D_MODEL,
                         n_bert_layers=N_BERT_LAYERS, n_heads=N_HEADS, d_ff=D_FF,
                         hidden_dim=HIDDEN_DIM, n_gru_layers=N_GRU_LAYERS,
                         output_dim=OUTPUT_DIM)
    token_ids = jax.random.randint(tkey, (B, S), 0, VOCAB, dtype=jnp.int32)

    fwd = jax.jit(functools.partial(bert_gru_sentiment_forward, n_heads=N_HEADS))
    out = jax.block_until_ready(fwd(params, token_ids))
    assert out.shape == (B, OUTPUT_DIM) and out.dtype == jnp.float32
    print("KERNEL_OK")
</pallas_src>

<mosaic_0001>
module attributes {stable_mosaic.version = 11 : i64} {
  func.func @_layernorm_kernel(%arg0: i32, %arg1: memref<16x64xf32, #tpu.memory_space<vmem>>, %arg2: memref<1x64xf32, #tpu.memory_space<vmem>>, %arg3: memref<1x64xf32, #tpu.memory_space<vmem>>, %arg4: memref<16x64xf32, #tpu.memory_space<vmem>>) attributes {dimension_semantics = [#tpu.dimension_semantics<parallel>], iteration_bounds = array<i64: 2>, scalar_prefetch = 0 : i64, scratch_operands = 0 : i64, tpu.core_type = #tpu.core_type<tc>, window_params = [{transform_indices = @transform_0, window_bounds = array<i64: 16, 64>}, {pipeline_mode = #tpu.pipeline_mode<synchronous>, transform_indices = @transform_1, window_bounds = array<i64: 1, 64>}, {pipeline_mode = #tpu.pipeline_mode<synchronous>, transform_indices = @transform_2, window_bounds = array<i64: 1, 64>}, {transform_indices = @transform_3, window_bounds = array<i64: 16, 64>}]} {
    %c0 = arith.constant 0 : index
    %c0_0 = arith.constant 0 : index
    %0 = vector.load %arg1[%c0, %c0_0] : memref<16x64xf32, #tpu.memory_space<vmem>>, vector<16x64xf32>
    %c0_1 = arith.constant 0 : index
    %c0_2 = arith.constant 0 : index
    %1 = vector.load %arg2[%c0_1, %c0_2] : memref<1x64xf32, #tpu.memory_space<vmem>>, vector<1x64xf32>
    %c0_3 = arith.constant 0 : index
    %c0_4 = arith.constant 0 : index
    %2 = vector.load %arg3[%c0_3, %c0_4] : memref<1x64xf32, #tpu.memory_space<vmem>>, vector<1x64xf32>
    %cst = arith.constant dense<0.000000e+00> : vector<16xf32>
    %3 = vector.multi_reduction <add>, %0, %cst [1] : vector<16x64xf32> to vector<16xf32>
    %4 = vector.shape_cast %3 : vector<16xf32> to vector<16x1xf32>
    %cst_5 = arith.constant 6.400000e+01 : f32
    %5 = vector.broadcast %cst_5 : f32 to vector<16x1xf32>
    %6 = arith.divf %4, %5 : vector<16x1xf32>
    %7 = vector.broadcast %6 : vector<16x1xf32> to vector<16x64xf32>
    %8 = arith.subf %0, %7 : vector<16x64xf32>
    %9 = arith.mulf %8, %8 : vector<16x64xf32>
    %cst_6 = arith.constant dense<0.000000e+00> : vector<16xf32>
    %10 = vector.multi_reduction <add>, %9, %cst_6 [1] : vector<16x64xf32> to vector<16xf32>
    %11 = vector.shape_cast %10 : vector<16xf32> to vector<16x1xf32>
    %cst_7 = arith.constant 6.400000e+01 : f32
    %12 = vector.broadcast %cst_7 : f32 to vector<16x1xf32>
    %13 = arith.divf %11, %12 : vector<16x1xf32>
    %14 = vector.broadcast %6 : vector<16x1xf32> to vector<16x64xf32>
    %15 = arith.subf %0, %14 : vector<16x64xf32>
    %cst_8 = arith.constant 9.99999996E-13 : f32
    %16 = vector.broadcast %cst_8 : f32 to vector<16x1xf32>
    %17 = arith.addf %13, %16 : vector<16x1xf32>
    %18 = math.rsqrt %17 : vector<16x1xf32>
    %19 = vector.broadcast %18 : vector<16x1xf32> to vector<16x64xf32>
    %20 = arith.mulf %15, %19 : vector<16x64xf32>
    %21 = vector.broadcast %1 : vector<1x64xf32> to vector<16x64xf32>
    %22 = arith.mulf %20, %21 : vector<16x64xf32>
    %23 = vector.broadcast %2 : vector<1x64xf32> to vector<16x64xf32>
    %24 = arith.addf %22, %23 : vector<16x64xf32>
    %c0_9 = arith.constant 0 : index
    %c0_10 = arith.constant 0 : index
    %25 = vector.load %arg4[%c0_9, %c0_10] : memref<16x64xf32, #tpu.memory_space<vmem>>, vector<16x64xf32>
    tpu.vector_store %arg4[%c0_9, %c0_10], %24 {strides = array<i32>} : memref<16x64xf32, #tpu.memory_space<vmem>>, vector<16x64xf32>,
    return
  }
  func.func @transform_0(%arg0: i32) -> (i32, i32) {
    %c0_i32 = arith.constant 0 : i32
    %c0_i32_0 = arith.constant 0 : i32
    return %arg0, %c0_i32 : i32, i32
  }
  func.func @transform_1(%arg0: i32) -> (i32, i32) {
    %c0_i32 = arith.constant 0 : i32
    %c0_i32_0 = arith.constant 0 : i32
    %c0_i32_1 = arith.constant 0 : i32
    return %c0_i32, %c0_i32_0 : i32, i32
  }
  func.func @transform_2(%arg0: i32) -> (i32, i32) {
    %c0_i32 = arith.constant 0 : i32
    %c0_i32_0 = arith.constant 0 : i32
    %c0_i32_1 = arith.constant 0 : i32
    return %c0_i32, %c0_i32_0 : i32, i32
  }
  func.func @transform_3(%arg0: i32) -> (i32, i32) {
    %c0_i32 = arith.constant 0 : i32
    %c0_i32_0 = arith.constant 0 : i32
    return %arg0, %c0_i32 : i32, i32
  }
}

module attributes {stable_mosaic.version = 11 : i64} {
  func.func @_gemm_bias_kernel(%arg0: i32, %arg1: memref<16x64xf32, #tpu.memory_space<vmem>>, %arg2: memref<64x192xbf16, #tpu.memory_space<vmem>>, %arg3: memref<1x192xf32, #tpu.memory_space<vmem>>, %arg4: memref<16x192xbf16, #tpu.memory_space<vmem>>) attributes {dimension_semantics = [#tpu.dimension_semantics<parallel>], iteration_bounds = array<i64: 2>, scalar_prefetch = 0 : i64, scratch_operands = 0 : i64, tpu.core_type = #tpu.core_type<tc>, window_params = [{transform_indices = @transform_0, window_bounds = array<i64: 16, 64>}, {pipeline_mode = #tpu.pipeline_mode<synchronous>, transform_indices = @transform_1, window_bounds = array<i64: 64, 192>}, {pipeline_mode = #tpu.pipeline_mode<synchronous>, transform_indices = @transform_2, window_bounds = array<i64: 1, 192>}, {transform_indices = @transform_3, window_bounds = array<i64: 16, 192>}]} {
    %c0 = arith.constant 0 : index
    %c0_0 = arith.constant 0 : index
    %0 = vector.load %arg1[%c0, %c0_0] : memref<16x64xf32, #tpu.memory_space<vmem>>, vector<16x64xf32>
    %1 = arith.truncf %0 : vector<16x64xf32> to vector<16x64xbf16>
    %c0_1 = arith.constant 0 : index
    %c0_2 = arith.constant 0 : index
    %2 = vector.load %arg2[%c0_1, %c0_2] : memref<64x192xbf16, #tpu.memory_space<vmem>>, vector<64x192xbf16>
    %cst = arith.constant dense<0.000000e+00> : vector<16x192xf32>
    %3 = tpu.matmul %1, %2, %cst {dimension_numbers = #tpu.dot_dimension_numbers<[1], [0], [0], [1], [0, 0, 1, 1], [], []>} : vector<16x64xbf16>, vector<64x192xbf16>, vector<16x192xf32> -> vector<16x192xf32>
    %c0_3 = arith.constant 0 : index
    %c0_4 = arith.constant 0 : index
    %4 = vector.load %arg3[%c0_3, %c0_4] : memref<1x192xf32, #tpu.memory_space<vmem>>, vector<1x192xf32>
    %5 = vector.broadcast %4 : vector<1x192xf32> to vector<16x192xf32>
    %6 = arith.addf %3, %5 : vector<16x192xf32>
    %7 = arith.truncf %6 : vector<16x192xf32> to vector<16x192xbf16>
    %c0_5 = arith.constant 0 : index
    %c0_6 = arith.constant 0 : index
    %8 = vector.load %arg4[%c0_5, %c0_6] : memref<16x192xbf16, #tpu.memory_space<vmem>>, vector<16x192xbf16>
    tpu.vector_store %arg4[%c0_5, %c0_6], %7 {strides = array<i32>} : memref<16x192xbf16, #tpu.memory_space<vmem>>, vector<16x192xbf16>,
    return
  }
  func.func @transform_0(%arg0: i32) -> (i32, i32) {
    %c0_i32 = arith.constant 0 : i32
    %c0_i32_0 = arith.constant 0 : i32
    return %arg0, %c0_i32 : i32, i32
  }
  func.func @transform_1(%arg0: i32) -> (i32, i32) {
    %c0_i32 = arith.constant 0 : i32
    %c0_i32_0 = arith.constant 0 : i32
    %c0_i32_1 = arith.constant 0 : i32
    return %c0_i32, %c0_i32_0 : i32, i32
  }
  func.func @transform_2(%arg0: i32) -> (i32, i32) {
    %c0_i32 = arith.constant 0 : i32
    %c0_i32_0 = arith.constant 0 : i32
    %c0_i32_1 = arith.constant 0 : i32
    return %c0_i32, %c0_i32_0 : i32, i32
  }
  func.func @transform_3(%arg0: i32) -> (i32, i32) {
    %c0_i32 = arith.constant 0 : i32
    %c0_i32_0 = arith.constant 0 : i32
    return %arg0, %c0_i32 : i32, i32
  }
}

module attributes {stable_mosaic.version = 11 : i64} {
  func.func @_attn_out_kernel(%arg0: i32, %arg1: memref<16x64xf32, #tpu.memory_space<vmem>>, %arg2: memref<16x64xbf16, #tpu.memory_space<vmem>>, %arg3: memref<64x64xbf16, #tpu.memory_space<vmem>>, %arg4: memref<1x64xf32, #tpu.memory_space<vmem>>, %arg5: memref<1x64xf32, #tpu.memory_space<vmem>>, %arg6: memref<1x64xf32, #tpu.memory_space<vmem>>, %arg7: memref<16x64xf32, #tpu.memory_space<vmem>>) attributes {dimension_semantics = [#tpu.dimension_semantics<parallel>], iteration_bounds = array<i64: 2>, scalar_prefetch = 0 : i64, scratch_operands = 0 : i64, tpu.core_type = #tpu.core_type<tc>, window_params = [{transform_indices = @transform_0, window_bounds = array<i64: 16, 64>}, {transform_indices = @transform_1, window_bounds = array<i64: 16, 64>}, {pipeline_mode = #tpu.pipeline_mode<synchronous>, transform_indices = @transform_2, window_bounds = array<i64: 64, 64>}, {pipeline_mode = #tpu.pipeline_mode<synchronous>, transform_indices = @transform_3, window_bounds = array<i64: 1, 64>}, {pipeline_mode = #tpu.pipeline_mode<synchronous>, transform_indices = @transform_4, window_bounds = array<i64: 1, 64>}, {pipeline_mode = #tpu.pipeline_mode<synchronous>, transform_indices = @transform_5, window_bounds = array<i64: 1, 64>}, {transform_indices = @transform_6, window_bounds = array<i64: 16, 64>}]} {
    %c0 = arith.constant 0 : index
    %c0_0 = arith.constant 0 : index
    %0 = vector.load %arg2[%c0, %c0_0] : memref<16x64xbf16, #tpu.memory_space<vmem>>, vector<16x64xbf16>
    %c0_1 = arith.constant 0 : index
    %c0_2 = arith.constant 0 : index
    %1 = vector.load %arg3[%c0_1, %c0_2] : memref<64x64xbf16, #tpu.memory_space<vmem>>, vector<64x64xbf16>
    %cst = arith.constant dense<0.000000e+00> : vector<16x64xf32>
    %2 = tpu.matmul %0, %1, %cst {dimension_numbers = #tpu.dot_dimension_numbers<[1], [0], [0], [1], [0, 0, 1, 1], [], []>} : vector<16x64xbf16>, vector<64x64xbf16>, vector<16x64xf32> -> vector<16x64xf32>
    %c0_3 = arith.constant 0 : index
    %c0_4 = arith.constant 0 : index
    %3 = vector.load %arg4[%c0_3, %c0_4] : memref<1x64xf32, #tpu.memory_space<vmem>>, vector<1x64xf32>
    %4 = vector.broadcast %3 : vector<1x64xf32> to vector<16x64xf32>
    %5 = arith.addf %2, %4 : vector<16x64xf32>
    %c0_5 = arith.constant 0 : index
    %c0_6 = arith.constant 0 : index
    %6 = vector.load %arg1[%c0_5, %c0_6] : memref<16x64xf32, #tpu.memory_space<vmem>>, vector<16x64xf32>
    %7 = arith.addf %6, %5 : vector<16x64xf32>
    %c0_7 = arith.constant 0 : index
    %c0_8 = arith.constant 0 : index
    %8 = vector.load %arg5[%c0_7, %c0_8] : memref<1x64xf32, #tpu.memory_space<vmem>>, vector<1x64xf32>
    %c0_9 = arith.constant 0 : index
    %c0_10 = arith.constant 0 : index
    %9 = vector.load %arg6[%c0_9, %c0_10] : memref<1x64xf32, #tpu.memory_space<vmem>>, vector<1x64xf32>
    %cst_11 = arith.constant dense<0.000000e+00> : vector<16xf32>
    %10 = vector.multi_reduction <add>, %7, %cst_11 [1] : vector<16x64xf32> to vector<16xf32>
    %11 = vector.shape_cast %10 : vector<16xf32> to vector<16x1xf32>
    %cst_12 = arith.constant 6.400000e+01 : f32
    %12 = vector.broadcast %cst_12 : f32 to vector<16x1xf32>
    %13 = arith.divf %11, %12 : vector<16x1xf32>
    %14 = vector.broadcast %13 : vector<16x1xf32> to vector<16x64xf32>
    %15 = arith.subf %7, %14 : vector<16x64xf32>
    %16 = arith.mulf %15, %15 : vector<16x64xf32>
    %cst_13 = arith.constant dense<0.000000e+00> : vector<16xf32>
    %17 = vector.multi_reduction <add>, %16, %cst_13 [1] : vector<16x64xf32> to vector<16xf32>
    %18 = vector.shape_cast %17 : vector<16xf32> to vector<16x1xf32>
    %cst_14 = arith.constant 6.400000e+01 : f32
    %19 = vector.broadcast %cst_14 : f32 to vector<16x1xf32>
    %20 = arith.divf %18, %19 : vector<16x1xf32>
    %21 = vector.broadcast %13 : vector<16x1xf32> to vector<16x64xf32>
    %22 = arith.subf %7, %21 : vector<16x64xf32>
    %cst_15 = arith.constant 9.99999996E-13 : f32
    %23 = vector.broadcast %cst_15 : f32 to vector<16x1xf32>
    %24 = arith.addf %20, %23 : vector<16x1xf32>
    %25 = math.rsqrt %24 : vector<16x1xf32>
    %26 = vector.broadcast %25 : vector<16x1xf32> to vector<16x64xf32>
    %27 = arith.mulf %22, %26 : vector<16x64xf32>
    %28 = vector.broadcast %8 : vector<1x64xf32> to vector<16x64xf32>
    %29 = arith.mulf %27, %28 : vector<16x64xf32>
    %30 = vector.broadcast %9 : vector<1x64xf32> to vector<16x64xf32>
    %31 = arith.addf %29, %30 : vector<16x64xf32>
    %c0_16 = arith.constant 0 : index
    %c0_17 = arith.constant 0 : index
    %32 = vector.load %arg7[%c0_16, %c0_17] : memref<16x64xf32, #tpu.memory_space<vmem>>, vector<16x64xf32>
    tpu.vector_store %arg7[%c0_16, %c0_17], %31 {strides = array<i32>} : memref<16x64xf32, #tpu.memory_space<vmem>>, vector<16x64xf32>,
    return
  }
  func.func @transform_0(%arg0: i32) -> (i32, i32) {
    %c0_i32 = arith.constant 0 : i32
    %c0_i32_0 = arith.constant 0 : i32
    return %arg0, %c0_i32 : i32, i32
  }
  func.func @transform_1(%arg0: i32) -> (i32, i32) {
    %c0_i32 = arith.constant 0 : i32
    %c0_i32_0 = arith.constant 0 : i32
    return %arg0, %c0_i32 : i32, i32
  }
  func.func @transform_2(%arg0: i32) -> (i32, i32) {
    %c0_i32 = arith.constant 0 : i32
    %c0_i32_0 = arith.constant 0 : i32
    %c0_i32_1 = arith.constant 0 : i32
    return %c0_i32, %c0_i32_0 : i32, i32
  }
  func.func @transform_3(%arg0: i32) -> (i32, i32) {
    %c0_i32 = arith.constant 0 : i32
    %c0_i32_0 = arith.constant 0 : i32
    %c0_i32_1 = arith.constant 0 : i32
    return %c0_i32, %c0_i32_0 : i32, i32
  }
  func.func @transform_4(%arg0: i32) -> (i32, i32) {
    %c0_i32 = arith.constant 0 : i32
    %c0_i32_0 = arith.constant 0 : i32
    %c0_i32_1 = arith.constant 0 : i32
    return %c0_i32, %c0_i32_0 : i32, i32
  }
  func.func @transform_5(%arg0: i32) -> (i32, i32) {
    %c0_i32 = arith.constant 0 : i32
    %c0_i32_0 = arith.constant 0 : i32
    %c0_i32_1 = arith.constant 0 : i32
    return %c0_i32, %c0_i32_0 : i32, i32
  }
  func.func @transform_6(%arg0: i32) -> (i32, i32) {
    %c0_i32 = arith.constant 0 : i32
    %c0_i32_0 = arith.constant 0 : i32
    return %arg0, %c0_i32 : i32, i32
  }
}

module attributes {stable_mosaic.version = 11 : i64} {
  func.func @_attention_kernel(%arg0: i32, %arg1: memref<1x16x192xbf16, #tpu.memory_space<vmem>>, %arg2: memref<1x16x64xbf16, #tpu.memory_space<vmem>>) attributes {dimension_semantics = [#tpu.dimension_semantics<parallel>], iteration_bounds = array<i64: 2>, scalar_prefetch = 0 : i64, scratch_operands = 0 : i64, tpu.core_type = #tpu.core_type<tc>, window_params = [{transform_indices = @transform_0, window_bounds = array<i64: 1, 16, 192>}, {transform_indices = @transform_1, window_bounds = array<i64: 1, 16, 64>}]} {
    %c0 = arith.constant 0 : index
    %c0_0 = arith.constant 0 : index
    %c0_1 = arith.constant 0 : index
    %0 = vector.load %arg1[%c0, %c0_0, %c0_1] : memref<1x16x192xbf16, #tpu.memory_space<vmem>>, vector<1x16x32xbf16>
    %1 = vector.shape_cast %0 : vector<1x16x32xbf16> to vector<16x32xbf16>
    %c0_2 = arith.constant 0 : index
    %c0_3 = arith.constant 0 : index
    %c64 = arith.constant 64 : index
    %2 = vector.load %arg1[%c0_2, %c0_3, %c64] : memref<1x16x192xbf16, #tpu.memory_space<vmem>>, vector<1x16x32xbf16>
    %3 = vector.shape_cast %2 : vector<1x16x32xbf16> to vector<16x32xbf16>
    %c0_4 = arith.constant 0 : index
    %c0_5 = arith.constant 0 : index
    %c128 = arith.constant 128 : index
    %4 = vector.load %arg1[%c0_4, %c0_5, %c128] : memref<1x16x192xbf16, #tpu.memory_space<vmem>>, vector<1x16x32xbf16>
    %5 = vector.shape_cast %4 : vector<1x16x32xbf16> to vector<16x32xbf16>
    %cst = arith.constant dense<0.000000e+00> : vector<16x16xf32>
    %6 = tpu.matmul %1, %3, %cst {dimension_numbers = #tpu.dot_dimension_numbers<[1], [1], [0], [0], [0, 0, 1, 0], [], []>} : vector<16x32xbf16>, vector<16x32xbf16>, vector<16x16xf32> -> vector<16x16xf32>
    %cst_6 = arith.constant dense<0xFF800000> : vector<16xf32>
    %7 = vector.multi_reduction <maximumf>, %6, %cst_6 [1] : vector<16x16xf32> to vector<16xf32>
    %8 = vector.shape_cast %7 : vector<16xf32> to vector<16x1xf32>
    %9 = vector.broadcast %8 : vector<16x1xf32> to vector<16x16xf32>
    %10 = arith.subf %6, %9 : vector<16x16xf32>
    %11 = math.exp %10 : vector<16x16xf32>
    %cst_7 = arith.constant dense<0.000000e+00> : vector<16xf32>
    %12 = vector.multi_reduction <add>, %11, %cst_7 [1] : vector<16x16xf32> to vector<16xf32>
    %13 = vector.shape_cast %12 : vector<16xf32> to vector<16x1xf32>
    %14 = tpu.reciprocal %13 {approx = true} : vector<16x1xf32> -> vector<16x1xf32>
    %15 = vector.broadcast %14 : vector<16x1xf32> to vector<16x16xf32>
    %16 = arith.mulf %11, %15 : vector<16x16xf32>
    %17 = arith.truncf %16 : vector<16x16xf32> to vector<16x16xbf16>
    %cst_8 = arith.constant dense<0.000000e+00> : vector<16x32xf32>
    %18 = tpu.matmul %17, %5, %cst_8 {dimension_numbers = #tpu.dot_dimension_numbers<[1], [0], [0], [1], [0, 0, 1, 1], [], []>} : vector<16x16xbf16>, vector<16x32xbf16>, vector<16x32xf32> -> vector<16x32xf32>
    %c0_9 = arith.constant 0 : index
    %c0_10 = arith.constant 0 : index
    %c32 = arith.constant 32 : index
    %19 = vector.load %arg1[%c0_9, %c0_10, %c32] : memref<1x16x192xbf16, #tpu.memory_space<vmem>>, vector<1x16x32xbf16>
    %20 = vector.shape_cast %19 : vector<1x16x32xbf16> to vector<16x32xbf16>
    %c0_11 = arith.constant 0 : index
    %c0_12 = arith.constant 0 : index
    %c96 = arith.constant 96 : index
    %21 = vector.load %arg1[%c0_11, %c0_12, %c96] : memref<1x16x192xbf16, #tpu.memory_space<vmem>>, vector<1x16x32xbf16>
    %22 = vector.shape_cast %21 : vector<1x16x32xbf16> to vector<16x32xbf16>
    %c0_13 = arith.constant 0 : index
    %c0_14 = arith.constant 0 : index
    %c160 = arith.constant 160 : index
    %23 = vector.load %arg1[%c0_13, %c0_14, %c160] : memref<1x16x192xbf16, #tpu.memory_space<vmem>>, vector<1x16x32xbf16>
    %24 = vector.shape_cast %23 : vector<1x16x32xbf16> to vector<16x32xbf16>
    %cst_15 = arith.constant dense<0.000000e+00> : vector<16x16xf32>
    %25 = tpu.matmul %20, %22, %cst_15 {dimension_numbers = #tpu.dot_dimension_numbers<[1], [1], [0], [0], [0, 0, 1, 0], [], []>} : vector<16x32xbf16>, vector<16x32xbf16>, vector<16x16xf32> -> vector<16x16xf32>
    %cst_16 = arith.constant dense<0xFF800000> : vector<16xf32>
    %26 = vector.multi_reduction <maximumf>, %25, %cst_16 [1] : vector<16x16xf32> to vector<16xf32>
    %27 = vector.shape_cast %26 : vector<16xf32> to vector<16x1xf32>
    %28 = vector.broadcast %27 : vector<16x1xf32> to vector<16x16xf32>
    %29 = arith.subf %25, %28 : vector<16x16xf32>
    %30 = math.exp %29 : vector<16x16xf32>
    %cst_17 = arith.constant dense<0.000000e+00> : vector<16xf32>
    %31 = vector.multi_reduction <add>, %30, %cst_17 [1] : vector<16x16xf32> to vector<16xf32>
    %32 = vector.shape_cast %31 : vector<16xf32> to vector<16x1xf32>
    %33 = tpu.reciprocal %32 {approx = true} : vector<16x1xf32> -> vector<16x1xf32>
    %34 = vector.broadcast %33 : vector<16x1xf32> to vector<16x16xf32>
    %35 = arith.mulf %30, %34 : vector<16x16xf32>
    %36 = arith.truncf %35 : vector<16x16xf32> to vector<16x16xbf16>
    %cst_18 = arith.constant dense<0.000000e+00> : vector<16x32xf32>
    %37 = tpu.matmul %36, %24, %cst_18 {dimension_numbers = #tpu.dot_dimension_numbers<[1], [0], [0], [1], [0, 0, 1, 1], [], []>} : vector<16x16xbf16>, vector<16x32xbf16>, vector<16x32xf32> -> vector<16x32xf32>
    %38 = tpu.concatenate %18, %37 in 1 : vector<16x32xf32>, vector<16x32xf32> -> vector<16x64xf32>
    %39 = arith.truncf %38 : vector<16x64xf32> to vector<16x64xbf16>
    %c0_19 = arith.constant 0 : index
    %c0_20 = arith.constant 0 : index
    %c0_21 = arith.constant 0 : index
    %40 = vector.load %arg2[%c0_19, %c0_20, %c0_21] : memref<1x16x64xbf16, #tpu.memory_space<vmem>>, vector<1x16x64xbf16>
    %41 = vector.shape_cast %40 : vector<1x16x64xbf16> to vector<16x64xbf16>
    %42 = vector.shape_cast %39 : vector<16x64xbf16> to vector<1x16x64xbf16>
    tpu.vector_store %arg2[%c0_19, %c0_20, %c0_21], %42 {strides = array<i32>} : memref<1x16x64xbf16, #tpu.memory_space<vmem>>, vector<1x16x64xbf16>,
    return
  }
  func.func @transform_0(%arg0: i32) -> (i32, i32, i32) {
    %c0_i32 = arith.constant 0 : i32
    %c0_i32_0 = arith.constant 0 : i32
    %c0_i32_1 = arith.constant 0 : i32
    return %arg0, %c0_i32, %c0_i32_0 : i32, i32, i32
  }
  func.func @transform_1(%arg0: i32) -> (i32, i32, i32) {
    %c0_i32 = arith.constant 0 : i32
    %c0_i32_0 = arith.constant 0 : i32
    %c0_i32_1 = arith.constant 0 : i32
    return %arg0, %c0_i32, %c0_i32_0 : i32, i32, i32
  }
}

module attributes {stable_mosaic.version = 11 : i64} {
  func.func @_ffn_kernel(%arg0: i32, %arg1: memref<16x64xf32, #tpu.memory_space<vmem>>, %arg2: memref<64x256xbf16, #tpu.memory_space<vmem>>, %arg3: memref<1x256xf32, #tpu.memory_space<vmem>>, %arg4: memref<256x64xbf16, #tpu.memory_space<vmem>>, %arg5: memref<1x64xf32, #tpu.memory_space<vmem>>, %arg6: memref<1x64xf32, #tpu.memory_space<vmem>>, %arg7: memref<1x64xf32, #tpu.memory_space<vmem>>, %arg8: memref<16x64xf32, #tpu.memory_space<vmem>>) attributes {dimension_semantics = [#tpu.dimension_semantics<parallel>], iteration_bounds = array<i64: 2>, scalar_prefetch = 0 : i64, scratch_operands = 0 : i64, tpu.core_type = #tpu.core_type<tc>, window_params = [{transform_indices = @transform_0, window_bounds = array<i64: 16, 64>}, {pipeline_mode = #tpu.pipeline_mode<synchronous>, transform_indices = @transform_1, window_bounds = array<i64: 64, 256>}, {pipeline_mode = #tpu.pipeline_mode<synchronous>, transform_indices = @transform_2, window_bounds = array<i64: 1, 256>}, {pipeline_mode = #tpu.pipeline_mode<synchronous>, transform_indices = @transform_3, window_bounds = array<i64: 256, 64>}, {pipeline_mode = #tpu.pipeline_mode<synchronous>, transform_indices = @transform_4, window_bounds = array<i64: 1, 64>}, {pipeline_mode = #tpu.pipeline_mode<synchronous>, transform_indices = @transform_5, window_bounds = array<i64: 1, 64>}, {pipeline_mode = #tpu.pipeline_mode<synchronous>, transform_indices = @transform_6, window_bounds = array<i64: 1, 64>}, {transform_indices = @transform_7, window_bounds = array<i64: 16, 64>}]} {
    %c0 = arith.constant 0 : index
    %c0_0 = arith.constant 0 : index
    %0 = vector.load %arg1[%c0, %c0_0] : memref<16x64xf32, #tpu.memory_space<vmem>>, vector<16x64xf32>
    %1 = arith.truncf %0 : vector<16x64xf32> to vector<16x64xbf16>
    %c0_1 = arith.constant 0 : index
    %c0_2 = arith.constant 0 : index
    %2 = vector.load %arg2[%c0_1, %c0_2] : memref<64x256xbf16, #tpu.memory_space<vmem>>, vector<64x256xbf16>
    %cst = arith.constant dense<0.000000e+00> : vector<16x256xf32>
    %3 = tpu.matmul %1, %2, %cst {dimension_numbers = #tpu.dot_dimension_numbers<[1], [0], [0], [1], [0, 0, 1, 1], [], []>} : vector<16x64xbf16>, vector<64x256xbf16>, vector<16x256xf32> -> vector<16x256xf32>
    %c0_3 = arith.constant 0 : index
    %c0_4 = arith.constant 0 : index
    %4 = vector.load %arg3[%c0_3, %c0_4] : memref<1x256xf32, #tpu.memory_space<vmem>>, vector<1x256xf32>
    %5 = vector.broadcast %4 : vector<1x256xf32> to vector<16x256xf32>
    %6 = arith.addf %3, %5 : vector<16x256xf32>
    %cst_5 = arith.constant 5.000000e-01 : f32
    %7 = vector.broadcast %cst_5 : f32 to vector<16x256xf32>
    %8 = arith.mulf %7, %6 : vector<16x256xf32>
    %cst_6 = arith.constant 4.471500e-02 : f32
    %9 = vector.broadcast %cst_6 : f32 to vector<16x256xf32>
    %10 = arith.mulf %9, %6 : vector<16x256xf32>
    %11 = arith.mulf %10, %6 : vector<16x256xf32>
    %12 = arith.mulf %11, %6 : vector<16x256xf32>
    %13 = arith.addf %6, %12 : vector<16x256xf32>
    %cst_7 = arith.constant 0.797884583 : f32
    %14 = vector.broadcast %cst_7 : f32 to vector<16x256xf32>
    %15 = arith.mulf %14, %13 : vector<16x256xf32>
    %16 = math.tanh %15 : vector<16x256xf32>
    %cst_8 = arith.constant 1.000000e+00 : f32
    %17 = vector.broadcast %cst_8 : f32 to vector<16x256xf32>
    %18 = arith.addf %17, %16 : vector<16x256xf32>
    %19 = arith.mulf %8, %18 : vector<16x256xf32>
    %20 = arith.truncf %19 : vector<16x256xf32> to vector<16x256xbf16>
    %c0_9 = arith.constant 0 : index
    %c0_10 = arith.constant 0 : index
    %21 = vector.load %arg4[%c0_9, %c0_10] : memref<256x64xbf16, #tpu.memory_space<vmem>>, vector<256x64xbf16>
    %cst_11 = arith.constant dense<0.000000e+00> : vector<16x64xf32>
    %22 = tpu.matmul %20, %21, %cst_11 {dimension_numbers = #tpu.dot_dimension_numbers<[1], [0], [0], [1], [0, 0, 1, 1], [], []>} : vector<16x256xbf16>, vector<256x64xbf16>, vector<16x64xf32> -> vector<16x64xf32>
    %c0_12 = arith.constant 0 : index
    %c0_13 = arith.constant 0 : index
    %23 = vector.load %arg5[%c0_12, %c0_13] : memref<1x64xf32, #tpu.memory_space<vmem>>, vector<1x64xf32>
    %24 = vector.broadcast %23 : vector<1x64xf32> to vector<16x64xf32>
    %25 = arith.addf %22, %24 : vector<16x64xf32>
    %26 = arith.addf %0, %25 : vector<16x64xf32>
    %c0_14 = arith.constant 0 : index
    %c0_15 = arith.constant 0 : index
    %27 = vector.load %arg6[%c0_14, %c0_15] : memref<1x64xf32, #tpu.memory_space<vmem>>, vector<1x64xf32>
    %c0_16 = arith.constant 0 : index
    %c0_17 = arith.constant 0 : index
    %28 = vector.load %arg7[%c0_16, %c0_17] : memref<1x64xf32, #tpu.memory_space<vmem>>, vector<1x64xf32>
    %cst_18 = arith.constant dense<0.000000e+00> : vector<16xf32>
    %29 = vector.multi_reduction <add>, %26, %cst_18 [1] : vector<16x64xf32> to vector<16xf32>
    %30 = vector.shape_cast %29 : vector<16xf32> to vector<16x1xf32>
    %cst_19 = arith.constant 6.400000e+01 : f32
    %31 = vector.broadcast %cst_19 : f32 to vector<16x1xf32>
    %32 = arith.divf %30, %31 : vector<16x1xf32>
    %33 = vector.broadcast %32 : vector<16x1xf32> to vector<16x64xf32>
    %34 = arith.subf %26, %33 : vector<16x64xf32>
    %35 = arith.mulf %34, %34 : vector<16x64xf32>
    %cst_20 = arith.constant dense<0.000000e+00> : vector<16xf32>
    %36 = vector.multi_reduction <add>, %35, %cst_20 [1] : vector<16x64xf32> to vector<16xf32>
    %37 = vector.shape_cast %36 : vector<16xf32> to vector<16x1xf32>
    %cst_21 = arith.constant 6.400000e+01 : f32
    %38 = vector.broadcast %cst_21 : f32 to vector<16x1xf32>
    %39 = arith.divf %37, %38 : vector<16x1xf32>
    %40 = vector.broadcast %32 : vector<16x1xf32> to vector<16x64xf32>
    %41 = arith.subf %26, %40 : vector<16x64xf32>
    %cst_22 = arith.constant 9.99999996E-13 : f32
    %42 = vector.broadcast %cst_22 : f32 to vector<16x1xf32>
    %43 = arith.addf %39, %42 : vector<16x1xf32>
    %44 = math.rsqrt %43 : vector<16x1xf32>
    %45 = vector.broadcast %44 : vector<16x1xf32> to vector<16x64xf32>
    %46 = arith.mulf %41, %45 : vector<16x64xf32>
    %47 = vector.broadcast %27 : vector<1x64xf32> to vector<16x64xf32>
    %48 = arith.mulf %46, %47 : vector<16x64xf32>
    %49 = vector.broadcast %28 : vector<1x64xf32> to vector<16x64xf32>
    %50 = arith.addf %48, %49 : vector<16x64xf32>
    %c0_23 = arith.constant 0 : index
    %c0_24 = arith.constant 0 : index
    %51 = vector.load %arg8[%c0_23, %c0_24] : memref<16x64xf32, #tpu.memory_space<vmem>>, vector<16x64xf32>
    tpu.vector_store %arg8[%c0_23, %c0_24], %50 {strides = array<i32>} : memref<16x64xf32, #tpu.memory_space<vmem>>, vector<16x64xf32>,
    return
  }
  func.func @transform_0(%arg0: i32) -> (i32, i32) {
    %c0_i32 = arith.constant 0 : i32
    %c0_i32_0 = arith.constant 0 : i32
    return %arg0, %c0_i32 : i32, i32
  }
  func.func @transform_1(%arg0: i32) -> (i32, i32) {
    %c0_i32 = arith.constant 0 : i32
    %c0_i32_0 = arith.constant 0 : i32
    %c0_i32_1 = arith.constant 0 : i32
    return %c0_i32, %c0_i32_0 : i32, i32
  }
  func.func @transform_2(%arg0: i32) -> (i32, i32) {
    %c0_i32 = arith.constant 0 : i32
    %c0_i32_0 = arith.constant 0 : i32
    %c0_i32_1 = arith.constant 0 : i32
    return %c0_i32, %c0_i32_0 : i32, i32
  }
  func.func @transform_3(%arg0: i32) -> (i32, i32) {
    %c0_i32 = arith.constant 0 : i32
    %c0_i32_0 = arith.constant 0 : i32
    %c0_i32_1 = arith.constant 0 : i32
    return %c0_i32, %c0_i32_0 : i32, i32
  }
  func.func @transform_4(%arg0: i32) -> (i32, i32) {
    %c0_i32 = arith.constant 0 : i32
    %c0_i32_0 = arith.constant 0 : i32
    %c0_i32_1 = arith.constant 0 : i32
    return %c0_i32, %c0_i32_0 : i32, i32
  }
  func.func @transform_5(%arg0: i32) -> (i32, i32) {
    %c0_i32 = arith.constant 0 : i32
    %c0_i32_0 = arith.constant 0 : i32
    %c0_i32_1 = arith.constant 0 : i32
    return %c0_i32, %c0_i32_0 : i32, i32
  }
  func.func @transform_6(%arg0: i32) -> (i32, i32) {
    %c0_i32 = arith.constant 0 : i32
    %c0_i32_0 = arith.constant 0 : i32
    %c0_i32_1 = arith.constant 0 : i32
    return %c0_i32, %c0_i32_0 : i32, i32
  }
  func.func @transform_7(%arg0: i32) -> (i32, i32) {
    %c0_i32 = arith.constant 0 : i32
    %c0_i32_0 = arith.constant 0 : i32
    return %arg0, %c0_i32 : i32, i32
  }
}

module attributes {stable_mosaic.version = 11 : i64} {
  func.func @_gru_proj1_kernel(%arg0: i32, %arg1: memref<16x64xf32, #tpu.memory_space<vmem>>, %arg2: memref<64x192xbf16, #tpu.memory_space<vmem>>, %arg3: memref<1x192xf32, #tpu.memory_space<vmem>>, %arg4: memref<2x16x96xf32, #tpu.memory_space<vmem>>) attributes {dimension_semantics = [#tpu.dimension_semantics<parallel>], iteration_bounds = array<i64: 2>, scalar_prefetch = 0 : i64, scratch_operands = 0 : i64, tpu.core_type = #tpu.core_type<tc>, window_params = [{transform_indices = @transform_0, window_bounds = array<i64: 16, 64>}, {pipeline_mode = #tpu.pipeline_mode<synchronous>, transform_indices = @transform_1, window_bounds = array<i64: 64, 192>}, {pipeline_mode = #tpu.pipeline_mode<synchronous>, transform_indices = @transform_2, window_bounds = array<i64: 1, 192>}, {transform_indices = @transform_3, window_bounds = array<i64: 2, 16, 96>}]} {
    %c0 = arith.constant 0 : index
    %c0_0 = arith.constant 0 : index
    %0 = vector.load %arg1[%c0, %c0_0] : memref<16x64xf32, #tpu.memory_space<vmem>>, vector<16x64xf32>
    %1 = arith.truncf %0 : vector<16x64xf32> to vector<16x64xbf16>
    %c0_1 = arith.constant 0 : index
    %c0_2 = arith.constant 0 : index
    %2 = vector.load %arg2[%c0_1, %c0_2] : memref<64x192xbf16, #tpu.memory_space<vmem>>, vector<64x192xbf16>
    %cst = arith.constant dense<0.000000e+00> : vector<16x192xf32>
    %3 = tpu.matmul %1, %2, %cst {dimension_numbers = #tpu.dot_dimension_numbers<[1], [0], [0], [1], [0, 0, 1, 1], [], []>} : vector<16x64xbf16>, vector<64x192xbf16>, vector<16x192xf32> -> vector<16x192xf32>
    %c0_3 = arith.constant 0 : index
    %c0_4 = arith.constant 0 : index
    %4 = vector.load %arg3[%c0_3, %c0_4] : memref<1x192xf32, #tpu.memory_space<vmem>>, vector<1x192xf32>
    %5 = vector.broadcast %4 : vector<1x192xf32> to vector<16x192xf32>
    %6 = arith.addf %3, %5 : vector<16x192xf32>
    %7 = vector.extract_strided_slice %6 {offsets = [0, 0], sizes = [16, 96], strides = [1, 1]} : vector<16x192xf32> to vector<16x96xf32>
    %c0_5 = arith.constant 0 : index
    %c0_6 = arith.constant 0 : index
    %c0_7 = arith.constant 0 : index
    %8 = vector.load %arg4[%c0_5, %c0_6, %c0_7] : memref<2x16x96xf32, #tpu.memory_space<vmem>>, vector<1x16x96xf32>
    %9 = vector.shape_cast %8 : vector<1x16x96xf32> to vector<16x96xf32>
    %10 = vector.shape_cast %7 : vector<16x96xf32> to vector<1x16x96xf32>
    tpu.vector_store %arg4[%c0_5, %c0_6, %c0_7], %10 {strides = array<i32>} : memref<2x16x96xf32, #tpu.memory_space<vmem>>, vector<1x16x96xf32>,
    %11 = vector.extract_strided_slice %6 {offsets = [0, 96], sizes = [16, 96], strides = [1, 1]} : vector<16x192xf32> to vector<16x96xf32>
    %c1 = arith.constant 1 : index
    %c0_8 = arith.constant 0 : index
    %c0_9 = arith.constant 0 : index
    %12 = vector.load %arg4[%c1, %c0_8, %c0_9] : memref<2x16x96xf32, #tpu.memory_space<vmem>>, vector<1x16x96xf32>
    %13 = vector.shape_cast %12 : vector<1x16x96xf32> to vector<16x96xf32>
    %14 = vector.shape_cast %11 : vector<16x96xf32> to vector<1x16x96xf32>
    tpu.vector_store %arg4[%c1, %c0_8, %c0_9], %14 {strides = array<i32>} : memref<2x16x96xf32, #tpu.memory_space<vmem>>, vector<1x16x96xf32>,
    return
  }
  func.func @transform_0(%arg0: i32) -> (i32, i32) {
    %c0_i32 = arith.constant 0 : i32
    %c0_i32_0 = arith.constant 0 : i32
    return %arg0, %c0_i32 : i32, i32
  }
  func.func @transform_1(%arg0: i32) -> (i32, i32) {
    %c0_i32 = arith.constant 0 : i32
    %c0_i32_0 = arith.constant 0 : i32
    %c0_i32_1 = arith.constant 0 : i32
    return %c0_i32, %c0_i32_0 : i32, i32
  }
  func.func @transform_2(%arg0: i32) -> (i32, i32) {
    %c0_i32 = arith.constant 0 : i32
    %c0_i32_0 = arith.constant 0 : i32
    %c0_i32_1 = arith.constant 0 : i32
    return %c0_i32, %c0_i32_0 : i32, i32
  }
  func.func @transform_3(%arg0: i32) -> (i32, i32, i32) {
    %c0_i32 = arith.constant 0 : i32
    %c0_i32_0 = arith.constant 0 : i32
    %c0_i32_1 = arith.constant 0 : i32
    return %c0_i32, %arg0, %c0_i32_0 : i32, i32, i32
  }
}

module attributes {stable_mosaic.version = 11 : i64} {
  func.func @_gru_proj2_kernel(%arg0: i32, %arg1: memref<2x16x32xf32, #tpu.memory_space<vmem>>, %arg2: memref<32x192xbf16, #tpu.memory_space<vmem>>, %arg3: memref<32x192xbf16, #tpu.memory_space<vmem>>, %arg4: memref<1x192xf32, #tpu.memory_space<vmem>>, %arg5: memref<2x16x96xf32, #tpu.memory_space<vmem>>) attributes {dimension_semantics = [#tpu.dimension_semantics<parallel>], iteration_bounds = array<i64: 2>, scalar_prefetch = 0 : i64, scratch_operands = 0 : i64, tpu.core_type = #tpu.core_type<tc>, window_params = [{transform_indices = @transform_0, window_bounds = array<i64: 2, 16, 32>}, {pipeline_mode = #tpu.pipeline_mode<synchronous>, transform_indices = @transform_1, window_bounds = array<i64: 32, 192>}, {pipeline_mode = #tpu.pipeline_mode<synchronous>, transform_indices = @transform_2, window_bounds = array<i64: 32, 192>}, {pipeline_mode = #tpu.pipeline_mode<synchronous>, transform_indices = @transform_3, window_bounds = array<i64: 1, 192>}, {transform_indices = @transform_4, window_bounds = array<i64: 2, 16, 96>}]} {
    %c0 = arith.constant 0 : index
    %c0_0 = arith.constant 0 : index
    %c0_1 = arith.constant 0 : index
    %0 = vector.load %arg1[%c0, %c0_0, %c0_1] : memref<2x16x32xf32, #tpu.memory_space<vmem>>, vector<1x16x32xf32>
    %1 = vector.shape_cast %0 : vector<1x16x32xf32> to vector<16x32xf32>
    %2 = arith.truncf %1 : vector<16x32xf32> to vector<16x32xbf16>
    %c0_2 = arith.constant 0 : index
    %c0_3 = arith.constant 0 : index
    %3 = vector.load %arg2[%c0_2, %c0_3] : memref<32x192xbf16, #tpu.memory_space<vmem>>, vector<32x192xbf16>
    %cst = arith.constant dense<0.000000e+00> : vector<16x192xf32>
    %4 = tpu.matmul %2, %3, %cst {dimension_numbers = #tpu.dot_dimension_numbers<[1], [0], [0], [1], [0, 0, 1, 1], [], []>} : vector<16x32xbf16>, vector<32x192xbf16>, vector<16x192xf32> -> vector<16x192xf32>
    %c1 = arith.constant 1 : index
    %c0_4 = arith.constant 0 : index
    %c0_5 = arith.constant 0 : index
    %5 = vector.load %arg1[%c1, %c0_4, %c0_5] : memref<2x16x32xf32, #tpu.memory_space<vmem>>, vector<1x16x32xf32>
    %6 = vector.shape_cast %5 : vector<1x16x32xf32> to vector<16x32xf32>
    %7 = arith.truncf %6 : vector<16x32xf32> to vector<16x32xbf16>
    %c0_6 = arith.constant 0 : index
    %c0_7 = arith.constant 0 : index
    %8 = vector.load %arg3[%c0_6, %c0_7] : memref<32x192xbf16, #tpu.memory_space<vmem>>, vector<32x192xbf16>
    %cst_8 = arith.constant dense<0.000000e+00> : vector<16x192xf32>
    %9 = tpu.matmul %7, %8, %cst_8 {dimension_numbers = #tpu.dot_dimension_numbers<[1], [0], [0], [1], [0, 0, 1, 1], [], []>} : vector<16x32xbf16>, vector<32x192xbf16>, vector<16x192xf32> -> vector<16x192xf32>
    %10 = arith.addf %4, %9 : vector<16x192xf32>
    %c0_9 = arith.constant 0 : index
    %c0_10 = arith.constant 0 : index
    %11 = vector.load %arg4[%c0_9, %c0_10] : memref<1x192xf32, #tpu.memory_space<vmem>>, vector<1x192xf32>
    %12 = vector.broadcast %11 : vector<1x192xf32> to vector<16x192xf32>
    %13 = arith.addf %10, %12 : vector<16x192xf32>
    %14 = vector.extract_strided_slice %13 {offsets = [0, 0], sizes = [16, 96], strides = [1, 1]} : vector<16x192xf32> to vector<16x96xf32>
    %c0_11 = arith.constant 0 : index
    %c0_12 = arith.constant 0 : index
    %c0_13 = arith.constant 0 : index
    %15 = vector.load %arg5[%c0_11, %c0_12, %c0_13] : memref<2x16x96xf32, #tpu.memory_space<vmem>>, vector<1x16x96xf32>
    %16 = vector.shape_cast %15 : vector<1x16x96xf32> to vector<16x96xf32>
    %17 = vector.shape_cast %14 : vector<16x96xf32> to vector<1x16x96xf32>
    tpu.vector_store %arg5[%c0_11, %c0_12, %c0_13], %17 {strides = array<i32>} : memref<2x16x96xf32, #tpu.memory_space<vmem>>, vector<1x16x96xf32>,
    %18 = vector.extract_strided_slice %13 {offsets = [0, 96], sizes = [16, 96], strides = [1, 1]} : vector<16x192xf32> to vector<16x96xf32>
    %c1_14 = arith.constant 1 : index
    %c0_15 = arith.constant 0 : index
    %c0_16 = arith.constant 0 : index
    %19 = vector.load %arg5[%c1_14, %c0_15, %c0_16] : memref<2x16x96xf32, #tpu.memory_space<vmem>>, vector<1x16x96xf32>
    %20 = vector.shape_cast %19 : vector<1x16x96xf32> to vector<16x96xf32>
    %21 = vector.shape_cast %18 : vector<16x96xf32> to vector<1x16x96xf32>
    tpu.vector_store %arg5[%c1_14, %c0_15, %c0_16], %21 {strides = array<i32>} : memref<2x16x96xf32, #tpu.memory_space<vmem>>, vector<1x16x96xf32>,
    return
  }
  func.func @transform_0(%arg0: i32) -> (i32, i32, i32) {
    %c0_i32 = arith.constant 0 : i32
    %c0_i32_0 = arith.constant 0 : i32
    %c0_i32_1 = arith.constant 0 : i32
    return %c0_i32, %arg0, %c0_i32_0 : i32, i32, i32
  }
  func.func @transform_1(%arg0: i32) -> (i32, i32) {
    %c0_i32 = arith.constant 0 : i32
    %c0_i32_0 = arith.constant 0 : i32
    %c0_i32_1 = arith.constant 0 : i32
    return %c0_i32, %c0_i32_0 : i32, i32
  }
  func.func @transform_2(%arg0: i32) -> (i32, i32) {
    %c0_i32 = arith.constant 0 : i32
    %c0_i32_0 = arith.constant 0 : i32
    %c0_i32_1 = arith.constant 0 : i32
    return %c0_i32, %c0_i32_0 : i32, i32
  }
  func.func @transform_3(%arg0: i32) -> (i32, i32) {
    %c0_i32 = arith.constant 0 : i32
    %c0_i32_0 = arith.constant 0 : i32
    %c0_i32_1 = arith.constant 0 : i32
    return %c0_i32, %c0_i32_0 : i32, i32
  }
  func.func @transform_4(%arg0: i32) -> (i32, i32, i32) {
    %c0_i32 = arith.constant 0 : i32
    %c0_i32_0 = arith.constant 0 : i32
    %c0_i32_1 = arith.constant 0 : i32
    return %c0_i32, %arg0, %c0_i32_0 : i32, i32, i32
  }
}

module attributes {stable_mosaic.version = 11 : i64} {
  func.func @_bigru_rec_kernel(%arg0: i32, %arg1: i32, %arg2: memref<1x8x2x96xf32, #tpu.memory_space<vmem>>, %arg3: memref<1x32x96xbf16, #tpu.memory_space<vmem>>, %arg4: memref<1x1x96xf32, #tpu.memory_space<vmem>>, %arg5: memref<1x8x2x32xf32, #tpu.memory_space<vmem>>, %arg6: memref<1x2x32xf32, #tpu.memory_space<vmem>>, %arg7: memref<2x32xf32, #tpu.memory_space<vmem>>) attributes {dimension_semantics = [#tpu.dimension_semantics<parallel>, #tpu.dimension_semantics<arbitrary>], iteration_bounds = array<i64: 2, 2>, scalar_prefetch = 0 : i64, scratch_operands = 1 : i64, tpu.core_type = #tpu.core_type<tc>, window_params = [{transform_indices = @transform_0, window_bounds = array<i64: 1, 8, 2, 96>}, {transform_indices = @transform_1, window_bounds = array<i64: 1, 32, 96>}, {transform_indices = @transform_2, window_bounds = array<i64: 1, 1, 96>}, {transform_indices = @transform_3, window_bounds = array<i64: 1, 8, 2, 32>}, {transform_indices = @transform_4, window_bounds = array<i64: 1, 2, 32>}]} {
    %c0_i32 = arith.constant 0 : i32
    %0 = arith.cmpi eq, %arg1, %c0_i32 : i32
    %1 = arith.extui %0 : i1 to i32
    %c0_i32_0 = arith.constant 0 : i32
    %2 = arith.cmpi ne, %1, %c0_i32_0 : i32
    scf.if %2 {
      %cst_116 = arith.constant 0.000000e+00 : f32
      %348 = vector.broadcast %cst_116 : f32 to vector<2x32xf32>
      %c0_117 = arith.constant 0 : index
      %c0_118 = arith.constant 0 : index
      %349 = vector.load %arg7[%c0_117, %c0_118] : memref<2x32xf32, #tpu.memory_space<vmem>>, vector<2x32xf32>
      tpu.vector_store %arg7[%c0_117, %c0_118], %348 {strides = array<i32>} : memref<2x32xf32, #tpu.memory_space<vmem>>, vector<2x32xf32>,
    } else {
    }
    %c0 = arith.constant 0 : index
    %c0_1 = arith.constant 0 : index
    %c0_2 = arith.constant 0 : index
    %3 = vector.load %arg3[%c0, %c0_1, %c0_2] : memref<1x32x96xbf16, #tpu.memory_space<vmem>>, vector<1x32x96xbf16>
    %4 = vector.shape_cast %3 : vector<1x32x96xbf16> to vector<32x96xbf16>
    %c0_3 = arith.constant 0 : index
    %c0_4 = arith.constant 0 : index
    %c0_5 = arith.constant 0 : index
    %5 = vector.load %arg4[%c0_3, %c0_4, %c0_5] : memref<1x1x96xf32, #tpu.memory_space<vmem>>, vector<1x1x96xf32>
    %6 = vector.shape_cast %5 : vector<1x1x96xf32> to vector<1x96xf32>
    %c0_6 = arith.constant 0 : index
    %c0_7 = arith.constant 0 : index
    %7 = vector.load %arg7[%c0_6, %c0_7] : memref<2x32xf32, #tpu.memory_space<vmem>>, vector<2x32xf32>
    %c0_i32_8 = arith.constant 0 : i32
    %c2_i32 = arith.constant 2 : i32
    %8 = arith.muli %c2_i32, %arg0 : i32
    %c1_i32 = arith.constant 1 : i32
    %9 = arith.subi %c1_i32, %8 : i32
    %10 = arith.muli %c0_i32_8, %9 : i32
    %c7_i32 = arith.constant 7 : i32
    %11 = arith.muli %arg0, %c7_i32 : i32
    %12 = arith.addi %10, %11 : i32
    %c0_9 = arith.constant 0 : index
    %13 = arith.index_cast %12 : i32 to index
    %c0_10 = arith.constant 0 : index
    %c0_11 = arith.constant 0 : index
    %14 = vector.load %arg2[%c0_9, %13, %c0_10, %c0_11] : memref<1x8x2x96xf32, #tpu.memory_space<vmem>>, vector<1x1x2x96xf32>
    %15 = vector.shape_cast %14 : vector<1x1x2x96xf32> to vector<2x96xf32>
    %16 = arith.truncf %7 : vector<2x32xf32> to vector<2x32xbf16>
    %cst = arith.constant dense<0.000000e+00> : vector<2x96xf32>
    %17 = tpu.matmul %16, %4, %cst {dimension_numbers = #tpu.dot_dimension_numbers<[1], [0], [0], [1], [0, 0, 1, 1], [], []>} : vector<2x32xbf16>, vector<32x96xbf16>, vector<2x96xf32> -> vector<2x96xf32>
    %18 = vector.broadcast %6 : vector<1x96xf32> to vector<2x96xf32>
    %19 = arith.addf %17, %18 : vector<2x96xf32>
    %20 = vector.extract_strided_slice %15 {offsets = [0, 0], sizes = [2, 32], strides = [1, 1]} : vector<2x96xf32> to vector<2x32xf32>
    %21 = vector.extract_strided_slice %19 {offsets = [0, 0], sizes = [2, 32], strides = [1, 1]} : vector<2x96xf32> to vector<2x32xf32>
    %22 = arith.addf %20, %21 : vector<2x32xf32>
    %23 = arith.negf %22 : vector<2x32xf32>
    %24 = math.exp %23 : vector<2x32xf32>
    %cst_12 = arith.constant 1.000000e+00 : f32
    %25 = vector.broadcast %cst_12 : f32 to vector<2x32xf32>
    %26 = arith.addf %25, %24 : vector<2x32xf32>
    %27 = arith.divf %25, %26 : vector<2x32xf32>
    %28 = vector.extract_strided_slice %15 {offsets = [0, 32], sizes = [2, 32], strides = [1, 1]} : vector<2x96xf32> to vector<2x32xf32>
    %29 = vector.extract_strided_slice %19 {offsets = [0, 32], sizes = [2, 32], strides = [1, 1]} : vector<2x96xf32> to vector<2x32xf32>
    %30 = arith.addf %28, %29 : vector<2x32xf32>
    %31 = arith.negf %30 : vector<2x32xf32>
    %32 = math.exp %31 : vector<2x32xf32>
    %cst_13 = arith.constant 1.000000e+00 : f32
    %33 = vector.broadcast %cst_13 : f32 to vector<2x32xf32>
    %34 = arith.addf %33, %32 : vector<2x32xf32>
    %35 = arith.divf %33, %34 : vector<2x32xf32>
    %36 = vector.extract_strided_slice %15 {offsets = [0, 64], sizes = [2, 32], strides = [1, 1]} : vector<2x96xf32> to vector<2x32xf32>
    %37 = vector.extract_strided_slice %19 {offsets = [0, 64], sizes = [2, 32], strides = [1, 1]} : vector<2x96xf32> to vector<2x32xf32>
    %38 = arith.mulf %27, %37 : vector<2x32xf32>
    %39 = arith.addf %36, %38 : vector<2x32xf32>
    %40 = math.tanh %39 : vector<2x32xf32>
    %cst_14 = arith.constant 1.000000e+00 : f32
    %41 = vector.broadcast %cst_14 : f32 to vector<2x32xf32>
    %42 = arith.subf %41, %35 : vector<2x32xf32>
    %43 = arith.mulf %42, %40 : vector<2x32xf32>
    %44 = arith.mulf %35, %7 : vector<2x32xf32>
    %45 = arith.addf %43, %44 : vector<2x32xf32>
    %c0_15 = arith.constant 0 : index
    %46 = arith.index_cast %12 : i32 to index
    %c0_16 = arith.constant 0 : index
    %c0_17 = arith.constant 0 : index
    %47 = vector.load %arg5[%c0_15, %46, %c0_16, %c0_17] : memref<1x8x2x32xf32, #tpu.memory_space<vmem>>, vector<1x1x2x32xf32>
    %48 = vector.shape_cast %47 : vector<1x1x2x32xf32> to vector<2x32xf32>
    %49 = vector.shape_cast %45 : vector<2x32xf32> to vector<1x1x2x32xf32>
    tpu.vector_store %arg5[%c0_15, %46, %c0_16, %c0_17], %49 {strides = array<i32>} : memref<1x8x2x32xf32, #tpu.memory_space<vmem>>, vector<1x1x2x32xf32>,
    %c1_i32_18 = arith.constant 1 : i32
    %c2_i32_19 = arith.constant 2 : i32
    %50 = arith.muli %c2_i32_19, %arg0 : i32
    %c1_i32_20 = arith.constant 1 : i32
    %51 = arith.subi %c1_i32_20, %50 : i32
    %52 = arith.muli %c1_i32_18, %51 : i32
    %c7_i32_21 = arith.constant 7 : i32
    %53 = arith.muli %arg0, %c7_i32_21 : i32
    %54 = arith.addi %52, %53 : i32
    %c0_22 = arith.constant 0 : index
    %55 = arith.index_cast %54 : i32 to index
    %c0_23 = arith.constant 0 : index
    %c0_24 = arith.constant 0 : index
    %56 = vector.load %arg2[%c0_22, %55, %c0_23, %c0_24] : memref<1x8x2x96xf32, #tpu.memory_space<vmem>>, vector<1x1x2x96xf32>
    %57 = vector.shape_cast %56 : vector<1x1x2x96xf32> to vector<2x96xf32>
    %58 = arith.truncf %45 : vector<2x32xf32> to vector<2x32xbf16>
    %cst_25 = arith.constant dense<0.000000e+00> : vector<2x96xf32>
    %59 = tpu.matmul %58, %4, %cst_25 {dimension_numbers = #tpu.dot_dimension_numbers<[1], [0], [0], [1], [0, 0, 1, 1], [], []>} : vector<2x32xbf16>, vector<32x96xbf16>, vector<2x96xf32> -> vector<2x96xf32>
    %60 = vector.broadcast %6 : vector<1x96xf32> to vector<2x96xf32>
    %61 = arith.addf %59, %60 : vector<2x96xf32>
    %62 = vector.extract_strided_slice %57 {offsets = [0, 0], sizes = [2, 32], strides = [1, 1]} : vector<2x96xf32> to vector<2x32xf32>
    %63 = vector.extract_strided_slice %61 {offsets = [0, 0], sizes = [2, 32], strides = [1, 1]} : vector<2x96xf32> to vector<2x32xf32>
    %64 = arith.addf %62, %63 : vector<2x32xf32>
    %65 = arith.negf %64 : vector<2x32xf32>
    %66 = math.exp %65 : vector<2x32xf32>
    %cst_26 = arith.constant 1.000000e+00 : f32
    %67 = vector.broadcast %cst_26 : f32 to vector<2x32xf32>
    %68 = arith.addf %67, %66 : vector<2x32xf32>
    %69 = arith.divf %67, %68 : vector<2x32xf32>
    %70 = vector.extract_strided_slice %57 {offsets = [0, 32], sizes = [2, 32], strides = [1, 1]} : vector<2x96xf32> to vector<2x32xf32>
    %71 = vector.extract_strided_slice %61 {offsets = [0, 32], sizes = [2, 32], strides = [1, 1]} : vector<2x96xf32> to vector<2x32xf32>
    %72 = arith.addf %70, %71 : vector<2x32xf32>
    %73 = arith.negf %72 : vector<2x32xf32>
    %74 = math.exp %73 : vector<2x32xf32>
    %cst_27 = arith.constant 1.000000e+00 : f32
    %75 = vector.broadcast %cst_27 : f32 to vector<2x32xf32>
    %76 = arith.addf %75, %74 : vector<2x32xf32>
    %77 = arith.divf %75, %76 : vector<2x32xf32>
    %78 = vector.extract_strided_slice %57 {offsets = [0, 64], sizes = [2, 32], strides = [1, 1]} : vector<2x96xf32> to vector<2x32xf32>
    %79 = vector.extract_strided_slice %61 {offsets = [0, 64], sizes = [2, 32], strides = [1, 1]} : vector<2x96xf32> to vector<2x32xf32>
    %80 = arith.mulf %69, %79 : vector<2x32xf32>
    %81 = arith.addf %78, %80 : vector<2x32xf32>
    %82 = math.tanh %81 : vector<2x32xf32>
    %cst_28 = arith.constant 1.000000e+00 : f32
    %83 = vector.broadcast %cst_28 : f32 to vector<2x32xf32>
    %84 = arith.subf %83, %77 : vector<2x32xf32>
    %85 = arith.mulf %84, %82 : vector<2x32xf32>
    %86 = arith.mulf %77, %45 : vector<2x32xf32>
    %87 = arith.addf %85, %86 : vector<2x32xf32>
    %c0_29 = arith.constant 0 : index
    %88 = arith.index_cast %54 : i32 to index
    %c0_30 = arith.constant 0 : index
    %c0_31 = arith.constant 0 : index
    %89 = vector.load %arg5[%c0_29, %88, %c0_30, %c0_31] : memref<1x8x2x32xf32, #tpu.memory_space<vmem>>, vector<1x1x2x32xf32>
    %90 = vector.shape_cast %89 : vector<1x1x2x32xf32> to vector<2x32xf32>
    %91 = vector.shape_cast %87 : vector<2x32xf32> to vector<1x1x2x32xf32>
    tpu.vector_store %arg5[%c0_29, %88, %c0_30, %c0_31], %91 {strides = array<i32>} : memref<1x8x2x32xf32, #tpu.memory_space<vmem>>, vector<1x1x2x32xf32>,
    %c2_i32_32 = arith.constant 2 : i32
    %c2_i32_33 = arith.constant 2 : i32
    %92 = arith.muli %c2_i32_33, %arg0 : i32
    %c1_i32_34 = arith.constant 1 : i32
    %93 = arith.subi %c1_i32_34, %92 : i32
    %94 = arith.muli %c2_i32_32, %93 : i32
    %c7_i32_35 = arith.constant 7 : i32
    %95 = arith.muli %arg0, %c7_i32_35 : i32
    %96 = arith.addi %94, %95 : i32
    %c0_36 = arith.constant 0 : index
    %97 = arith.index_cast %96 : i32 to index
    %c0_37 = arith.constant 0 : index
    %c0_38 = arith.constant 0 : index
    %98 = vector.load %arg2[%c0_36, %97, %c0_37, %c0_38] : memref<1x8x2x96xf32, #tpu.memory_space<vmem>>, vector<1x1x2x96xf32>
    %99 = vector.shape_cast %98 : vector<1x1x2x96xf32> to vector<2x96xf32>
    %100 = arith.truncf %87 : vector<2x32xf32> to vector<2x32xbf16>
    %cst_39 = arith.constant dense<0.000000e+00> : vector<2x96xf32>
    %101 = tpu.matmul %100, %4, %cst_39 {dimension_numbers = #tpu.dot_dimension_numbers<[1], [0], [0], [1], [0, 0, 1, 1], [], []>} : vector<2x32xbf16>, vector<32x96xbf16>, vector<2x96xf32> -> vector<2x96xf32>
    %102 = vector.broadcast %6 : vector<1x96xf32> to vector<2x96xf32>
    %103 = arith.addf %101, %102 : vector<2x96xf32>
    %104 = vector.extract_strided_slice %99 {offsets = [0, 0], sizes = [2, 32], strides = [1, 1]} : vector<2x96xf32> to vector<2x32xf32>
    %105 = vector.extract_strided_slice %103 {offsets = [0, 0], sizes = [2, 32], strides = [1, 1]} : vector<2x96xf32> to vector<2x32xf32>
    %106 = arith.addf %104, %105 : vector<2x32xf32>
    %107 = arith.negf %106 : vector<2x32xf32>
    %108 = math.exp %107 : vector<2x32xf32>
    %cst_40 = arith.constant 1.000000e+00 : f32
    %109 = vector.broadcast %cst_40 : f32 to vector<2x32xf32>
    %110 = arith.addf %109, %108 : vector<2x32xf32>
    %111 = arith.divf %109, %110 : vector<2x32xf32>
    %112 = vector.extract_strided_slice %99 {offsets = [0, 32], sizes = [2, 32], strides = [1, 1]} : vector<2x96xf32> to vector<2x32xf32>
    %113 = vector.extract_strided_slice %103 {offsets = [0, 32], sizes = [2, 32], strides = [1, 1]} : vector<2x96xf32> to vector<2x32xf32>
    %114 = arith.addf %112, %113 : vector<2x32xf32>
    %115 = arith.negf %114 : vector<2x32xf32>
    %116 = math.exp %115 : vector<2x32xf32>
    %cst_41 = arith.constant 1.000000e+00 : f32
    %117 = vector.broadcast %cst_41 : f32 to vector<2x32xf32>
    %118 = arith.addf %117, %116 : vector<2x32xf32>
    %119 = arith.divf %117, %118 : vector<2x32xf32>
    %120 = vector.extract_strided_slice %99 {offsets = [0, 64], sizes = [2, 32], strides = [1, 1]} : vector<2x96xf32> to vector<2x32xf32>
    %121 = vector.extract_strided_slice %103 {offsets = [0, 64], sizes = [2, 32], strides = [1, 1]} : vector<2x96xf32> to vector<2x32xf32>
    %122 = arith.mulf %111, %121 : vector<2x32xf32>
    %123 = arith.addf %120, %122 : vector<2x32xf32>
    %124 = math.tanh %123 : vector<2x32xf32>
    %cst_42 = arith.constant 1.000000e+00 : f32
    %125 = vector.broadcast %cst_42 : f32 to vector<2x32xf32>
    %126 = arith.subf %125, %119 : vector<2x32xf32>
    %127 = arith.mulf %126, %124 : vector<2x32xf32>
    %128 = arith.mulf %119, %87 : vector<2x32xf32>
    %129 = arith.addf %127, %128 : vector<2x32xf32>
    %c0_43 = arith.constant 0 : index
    %130 = arith.index_cast %96 : i32 to index
    %c0_44 = arith.constant 0 : index
    %c0_45 = arith.constant 0 : index
    %131 = vector.load %arg5[%c0_43, %130, %c0_44, %c0_45] : memref<1x8x2x32xf32, #tpu.memory_space<vmem>>, vector<1x1x2x32xf32>
    %132 = vector.shape_cast %131 : vector<1x1x2x32xf32> to vector<2x32xf32>
    %133 = vector.shape_cast %129 : vector<2x32xf32> to vector<1x1x2x32xf32>
    tpu.vector_store %arg5[%c0_43, %130, %c0_44, %c0_45], %133 {strides = array<i32>} : memref<1x8x2x32xf32, #tpu.memory_space<vmem>>, vector<1x1x2x32xf32>,
    %c3_i32 = arith.constant 3 : i32
    %c2_i32_46 = arith.constant 2 : i32
    %134 = arith.muli %c2_i32_46, %arg0 : i32
    %c1_i32_47 = arith.constant 1 : i32
    %135 = arith.subi %c1_i32_47, %134 : i32
    %136 = arith.muli %c3_i32, %135 : i32
    %c7_i32_48 = arith.constant 7 : i32
    %137 = arith.muli %arg0, %c7_i32_48 : i32
    %138 = arith.addi %136, %137 : i32
    %c0_49 = arith.constant 0 : index
    %139 = arith.index_cast %138 : i32 to index
    %c0_50 = arith.constant 0 : index
    %c0_51 = arith.constant 0 : index
    %140 = vector.load %arg2[%c0_49, %139, %c0_50, %c0_51] : memref<1x8x2x96xf32, #tpu.memory_space<vmem>>, vector<1x1x2x96xf32>
    %141 = vector.shape_cast %140 : vector<1x1x2x96xf32> to vector<2x96xf32>
    %142 = arith.truncf %129 : vector<2x32xf32> to vector<2x32xbf16>
    %cst_52 = arith.constant dense<0.000000e+00> : vector<2x96xf32>
    %143 = tpu.matmul %142, %4, %cst_52 {dimension_numbers = #tpu.dot_dimension_numbers<[1], [0], [0], [1], [0, 0, 1, 1], [], []>} : vector<2x32xbf16>, vector<32x96xbf16>, vector<2x96xf32> -> vector<2x96xf32>
    %144 = vector.broadcast %6 : vector<1x96xf32> to vector<2x96xf32>
    %145 = arith.addf %143, %144 : vector<2x96xf32>
    %146 = vector.extract_strided_slice %141 {offsets = [0, 0], sizes = [2, 32], strides = [1, 1]} : vector<2x96xf32> to vector<2x32xf32>
    %147 = vector.extract_strided_slice %145 {offsets = [0, 0], sizes = [2, 32], strides = [1, 1]} : vector<2x96xf32> to vector<2x32xf32>
    %148 = arith.addf %146, %147 : vector<2x32xf32>
    %149 = arith.negf %148 : vector<2x32xf32>
    %150 = math.exp %149 : vector<2x32xf32>
    %cst_53 = arith.constant 1.000000e+00 : f32
    %151 = vector.broadcast %cst_53 : f32 to vector<2x32xf32>
    %152 = arith.addf %151, %150 : vector<2x32xf32>
    %153 = arith.divf %151, %152 : vector<2x32xf32>
    %154 = vector.extract_strided_slice %141 {offsets = [0, 32], sizes = [2, 32], strides = [1, 1]} : vector<2x96xf32> to vector<2x32xf32>
    %155 = vector.extract_strided_slice %145 {offsets = [0, 32], sizes = [2, 32], strides = [1, 1]} : vector<2x96xf32> to vector<2x32xf32>
    %156 = arith.addf %154, %155 : vector<2x32xf32>
    %157 = arith.negf %156 : vector<2x32xf32>
    %158 = math.exp %157 : vector<2x32xf32>
    %cst_54 = arith.constant 1.000000e+00 : f32
    %159 = vector.broadcast %cst_54 : f32 to vector<2x32xf32>
    %160 = arith.addf %159, %158 : vector<2x32xf32>
    %161 = arith.divf %159, %160 : vector<2x32xf32>
    %162 = vector.extract_strided_slice %141 {offsets = [0, 64], sizes = [2, 32], strides = [1, 1]} : vector<2x96xf32> to vector<2x32xf32>
    %163 = vector.extract_strided_slice %145 {offsets = [0, 64], sizes = [2, 32], strides = [1, 1]} : vector<2x96xf32> to vector<2x32xf32>
    %164 = arith.mulf %153, %163 : vector<2x32xf32>
    %165 = arith.addf %162, %164 : vector<2x32xf32>
    %166 = math.tanh %165 : vector<2x32xf32>
    %cst_55 = arith.constant 1.000000e+00 : f32
    %167 = vector.broadcast %cst_55 : f32 to vector<2x32xf32>
    %168 = arith.subf %167, %161 : vector<2x32xf32>
    %169 = arith.mulf %168, %166 : vector<2x32xf32>
    %170 = arith.mulf %161, %129 : vector<2x32xf32>
    %171 = arith.addf %169, %170 : vector<2x32xf32>
    %c0_56 = arith.constant 0 : index
    %172 = arith.index_cast %138 : i32 to index
    %c0_57 = arith.constant 0 : index
    %c0_58 = arith.constant 0 : index
    %173 = vector.load %arg5[%c0_56, %172, %c0_57, %c0_58] : memref<1x8x2x32xf32, #tpu.memory_space<vmem>>, vector<1x1x2x32xf32>
    %174 = vector.shape_cast %173 : vector<1x1x2x32xf32> to vector<2x32xf32>
    %175 = vector.shape_cast %171 : vector<2x32xf32> to vector<1x1x2x32xf32>
    tpu.vector_store %arg5[%c0_56, %172, %c0_57, %c0_58], %175 {strides = array<i32>} : memref<1x8x2x32xf32, #tpu.memory_space<vmem>>, vector<1x1x2x32xf32>,
    %c4_i32 = arith.constant 4 : i32
    %c2_i32_59 = arith.constant 2 : i32
    %176 = arith.muli %c2_i32_59, %arg0 : i32
    %c1_i32_60 = arith.constant 1 : i32
    %177 = arith.subi %c1_i32_60, %176 : i32
    %178 = arith.muli %c4_i32, %177 : i32
    %c7_i32_61 = arith.constant 7 : i32
    %179 = arith.muli %arg0, %c7_i32_61 : i32
    %180 = arith.addi %178, %179 : i32
    %c0_62 = arith.constant 0 : index
    %181 = arith.index_cast %180 : i32 to index
    %c0_63 = arith.constant 0 : index
    %c0_64 = arith.constant 0 : index
    %182 = vector.load %arg2[%c0_62, %181, %c0_63, %c0_64] : memref<1x8x2x96xf32, #tpu.memory_space<vmem>>, vector<1x1x2x96xf32>
    %183 = vector.shape_cast %182 : vector<1x1x2x96xf32> to vector<2x96xf32>
    %184 = arith.truncf %171 : vector<2x32xf32> to vector<2x32xbf16>
    %cst_65 = arith.constant dense<0.000000e+00> : vector<2x96xf32>
    %185 = tpu.matmul %184, %4, %cst_65 {dimension_numbers = #tpu.dot_dimension_numbers<[1], [0], [0], [1], [0, 0, 1, 1], [], []>} : vector<2x32xbf16>, vector<32x96xbf16>, vector<2x96xf32> -> vector<2x96xf32>
    %186 = vector.broadcast %6 : vector<1x96xf32> to vector<2x96xf32>
    %187 = arith.addf %185, %186 : vector<2x96xf32>
    %188 = vector.extract_strided_slice %183 {offsets = [0, 0], sizes = [2, 32], strides = [1, 1]} : vector<2x96xf32> to vector<2x32xf32>
    %189 = vector.extract_strided_slice %187 {offsets = [0, 0], sizes = [2, 32], strides = [1, 1]} : vector<2x96xf32> to vector<2x32xf32>
    %190 = arith.addf %188, %189 : vector<2x32xf32>
    %191 = arith.negf %190 : vector<2x32xf32>
    %192 = math.exp %191 : vector<2x32xf32>
    %cst_66 = arith.constant 1.000000e+00 : f32
    %193 = vector.broadcast %cst_66 : f32 to vector<2x32xf32>
    %194 = arith.addf %193, %192 : vector<2x32xf32>
    %195 = arith.divf %193, %194 : vector<2x32xf32>
    %196 = vector.extract_strided_slice %183 {offsets = [0, 32], sizes = [2, 32], strides = [1, 1]} : vector<2x96xf32> to vector<2x32xf32>
    %197 = vector.extract_strided_slice %187 {offsets = [0, 32], sizes = [2, 32], strides = [1, 1]} : vector<2x96xf32> to vector<2x32xf32>
    %198 = arith.addf %196, %197 : vector<2x32xf32>
    %199 = arith.negf %198 : vector<2x32xf32>
    %200 = math.exp %199 : vector<2x32xf32>
    %cst_67 = arith.constant 1.000000e+00 : f32
    %201 = vector.broadcast %cst_67 : f32 to vector<2x32xf32>
    %202 = arith.addf %201, %200 : vector<2x32xf32>
    %203 = arith.divf %201, %202 : vector<2x32xf32>
    %204 = vector.extract_strided_slice %183 {offsets = [0, 64], sizes = [2, 32], strides = [1, 1]} : vector<2x96xf32> to vector<2x32xf32>
    %205 = vector.extract_strided_slice %187 {offsets = [0, 64], sizes = [2, 32], strides = [1, 1]} : vector<2x96xf32> to vector<2x32xf32>
    %206 = arith.mulf %195, %205 : vector<2x32xf32>
    %207 = arith.addf %204, %206 : vector<2x32xf32>
    %208 = math.tanh %207 : vector<2x32xf32>
    %cst_68 = arith.constant 1.000000e+00 : f32
    %209 = vector.broadcast %cst_68 : f32 to vector<2x32xf32>
    %210 = arith.subf %209, %203 : vector<2x32xf32>
    %211 = arith.mulf %210, %208 : vector<2x32xf32>
    %212 = arith.mulf %203, %171 : vector<2x32xf32>
    %213 = arith.addf %211, %212 : vector<2x32xf32>
    %c0_69 = arith.constant 0 : index
    %214 = arith.index_cast %180 : i32 to index
    %c0_70 = arith.constant 0 : index
    %c0_71 = arith.constant 0 : index
    %215 = vector.load %arg5[%c0_69, %214, %c0_70, %c0_71] : memref<1x8x2x32xf32, #tpu.memory_space<vmem>>, vector<1x1x2x32xf32>
    %216 = vector.shape_cast %215 : vector<1x1x2x32xf32> to vector<2x32xf32>
    %217 = vector.shape_cast %213 : vector<2x32xf32> to vector<1x1x2x32xf32>
    tpu.vector_store %arg5[%c0_69, %214, %c0_70, %c0_71], %217 {strides = array<i32>} : memref<1x8x2x32xf32, #tpu.memory_space<vmem>>, vector<1x1x2x32xf32>,
    %c5_i32 = arith.constant 5 : i32
    %c2_i32_72 = arith.constant 2 : i32
    %218 = arith.muli %c2_i32_72, %arg0 : i32
    %c1_i32_73 = arith.constant 1 : i32
    %219 = arith.subi %c1_i32_73, %218 : i32
    %220 = arith.muli %c5_i32, %219 : i32
    %c7_i32_74 = arith.constant 7 : i32
    %221 = arith.muli %arg0, %c7_i32_74 : i32
    %222 = arith.addi %220, %221 : i32
    %c0_75 = arith.constant 0 : index
    %223 = arith.index_cast %222 : i32 to index
    %c0_76 = arith.constant 0 : index
    %c0_77 = arith.constant 0 : index
    %224 = vector.load %arg2[%c0_75, %223, %c0_76, %c0_77] : memref<1x8x2x96xf32, #tpu.memory_space<vmem>>, vector<1x1x2x96xf32>
    %225 = vector.shape_cast %224 : vector<1x1x2x96xf32> to vector<2x96xf32>
    %226 = arith.truncf %213 : vector<2x32xf32> to vector<2x32xbf16>
    %cst_78 = arith.constant dense<0.000000e+00> : vector<2x96xf32>
    %227 = tpu.matmul %226, %4, %cst_78 {dimension_numbers = #tpu.dot_dimension_numbers<[1], [0], [0], [1], [0, 0, 1, 1], [], []>} : vector<2x32xbf16>, vector<32x96xbf16>, vector<2x96xf32> -> vector<2x96xf32>
    %228 = vector.broadcast %6 : vector<1x96xf32> to vector<2x96xf32>
    %229 = arith.addf %227, %228 : vector<2x96xf32>
    %230 = vector.extract_strided_slice %225 {offsets = [0, 0], sizes = [2, 32], strides = [1, 1]} : vector<2x96xf32> to vector<2x32xf32>
    %231 = vector.extract_strided_slice %229 {offsets = [0, 0], sizes = [2, 32], strides = [1, 1]} : vector<2x96xf32> to vector<2x32xf32>
    %232 = arith.addf %230, %231 : vector<2x32xf32>
    %233 = arith.negf %232 : vector<2x32xf32>
    %234 = math.exp %233 : vector<2x32xf32>
    %cst_79 = arith.constant 1.000000e+00 : f32
    %235 = vector.broadcast %cst_79 : f32 to vector<2x32xf32>
    %236 = arith.addf %235, %234 : vector<2x32xf32>
    %237 = arith.divf %235, %236 : vector<2x32xf32>
    %238 = vector.extract_strided_slice %225 {offsets = [0, 32], sizes = [2, 32], strides = [1, 1]} : vector<2x96xf32> to vector<2x32xf32>
    %239 = vector.extract_strided_slice %229 {offsets = [0, 32], sizes = [2, 32], strides = [1, 1]} : vector<2x96xf32> to vector<2x32xf32>
    %240 = arith.addf %238, %239 : vector<2x32xf32>
    %241 = arith.negf %240 : vector<2x32xf32>
    %242 = math.exp %241 : vector<2x32xf32>
    %cst_80 = arith.constant 1.000000e+00 : f32
    %243 = vector.broadcast %cst_80 : f32 to vector<2x32xf32>
    %244 = arith.addf %243, %242 : vector<2x32xf32>
    %245 = arith.divf %243, %244 : vector<2x32xf32>
    %246 = vector.extract_strided_slice %225 {offsets = [0, 64], sizes = [2, 32], strides = [1, 1]} : vector<2x96xf32> to vector<2x32xf32>
    %247 = vector.extract_strided_slice %229 {offsets = [0, 64], sizes = [2, 32], strides = [1, 1]} : vector<2x96xf32> to vector<2x32xf32>
    %248 = arith.mulf %237, %247 : vector<2x32xf32>
    %249 = arith.addf %246, %248 : vector<2x32xf32>
    %250 = math.tanh %249 : vector<2x32xf32>
    %cst_81 = arith.constant 1.000000e+00 : f32
    %251 = vector.broadcast %cst_81 : f32 to vector<2x32xf32>
    %252 = arith.subf %251, %245 : vector<2x32xf32>
    %253 = arith.mulf %252, %250 : vector<2x32xf32>
    %254 = arith.mulf %245, %213 : vector<2x32xf32>
    %255 = arith.addf %253, %254 : vector<2x32xf32>
    %c0_82 = arith.constant 0 : index
    %256 = arith.index_cast %222 : i32 to index
    %c0_83 = arith.constant 0 : index
    %c0_84 = arith.constant 0 : index
    %257 = vector.load %arg5[%c0_82, %256, %c0_83, %c0_84] : memref<1x8x2x32xf32, #tpu.memory_space<vmem>>, vector<1x1x2x32xf32>
    %258 = vector.shape_cast %257 : vector<1x1x2x32xf32> to vector<2x32xf32>
    %259 = vector.shape_cast %255 : vector<2x32xf32> to vector<1x1x2x32xf32>
    tpu.vector_store %arg5[%c0_82, %256, %c0_83, %c0_84], %259 {strides = array<i32>} : memref<1x8x2x32xf32, #tpu.memory_space<vmem>>, vector<1x1x2x32xf32>,
    %c6_i32 = arith.constant 6 : i32
    %c2_i32_85 = arith.constant 2 : i32
    %260 = arith.muli %c2_i32_85, %arg0 : i32
    %c1_i32_86 = arith.constant 1 : i32
    %261 = arith.subi %c1_i32_86, %260 : i32
    %262 = arith.muli %c6_i32, %261 : i32
    %c7_i32_87 = arith.constant 7 : i32
    %263 = arith.muli %arg0, %c7_i32_87 : i32
    %264 = arith.addi %262, %263 : i32
    %c0_88 = arith.constant 0 : index
    %265 = arith.index_cast %264 : i32 to index
    %c0_89 = arith.constant 0 : index
    %c0_90 = arith.constant 0 : index
    %266 = vector.load %arg2[%c0_88, %265, %c0_89, %c0_90] : memref<1x8x2x96xf32, #tpu.memory_space<vmem>>, vector<1x1x2x96xf32>
    %267 = vector.shape_cast %266 : vector<1x1x2x96xf32> to vector<2x96xf32>
    %268 = arith.truncf %255 : vector<2x32xf32> to vector<2x32xbf16>
    %cst_91 = arith.constant dense<0.000000e+00> : vector<2x96xf32>
    %269 = tpu.matmul %268, %4, %cst_91 {dimension_numbers = #tpu.dot_dimension_numbers<[1], [0], [0], [1], [0, 0, 1, 1], [], []>} : vector<2x32xbf16>, vector<32x96xbf16>, vector<2x96xf32> -> vector<2x96xf32>
    %270 = vector.broadcast %6 : vector<1x96xf32> to vector<2x96xf32>
    %271 = arith.addf %269, %270 : vector<2x96xf32>
    %272 = vector.extract_strided_slice %267 {offsets = [0, 0], sizes = [2, 32], strides = [1, 1]} : vector<2x96xf32> to vector<2x32xf32>
    %273 = vector.extract_strided_slice %271 {offsets = [0, 0], sizes = [2, 32], strides = [1, 1]} : vector<2x96xf32> to vector<2x32xf32>
    %274 = arith.addf %272, %273 : vector<2x32xf32>
    %275 = arith.negf %274 : vector<2x32xf32>
    %276 = math.exp %275 : vector<2x32xf32>
    %cst_92 = arith.constant 1.000000e+00 : f32
    %277 = vector.broadcast %cst_92 : f32 to vector<2x32xf32>
    %278 = arith.addf %277, %276 : vector<2x32xf32>
    %279 = arith.divf %277, %278 : vector<2x32xf32>
    %280 = vector.extract_strided_slice %267 {offsets = [0, 32], sizes = [2, 32], strides = [1, 1]} : vector<2x96xf32> to vector<2x32xf32>
    %281 = vector.extract_strided_slice %271 {offsets = [0, 32], sizes = [2, 32], strides = [1, 1]} : vector<2x96xf32> to vector<2x32xf32>
    %282 = arith.addf %280, %281 : vector<2x32xf32>
    %283 = arith.negf %282 : vector<2x32xf32>
    %284 = math.exp %283 : vector<2x32xf32>
    %cst_93 = arith.constant 1.000000e+00 : f32
    %285 = vector.broadcast %cst_93 : f32 to vector<2x32xf32>
    %286 = arith.addf %285, %284 : vector<2x32xf32>
    %287 = arith.divf %285, %286 : vector<2x32xf32>
    %288 = vector.extract_strided_slice %267 {offsets = [0, 64], sizes = [2, 32], strides = [1, 1]} : vector<2x96xf32> to vector<2x32xf32>
    %289 = vector.extract_strided_slice %271 {offsets = [0, 64], sizes = [2, 32], strides = [1, 1]} : vector<2x96xf32> to vector<2x32xf32>
    %290 = arith.mulf %279, %289 : vector<2x32xf32>
    %291 = arith.addf %288, %290 : vector<2x32xf32>
    %292 = math.tanh %291 : vector<2x32xf32>
    %cst_94 = arith.constant 1.000000e+00 : f32
    %293 = vector.broadcast %cst_94 : f32 to vector<2x32xf32>
    %294 = arith.subf %293, %287 : vector<2x32xf32>
    %295 = arith.mulf %294, %292 : vector<2x32xf32>
    %296 = arith.mulf %287, %255 : vector<2x32xf32>
    %297 = arith.addf %295, %296 : vector<2x32xf32>
    %c0_95 = arith.constant 0 : index
    %298 = arith.index_cast %264 : i32 to index
    %c0_96 = arith.constant 0 : index
    %c0_97 = arith.constant 0 : index
    %299 = vector.load %arg5[%c0_95, %298, %c0_96, %c0_97] : memref<1x8x2x32xf32, #tpu.memory_space<vmem>>, vector<1x1x2x32xf32>
    %300 = vector.shape_cast %299 : vector<1x1x2x32xf32> to vector<2x32xf32>
    %301 = vector.shape_cast %297 : vector<2x32xf32> to vector<1x1x2x32xf32>
    tpu.vector_store %arg5[%c0_95, %298, %c0_96, %c0_97], %301 {strides = array<i32>} : memref<1x8x2x32xf32, #tpu.memory_space<vmem>>, vector<1x1x2x32xf32>,
    %c7_i32_98 = arith.constant 7 : i32
    %c2_i32_99 = arith.constant 2 : i32
    %302 = arith.muli %c2_i32_99, %arg0 : i32
    %c1_i32_100 = arith.constant 1 : i32
    %303 = arith.subi %c1_i32_100, %302 : i32
    %304 = arith.muli %c7_i32_98, %303 : i32
    %c7_i32_101 = arith.constant 7 : i32
    %305 = arith.muli %arg0, %c7_i32_101 : i32
    %306 = arith.addi %304, %305 : i32
    %c0_102 = arith.constant 0 : index
    %307 = arith.index_cast %306 : i32 to index
    %c0_103 = arith.constant 0 : index
    %c0_104 = arith.constant 0 : index
    %308 = vector.load %arg2[%c0_102, %307, %c0_103, %c0_104] : memref<1x8x2x96xf32, #tpu.memory_space<vmem>>, vector<1x1x2x96xf32>
    %309 = vector.shape_cast %308 : vector<1x1x2x96xf32> to vector<2x96xf32>
    %310 = arith.truncf %297 : vector<2x32xf32> to vector<2x32xbf16>
    %cst_105 = arith.constant dense<0.000000e+00> : vector<2x96xf32>
    %311 = tpu.matmul %310, %4, %cst_105 {dimension_numbers = #tpu.dot_dimension_numbers<[1], [0], [0], [1], [0, 0, 1, 1], [], []>} : vector<2x32xbf16>, vector<32x96xbf16>, vector<2x96xf32> -> vector<2x96xf32>
    %312 = vector.broadcast %6 : vector<1x96xf32> to vector<2x96xf32>
    %313 = arith.addf %311, %312 : vector<2x96xf32>
    %314 = vector.extract_strided_slice %309 {offsets = [0, 0], sizes = [2, 32], strides = [1, 1]} : vector<2x96xf32> to vector<2x32xf32>
    %315 = vector.extract_strided_slice %313 {offsets = [0, 0], sizes = [2, 32], strides = [1, 1]} : vector<2x96xf32> to vector<2x32xf32>
    %316 = arith.addf %314, %315 : vector<2x32xf32>
    %317 = arith.negf %316 : vector<2x32xf32>
    %318 = math.exp %317 : vector<2x32xf32>
    %cst_106 = arith.constant 1.000000e+00 : f32
    %319 = vector.broadcast %cst_106 : f32 to vector<2x32xf32>
    %320 = arith.addf %319, %318 : vector<2x32xf32>
    %321 = arith.divf %319, %320 : vector<2x32xf32>
    %322 = vector.extract_strided_slice %309 {offsets = [0, 32], sizes = [2, 32], strides = [1, 1]} : vector<2x96xf32> to vector<2x32xf32>
    %323 = vector.extract_strided_slice %313 {offsets = [0, 32], sizes = [2, 32], strides = [1, 1]} : vector<2x96xf32> to vector<2x32xf32>
    %324 = arith.addf %322, %323 : vector<2x32xf32>
    %325 = arith.negf %324 : vector<2x32xf32>
    %326 = math.exp %325 : vector<2x32xf32>
    %cst_107 = arith.constant 1.000000e+00 : f32
    %327 = vector.broadcast %cst_107 : f32 to vector<2x32xf32>
    %328 = arith.addf %327, %326 : vector<2x32xf32>
    %329 = arith.divf %327, %328 : vector<2x32xf32>
    %330 = vector.extract_strided_slice %309 {offsets = [0, 64], sizes = [2, 32], strides = [1, 1]} : vector<2x96xf32> to vector<2x32xf32>
    %331 = vector.extract_strided_slice %313 {offsets = [0, 64], sizes = [2, 32], strides = [1, 1]} : vector<2x96xf32> to vector<2x32xf32>
    %332 = arith.mulf %321, %331 : vector<2x32xf32>
    %333 = arith.addf %330, %332 : vector<2x32xf32>
    %334 = math.tanh %333 : vector<2x32xf32>
    %cst_108 = arith.constant 1.000000e+00 : f32
    %335 = vector.broadcast %cst_108 : f32 to vector<2x32xf32>
    %336 = arith.subf %335, %329 : vector<2x32xf32>
    %337 = arith.mulf %336, %334 : vector<2x32xf32>
    %338 = arith.mulf %329, %297 : vector<2x32xf32>
    %339 = arith.addf %337, %338 : vector<2x32xf32>
    %c0_109 = arith.constant 0 : index
    %340 = arith.index_cast %306 : i32 to index
    %c0_110 = arith.constant 0 : index
    %c0_111 = arith.constant 0 : index
    %341 = vector.load %arg5[%c0_109, %340, %c0_110, %c0_111] : memref<1x8x2x32xf32, #tpu.memory_space<vmem>>, vector<1x1x2x32xf32>
    %342 = vector.shape_cast %341 : vector<1x1x2x32xf32> to vector<2x32xf32>
    %343 = vector.shape_cast %339 : vector<2x32xf32> to vector<1x1x2x32xf32>
    tpu.vector_store %arg5[%c0_109, %340, %c0_110, %c0_111], %343 {strides = array<i32>} : memref<1x8x2x32xf32, #tpu.memory_space<vmem>>, vector<1x1x2x32xf32>,
    %c8_i32 = arith.constant 8 : i32
    %c0_112 = arith.constant 0 : index
    %c0_113 = arith.constant 0 : index
    %344 = vector.load %arg7[%c0_112, %c0_113] : memref<2x32xf32, #tpu.memory_space<vmem>>, vector<2x32xf32>
    tpu.vector_store %arg7[%c0_112, %c0_113], %339 {strides = array<i32>} : memref<2x32xf32, #tpu.memory_space<vmem>>, vector<2x32xf32>,
    %c1_i32_114 = arith.constant 1 : i32
    %345 = arith.cmpi eq, %arg1, %c1_i32_114 : i32
    %346 = arith.extui %345 : i1 to i32
    %c0_i32_115 = arith.constant 0 : i32
    %347 = arith.cmpi ne, %346, %c0_i32_115 : i32
    scf.if %347 {
      %c0_116 = arith.constant 0 : index
      %c0_117 = arith.constant 0 : index
      %c0_118 = arith.constant 0 : index
      %348 = vector.load %arg6[%c0_116, %c0_117, %c0_118] : memref<1x2x32xf32, #tpu.memory_space<vmem>>, vector<1x2x32xf32>
      %349 = vector.shape_cast %348 : vector<1x2x32xf32> to vector<2x32xf32>
      %350 = vector.shape_cast %339 : vector<2x32xf32> to vector<1x2x32xf32>
      tpu.vector_store %arg6[%c0_116, %c0_117, %c0_118], %350 {strides = array<i32>} : memref<1x2x32xf32, #tpu.memory_space<vmem>>, vector<1x2x32xf32>,
    } else {
    }
    return
  }
  func.func @transform_0(%arg0: i32, %arg1: i32) -> (i32, i32, i32, i32) {
    %c1_i32 = arith.constant 1 : i32
    %0 = arith.muli %arg0, %c1_i32 : i32
    %c2_i32 = arith.constant 2 : i32
    %1 = arith.muli %c2_i32, %arg0 : i32
    %c1_i32_0 = arith.constant 1 : i32
    %2 = arith.subi %c1_i32_0, %1 : i32
    %3 = arith.muli %2, %arg1 : i32
    %4 = arith.addi %0, %3 : i32
    %c0_i32 = arith.constant 0 : i32
    %c0_i32_1 = arith.constant 0 : i32
    %c0_i32_2 = arith.constant 0 : i32
    return %arg0, %4, %c0_i32, %c0_i32_1 : i32, i32, i32, i32
  }
  func.func @transform_1(%arg0: i32, %arg1: i32) -> (i32, i32, i32) {
    %c0_i32 = arith.constant 0 : i32
    %c0_i32_0 = arith.constant 0 : i32
    %c0_i32_1 = arith.constant 0 : i32
    return %arg0, %c0_i32, %c0_i32_0 : i32, i32, i32
  }
  func.func @transform_2(%arg0: i32, %arg1: i32) -> (i32, i32, i32) {
    %c0_i32 = arith.constant 0 : i32
    %c0_i32_0 = arith.constant 0 : i32
    %c0_i32_1 = arith.constant 0 : i32
    return %arg0, %c0_i32, %c0_i32_0 : i32, i32, i32
  }
  func.func @transform_3(%arg0: i32, %arg1: i32) -> (i32, i32, i32, i32) {
    %c1_i32 = arith.constant 1 : i32
    %0 = arith.muli %arg0, %c1_i32 : i32
    %c2_i32 = arith.constant 2 : i32
    %1 = arith.muli %c2_i32, %arg0 : i32
    %c1_i32_0 = arith.constant 1 : i32
    %2 = arith.subi %c1_i32_0, %1 : i32
    %3 = arith.muli %2, %arg1 : i32
    %4 = arith.addi %0, %3 : i32
    %c0_i32 = arith.constant 0 : i32
    %c0_i32_1 = arith.constant 0 : i32
    %c0_i32_2 = arith.constant 0 : i32
    return %arg0, %4, %c0_i32, %c0_i32_1 : i32, i32, i32, i32
  }
  func.func @transform_4(%arg0: i32, %arg1: i32) -> (i32, i32, i32) {
    %c0_i32 = arith.constant 0 : i32
    %c0_i32_0 = arith.constant 0 : i32
    %c0_i32_1 = arith.constant 0 : i32
    return %arg0, %c0_i32, %c0_i32_0 : i32, i32, i32
  }
}

module attributes {stable_mosaic.version = 11 : i64} {
  func.func @_head_kernel(%arg0: i32, %arg1: memref<2x2x32xf32, #tpu.memory_space<vmem>>, %arg2: memref<2x32x3xbf16, #tpu.memory_space<vmem>>, %arg3: memref<1x3xf32, #tpu.memory_space<vmem>>, %arg4: memref<2x3xf32, #tpu.memory_space<vmem>>) attributes {dimension_semantics = [#tpu.dimension_semantics<arbitrary>], iteration_bounds = array<i64: 1>, scalar_prefetch = 0 : i64, scratch_operands = 0 : i64, tpu.core_type = #tpu.core_type<tc>, window_params = [{pipeline_mode = #tpu.pipeline_mode<synchronous>, transform_indices = @transform_0, window_bounds = array<i64: 2, 2, 32>}, {pipeline_mode = #tpu.pipeline_mode<synchronous>, transform_indices = @transform_1, window_bounds = array<i64: 2, 32, 3>}, {pipeline_mode = #tpu.pipeline_mode<synchronous>, transform_indices = @transform_2, window_bounds = array<i64: 1, 3>}, {pipeline_mode = #tpu.pipeline_mode<synchronous>, transform_indices = @transform_3, window_bounds = array<i64: 2, 3>}]} {
    %c0 = arith.constant 0 : index
    %c0_0 = arith.constant 0 : index
    %c0_1 = arith.constant 0 : index
    %0 = vector.load %arg1[%c0, %c0_0, %c0_1] : memref<2x2x32xf32, #tpu.memory_space<vmem>>, vector<1x2x32xf32>
    %1 = vector.shape_cast %0 : vector<1x2x32xf32> to vector<2x32xf32>
    %2 = arith.truncf %1 : vector<2x32xf32> to vector<2x32xbf16>
    %c0_2 = arith.constant 0 : index
    %c0_3 = arith.constant 0 : index
    %c0_4 = arith.constant 0 : index
    %3 = vector.load %arg2[%c0_2, %c0_3, %c0_4] : memref<2x32x3xbf16, #tpu.memory_space<vmem>>, vector<1x32x3xbf16>
    %4 = vector.shape_cast %3 : vector<1x32x3xbf16> to vector<32x3xbf16>
    %cst = arith.constant dense<0.000000e+00> : vector<2x3xf32>
    %5 = tpu.matmul %2, %4, %cst {dimension_numbers = #tpu.dot_dimension_numbers<[1], [0], [0], [1], [0, 0, 1, 1], [], []>} : vector<2x32xbf16>, vector<32x3xbf16>, vector<2x3xf32> -> vector<2x3xf32>
    %c1 = arith.constant 1 : index
    %c0_5 = arith.constant 0 : index
    %c0_6 = arith.constant 0 : index
    %6 = vector.load %arg1[%c1, %c0_5, %c0_6] : memref<2x2x32xf32, #tpu.memory_space<vmem>>, vector<1x2x32xf32>
    %7 = vector.shape_cast %6 : vector<1x2x32xf32> to vector<2x32xf32>
    %8 = arith.truncf %7 : vector<2x32xf32> to vector<2x32xbf16>
    %c1_7 = arith.constant 1 : index
    %c0_8 = arith.constant 0 : index
    %c0_9 = arith.constant 0 : index
    %9 = vector.load %arg2[%c1_7, %c0_8, %c0_9] : memref<2x32x3xbf16, #tpu.memory_space<vmem>>, vector<1x32x3xbf16>
    %10 = vector.shape_cast %9 : vector<1x32x3xbf16> to vector<32x3xbf16>
    %cst_10 = arith.constant dense<0.000000e+00> : vector<2x3xf32>
    %11 = tpu.matmul %8, %10, %cst_10 {dimension_numbers = #tpu.dot_dimension_numbers<[1], [0], [0], [1], [0, 0, 1, 1], [], []>} : vector<2x32xbf16>, vector<32x3xbf16>, vector<2x3xf32> -> vector<2x3xf32>
    %12 = arith.addf %5, %11 : vector<2x3xf32>
    %c0_11 = arith.constant 0 : index
    %c0_12 = arith.constant 0 : index
    %13 = vector.load %arg3[%c0_11, %c0_12] : memref<1x3xf32, #tpu.memory_space<vmem>>, vector<1x3xf32>
    %14 = vector.broadcast %13 : vector<1x3xf32> to vector<2x3xf32>
    %15 = arith.addf %12, %14 : vector<2x3xf32>
    %c0_13 = arith.constant 0 : index
    %c0_14 = arith.constant 0 : index
    %16 = vector.load %arg4[%c0_13, %c0_14] : memref<2x3xf32, #tpu.memory_space<vmem>>, vector<2x3xf32>
    tpu.vector_store %arg4[%c0_13, %c0_14], %15 {strides = array<i32>} : memref<2x3xf32, #tpu.memory_space<vmem>>, vector<2x3xf32>,
    return
  }
  func.func @transform_0(%arg0: i32) -> (i32, i32, i32) {
    %c0_i32 = arith.constant 0 : i32
    %c0_i32_0 = arith.constant 0 : i32
    %c0_i32_1 = arith.constant 0 : i32
    %c0_i32_2 = arith.constant 0 : i32
    return %c0_i32, %c0_i32_0, %c0_i32_1 : i32, i32, i32
  }
  func.func @transform_1(%arg0: i32) -> (i32, i32, i32) {
    %c0_i32 = arith.constant 0 : i32
    %c0_i32_0 = arith.constant 0 : i32
    %c0_i32_1 = arith.constant 0 : i32
    %c0_i32_2 = arith.constant 0 : i32
    return %c0_i32, %c0_i32_0, %c0_i32_1 : i32, i32, i32
  }
  func.func @transform_2(%arg0: i32) -> (i32, i32) {
    %c0_i32 = arith.constant 0 : i32
    %c0_i32_0 = arith.constant 0 : i32
    %c0_i32_1 = arith.constant 0 : i32
    return %c0_i32, %c0_i32_0 : i32, i32
  }
  func.func @transform_3(%arg0: i32) -> (i32, i32) {
    %c0_i32 = arith.constant 0 : i32
    %c0_i32_0 = arith.constant 0 : i32
    %c0_i32_1 = arith.constant 0 : i32
    return %c0_i32, %c0_i32_0 : i32, i32
  }
}

module attributes {stable_mosaic.version = 11 : i64} {
  func.func @_bigru_rec_kernel(%arg0: i32, %arg1: i32, %arg2: memref<1x8x2x96xf32, #tpu.memory_space<vmem>>, %arg3: memref<1x32x96xbf16, #tpu.memory_space<vmem>>, %arg4: memref<1x1x96xf32, #tpu.memory_space<vmem>>, %arg5: memref<1x8x2x32xf32, #tpu.memory_space<vmem>>, %arg6: memref<1x2x32xf32, #tpu.memory_space<vmem>>, %arg7: memref<2x32xf32, #tpu.memory_space<vmem>>) attributes {dimension_semantics = [#tpu.dimension_semantics<parallel>, #tpu.dimension_semantics<arbitrary>], iteration_bounds = array<i64: 2, 2>, scalar_prefetch = 0 : i64, scratch_operands = 1 : i64, tpu.core_type = #tpu.core_type<tc>, window_params = [{transform_indices = @transform_0, window_bounds = array<i64: 1, 8, 2, 96>}, {transform_indices = @transform_1, window_bounds = array<i64: 1, 32, 96>}, {transform_indices = @transform_2, window_bounds = array<i64: 1, 1, 96>}, {transform_indices = @transform_3, window_bounds = array<i64: 1, 8, 2, 32>}, {transform_indices = @transform_4, window_bounds = array<i64: 1, 2, 32>}]} {
    %c0_i32 = arith.constant 0 : i32
    %0 = arith.cmpi eq, %arg1, %c0_i32 : i32
    %1 = arith.extui %0 : i1 to i32
    %c0_i32_0 = arith.constant 0 : i32
    %2 = arith.cmpi ne, %1, %c0_i32_0 : i32
    scf.if %2 {
      %cst_116 = arith.constant 0.000000e+00 : f32
      %348 = vector.broadcast %cst_116 : f32 to vector<2x32xf32>
      %c0_117 = arith.constant 0 : index
      %c0_118 = arith.constant 0 : index
      %349 = vector.load %arg7[%c0_117, %c0_118] : memref<2x32xf32, #tpu.memory_space<vmem>>, vector<2x32xf32>
      tpu.vector_store %arg7[%c0_117, %c0_118], %348 {strides = array<i32>} : memref<2x32xf32, #tpu.memory_space<vmem>>, vector<2x32xf32>,
    } else {
    }
    %c0 = arith.constant 0 : index
    %c0_1 = arith.constant 0 : index
    %c0_2 = arith.constant 0 : index
    %3 = vector.load %arg3[%c0, %c0_1, %c0_2] : memref<1x32x96xbf16, #tpu.memory_space<vmem>>, vector<1x32x96xbf16>
    %4 = vector.shape_cast %3 : vector<1x32x96xbf16> to vector<32x96xbf16>
    %c0_3 = arith.constant 0 : index
    %c0_4 = arith.constant 0 : index
    %c0_5 = arith.constant 0 : index
    %5 = vector.load %arg4[%c0_3, %c0_4, %c0_5] : memref<1x1x96xf32, #tpu.memory_space<vmem>>, vector<1x1x96xf32>
    %6 = vector.shape_cast %5 : vector<1x1x96xf32> to vector<1x96xf32>
    %c0_6 = arith.constant 0 : index
    %c0_7 = arith.constant 0 : index
    %7 = vector.load %arg7[%c0_6, %c0_7] : memref<2x32xf32, #tpu.memory_space<vmem>>, vector<2x32xf32>
    %c0_i32_8 = arith.constant 0 : i32
    %c2_i32 = arith.constant 2 : i32
    %8 = arith.muli %c2_i32, %arg0 : i32
    %c1_i32 = arith.constant 1 : i32
    %9 = arith.subi %c1_i32, %8 : i32
    %10 = arith.muli %c0_i32_8, %9 : i32
    %c7_i32 = arith.constant 7 : i32
    %11 = arith.muli %arg0, %c7_i32 : i32
    %12 = arith.addi %10, %11 : i32
    %c0_9 = arith.constant 0 : index
    %13 = arith.index_cast %12 : i32 to index
    %c0_10 = arith.constant 0 : index
    %c0_11 = arith.constant 0 : index
    %14 = vector.load %arg2[%c0_9, %13, %c0_10, %c0_11] : memref<1x8x2x96xf32, #tpu.memory_space<vmem>>, vector<1x1x2x96xf32>
    %15 = vector.shape_cast %14 : vector<1x1x2x96xf32> to vector<2x96xf32>
    %16 = arith.truncf %7 : vector<2x32xf32> to vector<2x32xbf16>
    %cst = arith.constant dense<0.000000e+00> : vector<2x96xf32>
    %17 = tpu.matmul %16, %4, %cst {dimension_numbers = #tpu.dot_dimension_numbers<[1], [0], [0], [1], [0, 0, 1, 1], [], []>} : vector<2x32xbf16>, vector<32x96xbf16>, vector<2x96xf32> -> vector<2x96xf32>
    %18 = vector.broadcast %6 : vector<1x96xf32> to vector<2x96xf32>
    %19 = arith.addf %17, %18 : vector<2x96xf32>
    %20 = vector.extract_strided_slice %15 {offsets = [0, 0], sizes = [2, 32], strides = [1, 1]} : vector<2x96xf32> to vector<2x32xf32>
    %21 = vector.extract_strided_slice %19 {offsets = [0, 0], sizes = [2, 32], strides = [1, 1]} : vector<2x96xf32> to vector<2x32xf32>
    %22 = arith.addf %20, %21 : vector<2x32xf32>
    %23 = arith.negf %22 : vector<2x32xf32>
    %24 = math.exp %23 : vector<2x32xf32>
    %cst_12 = arith.constant 1.000000e+00 : f32
    %25 = vector.broadcast %cst_12 : f32 to vector<2x32xf32>
    %26 = arith.addf %25, %24 : vector<2x32xf32>
    %27 = arith.divf %25, %26 : vector<2x32xf32>
    %28 = vector.extract_strided_slice %15 {offsets = [0, 32], sizes = [2, 32], strides = [1, 1]} : vector<2x96xf32> to vector<2x32xf32>
    %29 = vector.extract_strided_slice %19 {offsets = [0, 32], sizes = [2, 32], strides = [1, 1]} : vector<2x96xf32> to vector<2x32xf32>
    %30 = arith.addf %28, %29 : vector<2x32xf32>
    %31 = arith.negf %30 : vector<2x32xf32>
    %32 = math.exp %31 : vector<2x32xf32>
    %cst_13 = arith.constant 1.000000e+00 : f32
    %33 = vector.broadcast %cst_13 : f32 to vector<2x32xf32>
    %34 = arith.addf %33, %32 : vector<2x32xf32>
    %35 = arith.divf %33, %34 : vector<2x32xf32>
    %36 = vector.extract_strided_slice %15 {offsets = [0, 64], sizes = [2, 32], strides = [1, 1]} : vector<2x96xf32> to vector<2x32xf32>
    %37 = vector.extract_strided_slice %19 {offsets = [0, 64], sizes = [2, 32], strides = [1, 1]} : vector<2x96xf32> to vector<2x32xf32>
    %38 = arith.mulf %27, %37 : vector<2x32xf32>
    %39 = arith.addf %36, %38 : vector<2x32xf32>
    %40 = math.tanh %39 : vector<2x32xf32>
    %cst_14 = arith.constant 1.000000e+00 : f32
    %41 = vector.broadcast %cst_14 : f32 to vector<2x32xf32>
    %42 = arith.subf %41, %35 : vector<2x32xf32>
    %43 = arith.mulf %42, %40 : vector<2x32xf32>
    %44 = arith.mulf %35, %7 : vector<2x32xf32>
    %45 = arith.addf %43, %44 : vector<2x32xf32>
    %c0_15 = arith.constant 0 : index
    %46 = arith.index_cast %12 : i32 to index
    %c0_16 = arith.constant 0 : index
    %c0_17 = arith.constant 0 : index
    %47 = vector.load %arg5[%c0_15, %46, %c0_16, %c0_17] : memref<1x8x2x32xf32, #tpu.memory_space<vmem>>, vector<1x1x2x32xf32>
    %48 = vector.shape_cast %47 : vector<1x1x2x32xf32> to vector<2x32xf32>
    %49 = vector.shape_cast %45 : vector<2x32xf32> to vector<1x1x2x32xf32>
    tpu.vector_store %arg5[%c0_15, %46, %c0_16, %c0_17], %49 {strides = array<i32>} : memref<1x8x2x32xf32, #tpu.memory_space<vmem>>, vector<1x1x2x32xf32>,
    %c1_i32_18 = arith.constant 1 : i32
    %c2_i32_19 = arith.constant 2 : i32
    %50 = arith.muli %c2_i32_19, %arg0 : i32
    %c1_i32_20 = arith.constant 1 : i32
    %51 = arith.subi %c1_i32_20, %50 : i32
    %52 = arith.muli %c1_i32_18, %51 : i32
    %c7_i32_21 = arith.constant 7 : i32
    %53 = arith.muli %arg0, %c7_i32_21 : i32
    %54 = arith.addi %52, %53 : i32
    %c0_22 = arith.constant 0 : index
    %55 = arith.index_cast %54 : i32 to index
    %c0_23 = arith.constant 0 : index
    %c0_24 = arith.constant 0 : index
    %56 = vector.load %arg2[%c0_22, %55, %c0_23, %c0_24] : memref<1x8x2x96xf32, #tpu.memory_space<vmem>>, vector<1x1x2x96xf32>
    %57 = vector.shape_cast %56 : vector<1x1x2x96xf32> to vector<2x96xf32>
    %58 = arith.truncf %45 : vector<2x32xf32> to vector<2x32xbf16>
    %cst_25 = arith.constant dense<0.000000e+00> : vector<2x96xf32>
    %59 = tpu.matmul %58, %4, %cst_25 {dimension_numbers = #tpu.dot_dimension_numbers<[1], [0], [0], [1], [0, 0, 1, 1], [], []>} : vector<2x32xbf16>, vector<32x96xbf16>, vector<2x96xf32> -> vector<2x96xf32>
    %60 = vector.broadcast %6 : vector<1x96xf32> to vector<2x96xf32>
    %61 = arith.addf %59, %60 : vector<2x96xf32>
    %62 = vector.extract_strided_slice %57 {offsets = [0, 0], sizes = [2, 32], strides = [1, 1]} : vector<2x96xf32> to vector<2x32xf32>
    %63 = vector.extract_strided_slice %61 {offsets = [0, 0], sizes = [2, 32], strides = [1, 1]} : vector<2x96xf32> to vector<2x32xf32>
    %64 = arith.addf %62, %63 : vector<2x32xf32>
    %65 = arith.negf %64 : vector<2x32xf32>
    %66 = math.exp %65 : vector<2x32xf32>
    %cst_26 = arith.constant 1.000000e+00 : f32
    %67 = vector.broadcast %cst_26 : f32 to vector<2x32xf32>
    %68 = arith.addf %67, %66 : vector<2x32xf32>
    %69 = arith.divf %67, %68 : vector<2x32xf32>
    %70 = vector.extract_strided_slice %57 {offsets = [0, 32], sizes = [2, 32], strides = [1, 1]} : vector<2x96xf32> to vector<2x32xf32>
    %71 = vector.extract_strided_slice %61 {offsets = [0, 32], sizes = [2, 32], strides = [1, 1]} : vector<2x96xf32> to vector<2x32xf32>
    %72 = arith.addf %70, %71 : vector<2x32xf32>
    %73 = arith.negf %72 : vector<2x32xf32>
    %74 = math.exp %73 : vector<2x32xf32>
    %cst_27 = arith.constant 1.000000e+00 : f32
    %75 = vector.broadcast %cst_27 : f32 to vector<2x32xf32>
    %76 = arith.addf %75, %74 : vector<2x32xf32>
    %77 = arith.divf %75, %76 : vector<2x32xf32>
    %78 = vector.extract_strided_slice %57 {offsets = [0, 64], sizes = [2, 32], strides = [1, 1]} : vector<2x96xf32> to vector<2x32xf32>
    %79 = vector.extract_strided_slice %61 {offsets = [0, 64], sizes = [2, 32], strides = [1, 1]} : vector<2x96xf32> to vector<2x32xf32>
    %80 = arith.mulf %69, %79 : vector<2x32xf32>
    %81 = arith.addf %78, %80 : vector<2x32xf32>
    %82 = math.tanh %81 : vector<2x32xf32>
    %cst_28 = arith.constant 1.000000e+00 : f32
    %83 = vector.broadcast %cst_28 : f32 to vector<2x32xf32>
    %84 = arith.subf %83, %77 : vector<2x32xf32>
    %85 = arith.mulf %84, %82 : vector<2x32xf32>
    %86 = arith.mulf %77, %45 : vector<2x32xf32>
    %87 = arith.addf %85, %86 : vector<2x32xf32>
    %c0_29 = arith.constant 0 : index
    %88 = arith.index_cast %54 : i32 to index
    %c0_30 = arith.constant 0 : index
    %c0_31 = arith.constant 0 : index
    %89 = vector.load %arg5[%c0_29, %88, %c0_30, %c0_31] : memref<1x8x2x32xf32, #tpu.memory_space<vmem>>, vector<1x1x2x32xf32>
    %90 = vector.shape_cast %89 : vector<1x1x2x32xf32> to vector<2x32xf32>
    %91 = vector.shape_cast %87 : vector<2x32xf32> to vector<1x1x2x32xf32>
    tpu.vector_store %arg5[%c0_29, %88, %c0_30, %c0_31], %91 {strides = array<i32>} : memref<1x8x2x32xf32, #tpu.memory_space<vmem>>, vector<1x1x2x32xf32>,
    %c2_i32_32 = arith.constant 2 : i32
    %c2_i32_33 = arith.constant 2 : i32
    %92 = arith.muli %c2_i32_33, %arg0 : i32
    %c1_i32_34 = arith.constant 1 : i32
    %93 = arith.subi %c1_i32_34, %92 : i32
    %94 = arith.muli %c2_i32_32, %93 : i32
    %c7_i32_35 = arith.constant 7 : i32
    %95 = arith.muli %arg0, %c7_i32_35 : i32
    %96 = arith.addi %94, %95 : i32
    %c0_36 = arith.constant 0 : index
    %97 = arith.index_cast %96 : i32 to index
    %c0_37 = arith.constant 0 : index
    %c0_38 = arith.constant 0 : index
    %98 = vector.load %arg2[%c0_36, %97, %c0_37, %c0_38] : memref<1x8x2x96xf32, #tpu.memory_space<vmem>>, vector<1x1x2x96xf32>
    %99 = vector.shape_cast %98 : vector<1x1x2x96xf32> to vector<2x96xf32>
    %100 = arith.truncf %87 : vector<2x32xf32> to vector<2x32xbf16>
    %cst_39 = arith.constant dense<0.000000e+00> : vector<2x96xf32>
    %101 = tpu.matmul %100, %4, %cst_39 {dimension_numbers = #tpu.dot_dimension_numbers<[1], [0], [0], [1], [0, 0, 1, 1], [], []>} : vector<2x32xbf16>, vector<32x96xbf16>, vector<2x96xf32> -> vector<2x96xf32>
    %102 = vector.broadcast %6 : vector<1x96xf32> to vector<2x96xf32>
    %103 = arith.addf %101, %102 : vector<2x96xf32>
    %104 = vector.extract_strided_slice %99 {offsets = [0, 0], sizes = [2, 32], strides = [1, 1]} : vector<2x96xf32> to vector<2x32xf32>
    %105 = vector.extract_strided_slice %103 {offsets = [0, 0], sizes = [2, 32], strides = [1, 1]} : vector<2x96xf32> to vector<2x32xf32>
    %106 = arith.addf %104, %105 : vector<2x32xf32>
    %107 = arith.negf %106 : vector<2x32xf32>
    %108 = math.exp %107 : vector<2x32xf32>
    %cst_40 = arith.constant 1.000000e+00 : f32
    %109 = vector.broadcast %cst_40 : f32 to vector<2x32xf32>
    %110 = arith.addf %109, %108 : vector<2x32xf32>
    %111 = arith.divf %109, %110 : vector<2x32xf32>
    %112 = vector.extract_strided_slice %99 {offsets = [0, 32], sizes = [2, 32], strides = [1, 1]} : vector<2x96xf32> to vector<2x32xf32>
    %113 = vector.extract_strided_slice %103 {offsets = [0, 32], sizes = [2, 32], strides = [1, 1]} : vector<2x96xf32> to vector<2x32xf32>
    %114 = arith.addf %112, %113 : vector<2x32xf32>
    %115 = arith.negf %114 : vector<2x32xf32>
    %116 = math.exp %115 : vector<2x32xf32>
    %cst_41 = arith.constant 1.000000e+00 : f32
    %117 = vector.broadcast %cst_41 : f32 to vector<2x32xf32>
    %118 = arith.addf %117, %116 : vector<2x32xf32>
    %119 = arith.divf %117, %118 : vector<2x32xf32>
    %120 = vector.extract_strided_slice %99 {offsets = [0, 64], sizes = [2, 32], strides = [1, 1]} : vector<2x96xf32> to vector<2x32xf32>
    %121 = vector.extract_strided_slice %103 {offsets = [0, 64], sizes = [2, 32], strides = [1, 1]} : vector<2x96xf32> to vector<2x32xf32>
    %122 = arith.mulf %111, %121 : vector<2x32xf32>
    %123 = arith.addf %120, %122 : vector<2x32xf32>
    %124 = math.tanh %123 : vector<2x32xf32>
    %cst_42 = arith.constant 1.000000e+00 : f32
    %125 = vector.broadcast %cst_42 : f32 to vector<2x32xf32>
    %126 = arith.subf %125, %119 : vector<2x32xf32>
    %127 = arith.mulf %126, %124 : vector<2x32xf32>
    %128 = arith.mulf %119, %87 : vector<2x32xf32>
    %129 = arith.addf %127, %128 : vector<2x32xf32>
    %c0_43 = arith.constant 0 : index
    %130 = arith.index_cast %96 : i32 to index
    %c0_44 = arith.constant 0 : index
    %c0_45 = arith.constant 0 : index
    %131 = vector.load %arg5[%c0_43, %130, %c0_44, %c0_45] : memref<1x8x2x32xf32, #tpu.memory_space<vmem>>, vector<1x1x2x32xf32>
    %132 = vector.shape_cast %131 : vector<1x1x2x32xf32> to vector<2x32xf32>
    %133 = vector.shape_cast %129 : vector<2x32xf32> to vector<1x1x2x32xf32>
    tpu.vector_store %arg5[%c0_43, %130, %c0_44, %c0_45], %133 {strides = array<i32>} : memref<1x8x2x32xf32, #tpu.memory_space<vmem>>, vector<1x1x2x32xf32>,
    %c3_i32 = arith.constant 3 : i32
    %c2_i32_46 = arith.constant 2 : i32
    %134 = arith.muli %c2_i32_46, %arg0 : i32
    %c1_i32_47 = arith.constant 1 : i32
    %135 = arith.subi %c1_i32_47, %134 : i32
    %136 = arith.muli %c3_i32, %135 : i32
    %c7_i32_48 = arith.constant 7 : i32
    %137 = arith.muli %arg0, %c7_i32_48 : i32
    %138 = arith.addi %136, %137 : i32
    %c0_49 = arith.constant 0 : index
    %139 = arith.index_cast %138 : i32 to index
    %c0_50 = arith.constant 0 : index
    %c0_51 = arith.constant 0 : index
    %140 = vector.load %arg2[%c0_49, %139, %c0_50, %c0_51] : memref<1x8x2x96xf32, #tpu.memory_space<vmem>>, vector<1x1x2x96xf32>
    %141 = vector.shape_cast %140 : vector<1x1x2x96xf32> to vector<2x96xf32>
    %142 = arith.truncf %129 : vector<2x32xf32> to vector<2x32xbf16>
    %cst_52 = arith.constant dense<0.000000e+00> : vector<2x96xf32>
    %143 = tpu.matmul %142, %4, %cst_52 {dimension_numbers = #tpu.dot_dimension_numbers<[1], [0], [0], [1], [0, 0, 1, 1], [], []>} : vector<2x32xbf16>, vector<32x96xbf16>, vector<2x96xf32> -> vector<2x96xf32>
    %144 = vector.broadcast %6 : vector<1x96xf32> to vector<2x96xf32>
    %145 = arith.addf %143, %144 : vector<2x96xf32>
    %146 = vector.extract_strided_slice %141 {offsets = [0, 0], sizes = [2, 32], strides = [1, 1]} : vector<2x96xf32> to vector<2x32xf32>
    %147 = vector.extract_strided_slice %145 {offsets = [0, 0], sizes = [2, 32], strides = [1, 1]} : vector<2x96xf32> to vector<2x32xf32>
    %148 = arith.addf %146, %147 : vector<2x32xf32>
    %149 = arith.negf %148 : vector<2x32xf32>
    %150 = math.exp %149 : vector<2x32xf32>
    %cst_53 = arith.constant 1.000000e+00 : f32
    %151 = vector.broadcast %cst_53 : f32 to vector<2x32xf32>
    %152 = arith.addf %151, %150 : vector<2x32xf32>
    %153 = arith.divf %151, %152 : vector<2x32xf32>
    %154 = vector.extract_strided_slice %141 {offsets = [0, 32], sizes = [2, 32], strides = [1, 1]} : vector<2x96xf32> to vector<2x32xf32>
    %155 = vector.extract_strided_slice %145 {offsets = [0, 32], sizes = [2, 32], strides = [1, 1]} : vector<2x96xf32> to vector<2x32xf32>
    %156 = arith.addf %154, %155 : vector<2x32xf32>
    %157 = arith.negf %156 : vector<2x32xf32>
    %158 = math.exp %157 : vector<2x32xf32>
    %cst_54 = arith.constant 1.000000e+00 : f32
    %159 = vector.broadcast %cst_54 : f32 to vector<2x32xf32>
    %160 = arith.addf %159, %158 : vector<2x32xf32>
    %161 = arith.divf %159, %160 : vector<2x32xf32>
    %162 = vector.extract_strided_slice %141 {offsets = [0, 64], sizes = [2, 32], strides = [1, 1]} : vector<2x96xf32> to vector<2x32xf32>
    %163 = vector.extract_strided_slice %145 {offsets = [0, 64], sizes = [2, 32], strides = [1, 1]} : vector<2x96xf32> to vector<2x32xf32>
    %164 = arith.mulf %153, %163 : vector<2x32xf32>
    %165 = arith.addf %162, %164 : vector<2x32xf32>
    %166 = math.tanh %165 : vector<2x32xf32>
    %cst_55 = arith.constant 1.000000e+00 : f32
    %167 = vector.broadcast %cst_55 : f32 to vector<2x32xf32>
    %168 = arith.subf %167, %161 : vector<2x32xf32>
    %169 = arith.mulf %168, %166 : vector<2x32xf32>
    %170 = arith.mulf %161, %129 : vector<2x32xf32>
    %171 = arith.addf %169, %170 : vector<2x32xf32>
    %c0_56 = arith.constant 0 : index
    %172 = arith.index_cast %138 : i32 to index
    %c0_57 = arith.constant 0 : index
    %c0_58 = arith.constant 0 : index
    %173 = vector.load %arg5[%c0_56, %172, %c0_57, %c0_58] : memref<1x8x2x32xf32, #tpu.memory_space<vmem>>, vector<1x1x2x32xf32>
    %174 = vector.shape_cast %173 : vector<1x1x2x32xf32> to vector<2x32xf32>
    %175 = vector.shape_cast %171 : vector<2x32xf32> to vector<1x1x2x32xf32>
    tpu.vector_store %arg5[%c0_56, %172, %c0_57, %c0_58], %175 {strides = array<i32>} : memref<1x8x2x32xf32, #tpu.memory_space<vmem>>, vector<1x1x2x32xf32>,
    %c4_i32 = arith.constant 4 : i32
    %c2_i32_59 = arith.constant 2 : i32
    %176 = arith.muli %c2_i32_59, %arg0 : i32
    %c1_i32_60 = arith.constant 1 : i32
    %177 = arith.subi %c1_i32_60, %176 : i32
    %178 = arith.muli %c4_i32, %177 : i32
    %c7_i32_61 = arith.constant 7 : i32
    %179 = arith.muli %arg0, %c7_i32_61 : i32
    %180 = arith.addi %178, %179 : i32
    %c0_62 = arith.constant 0 : index
    %181 = arith.index_cast %180 : i32 to index
    %c0_63 = arith.constant 0 : index
    %c0_64 = arith.constant 0 : index
    %182 = vector.load %arg2[%c0_62, %181, %c0_63, %c0_64] : memref<1x8x2x96xf32, #tpu.memory_space<vmem>>, vector<1x1x2x96xf32>
    %183 = vector.shape_cast %182 : vector<1x1x2x96xf32> to vector<2x96xf32>
    %184 = arith.truncf %171 : vector<2x32xf32> to vector<2x32xbf16>
    %cst_65 = arith.constant dense<0.000000e+00> : vector<2x96xf32>
    %185 = tpu.matmul %184, %4, %cst_65 {dimension_numbers = #tpu.dot_dimension_numbers<[1], [0], [0], [1], [0, 0, 1, 1], [], []>} : vector<2x32xbf16>, vector<32x96xbf16>, vector<2x96xf32> -> vector<2x96xf32>
    %186 = vector.broadcast %6 : vector<1x96xf32> to vector<2x96xf32>
    %187 = arith.addf %185, %186 : vector<2x96xf32>
    %188 = vector.extract_strided_slice %183 {offsets = [0, 0], sizes = [2, 32], strides = [1, 1]} : vector<2x96xf32> to vector<2x32xf32>
    %189 = vector.extract_strided_slice %187 {offsets = [0, 0], sizes = [2, 32], strides = [1, 1]} : vector<2x96xf32> to vector<2x32xf32>
    %190 = arith.addf %188, %189 : vector<2x32xf32>
    %191 = arith.negf %190 : vector<2x32xf32>
    %192 = math.exp %191 : vector<2x32xf32>
    %cst_66 = arith.constant 1.000000e+00 : f32
    %193 = vector.broadcast %cst_66 : f32 to vector<2x32xf32>
    %194 = arith.addf %193, %192 : vector<2x32xf32>
    %195 = arith.divf %193, %194 : vector<2x32xf32>
    %196 = vector.extract_strided_slice %183 {offsets = [0, 32], sizes = [2, 32], strides = [1, 1]} : vector<2x96xf32> to vector<2x32xf32>
    %197 = vector.extract_strided_slice %187 {offsets = [0, 32], sizes = [2, 32], strides = [1, 1]} : vector<2x96xf32> to vector<2x32xf32>
    %198 = arith.addf %196, %197 : vector<2x32xf32>
    %199 = arith.negf %198 : vector<2x32xf32>
    %200 = math.exp %199 : vector<2x32xf32>
    %cst_67 = arith.constant 1.000000e+00 : f32
    %201 = vector.broadcast %cst_67 : f32 to vector<2x32xf32>
    %202 = arith.addf %201, %200 : vector<2x32xf32>
    %203 = arith.divf %201, %202 : vector<2x32xf32>
    %204 = vector.extract_strided_slice %183 {offsets = [0, 64], sizes = [2, 32], strides = [1, 1]} : vector<2x96xf32> to vector<2x32xf32>
    %205 = vector.extract_strided_slice %187 {offsets = [0, 64], sizes = [2, 32], strides = [1, 1]} : vector<2x96xf32> to vector<2x32xf32>
    %206 = arith.mulf %195, %205 : vector<2x32xf32>
    %207 = arith.addf %204, %206 : vector<2x32xf32>
    %208 = math.tanh %207 : vector<2x32xf32>
    %cst_68 = arith.constant 1.000000e+00 : f32
    %209 = vector.broadcast %cst_68 : f32 to vector<2x32xf32>
    %210 = arith.subf %209, %203 : vector<2x32xf32>
    %211 = arith.mulf %210, %208 : vector<2x32xf32>
    %212 = arith.mulf %203, %171 : vector<2x32xf32>
    %213 = arith.addf %211, %212 : vector<2x32xf32>
    %c0_69 = arith.constant 0 : index
    %214 = arith.index_cast %180 : i32 to index
    %c0_70 = arith.constant 0 : index
    %c0_71 = arith.constant 0 : index
    %215 = vector.load %arg5[%c0_69, %214, %c0_70, %c0_71] : memref<1x8x2x32xf32, #tpu.memory_space<vmem>>, vector<1x1x2x32xf32>
    %216 = vector.shape_cast %215 : vector<1x1x2x32xf32> to vector<2x32xf32>
    %217 = vector.shape_cast %213 : vector<2x32xf32> to vector<1x1x2x32xf32>
    tpu.vector_store %arg5[%c0_69, %214, %c0_70, %c0_71], %217 {strides = array<i32>} : memref<1x8x2x32xf32, #tpu.memory_space<vmem>>, vector<1x1x2x32xf32>,
    %c5_i32 = arith.constant 5 : i32
    %c2_i32_72 = arith.constant 2 : i32
    %218 = arith.muli %c2_i32_72, %arg0 : i32
    %c1_i32_73 = arith.constant 1 : i32
    %219 = arith.subi %c1_i32_73, %218 : i32
    %220 = arith.muli %c5_i32, %219 : i32
    %c7_i32_74 = arith.constant 7 : i32
    %221 = arith.muli %arg0, %c7_i32_74 : i32
    %222 = arith.addi %220, %221 : i32
    %c0_75 = arith.constant 0 : index
    %223 = arith.index_cast %222 : i32 to index
    %c0_76 = arith.constant 0 : index
    %c0_77 = arith.constant 0 : index
    %224 = vector.load %arg2[%c0_75, %223, %c0_76, %c0_77] : memref<1x8x2x96xf32, #tpu.memory_space<vmem>>, vector<1x1x2x96xf32>
    %225 = vector.shape_cast %224 : vector<1x1x2x96xf32> to vector<2x96xf32>
    %226 = arith.truncf %213 : vector<2x32xf32> to vector<2x32xbf16>
    %cst_78 = arith.constant dense<0.000000e+00> : vector<2x96xf32>
    %227 = tpu.matmul %226, %4, %cst_78 {dimension_numbers = #tpu.dot_dimension_numbers<[1], [0], [0], [1], [0, 0, 1, 1], [], []>} : vector<2x32xbf16>, vector<32x96xbf16>, vector<2x96xf32> -> vector<2x96xf32>
    %228 = vector.broadcast %6 : vector<1x96xf32> to vector<2x96xf32>
    %229 = arith.addf %227, %228 : vector<2x96xf32>
    %230 = vector.extract_strided_slice %225 {offsets = [0, 0], sizes = [2, 32], strides = [1, 1]} : vector<2x96xf32> to vector<2x32xf32>
    %231 = vector.extract_strided_slice %229 {offsets = [0, 0], sizes = [2, 32], strides = [1, 1]} : vector<2x96xf32> to vector<2x32xf32>
    %232 = arith.addf %230, %231 : vector<2x32xf32>
    %233 = arith.negf %232 : vector<2x32xf32>
    %234 = math.exp %233 : vector<2x32xf32>
    %cst_79 = arith.constant 1.000000e+00 : f32
    %235 = vector.broadcast %cst_79 : f32 to vector<2x32xf32>
    %236 = arith.addf %235, %234 : vector<2x32xf32>
    %237 = arith.divf %235, %236 : vector<2x32xf32>
    %238 = vector.extract_strided_slice %225 {offsets = [0, 32], sizes = [2, 32], strides = [1, 1]} : vector<2x96xf32> to vector<2x32xf32>
    %239 = vector.extract_strided_slice %229 {offsets = [0, 32], sizes = [2, 32], strides = [1, 1]} : vector<2x96xf32> to vector<2x32xf32>
    %240 = arith.addf %238, %239 : vector<2x32xf32>
    %241 = arith.negf %240 : vector<2x32xf32>
    %242 = math.exp %241 : vector<2x32xf32>
    %cst_80 = arith.constant 1.000000e+00 : f32
    %243 = vector.broadcast %cst_80 : f32 to vector<2x32xf32>
    %244 = arith.addf %243, %242 : vector<2x32xf32>
    %245 = arith.divf %243, %244 : vector<2x32xf32>
    %246 = vector.extract_strided_slice %225 {offsets = [0, 64], sizes = [2, 32], strides = [1, 1]} : vector<2x96xf32> to vector<2x32xf32>
    %247 = vector.extract_strided_slice %229 {offsets = [0, 64], sizes = [2, 32], strides = [1, 1]} : vector<2x96xf32> to vector<2x32xf32>
    %248 = arith.mulf %237, %247 : vector<2x32xf32>
    %249 = arith.addf %246, %248 : vector<2x32xf32>
    %250 = math.tanh %249 : vector<2x32xf32>
    %cst_81 = arith.constant 1.000000e+00 : f32
    %251 = vector.broadcast %cst_81 : f32 to vector<2x32xf32>
    %252 = arith.subf %251, %245 : vector<2x32xf32>
    %253 = arith.mulf %252, %250 : vector<2x32xf32>
    %254 = arith.mulf %245, %213 : vector<2x32xf32>
    %255 = arith.addf %253, %254 : vector<2x32xf32>
    %c0_82 = arith.constant 0 : index
    %256 = arith.index_cast %222 : i32 to index
    %c0_83 = arith.constant 0 : index
    %c0_84 = arith.constant 0 : index
    %257 = vector.load %arg5[%c0_82, %256, %c0_83, %c0_84] : memref<1x8x2x32xf32, #tpu.memory_space<vmem>>, vector<1x1x2x32xf32>
    %258 = vector.shape_cast %257 : vector<1x1x2x32xf32> to vector<2x32xf32>
    %259 = vector.shape_cast %255 : vector<2x32xf32> to vector<1x1x2x32xf32>
    tpu.vector_store %arg5[%c0_82, %256, %c0_83, %c0_84], %259 {strides = array<i32>} : memref<1x8x2x32xf32, #tpu.memory_space<vmem>>, vector<1x1x2x32xf32>,
    %c6_i32 = arith.constant 6 : i32
    %c2_i32_85 = arith.constant 2 : i32
    %260 = arith.muli %c2_i32_85, %arg0 : i32
    %c1_i32_86 = arith.constant 1 : i32
    %261 = arith.subi %c1_i32_86, %260 : i32
    %262 = arith.muli %c6_i32, %261 : i32
    %c7_i32_87 = arith.constant 7 : i32
    %263 = arith.muli %arg0, %c7_i32_87 : i32
    %264 = arith.addi %262, %263 : i32
    %c0_88 = arith.constant 0 : index
    %265 = arith.index_cast %264 : i32 to index
    %c0_89 = arith.constant 0 : index
    %c0_90 = arith.constant 0 : index
    %266 = vector.load %arg2[%c0_88, %265, %c0_89, %c0_90] : memref<1x8x2x96xf32, #tpu.memory_space<vmem>>, vector<1x1x2x96xf32>
    %267 = vector.shape_cast %266 : vector<1x1x2x96xf32> to vector<2x96xf32>
    %268 = arith.truncf %255 : vector<2x32xf32> to vector<2x32xbf16>
    %cst_91 = arith.constant dense<0.000000e+00> : vector<2x96xf32>
    %269 = tpu.matmul %268, %4, %cst_91 {dimension_numbers = #tpu.dot_dimension_numbers<[1], [0], [0], [1], [0, 0, 1, 1], [], []>} : vector<2x32xbf16>, vector<32x96xbf16>, vector<2x96xf32> -> vector<2x96xf32>
    %270 = vector.broadcast %6 : vector<1x96xf32> to vector<2x96xf32>
    %271 = arith.addf %269, %270 : vector<2x96xf32>
    %272 = vector.extract_strided_slice %267 {offsets = [0, 0], sizes = [2, 32], strides = [1, 1]} : vector<2x96xf32> to vector<2x32xf32>
    %273 = vector.extract_strided_slice %271 {offsets = [0, 0], sizes = [2, 32], strides = [1, 1]} : vector<2x96xf32> to vector<2x32xf32>
    %274 = arith.addf %272, %273 : vector<2x32xf32>
    %275 = arith.negf %274 : vector<2x32xf32>
    %276 = math.exp %275 : vector<2x32xf32>
    %cst_92 = arith.constant 1.000000e+00 : f32
    %277 = vector.broadcast %cst_92 : f32 to vector<2x32xf32>
    %278 = arith.addf %277, %276 : vector<2x32xf32>
    %279 = arith.divf %277, %278 : vector<2x32xf32>
    %280 = vector.extract_strided_slice %267 {offsets = [0, 32], sizes = [2, 32], strides = [1, 1]} : vector<2x96xf32> to vector<2x32xf32>
    %281 = vector.extract_strided_slice %271 {offsets = [0, 32], sizes = [2, 32], strides = [1, 1]} : vector<2x96xf32> to vector<2x32xf32>
    %282 = arith.addf %280, %281 : vector<2x32xf32>
    %283 = arith.negf %282 : vector<2x32xf32>
    %284 = math.exp %283 : vector<2x32xf32>
    %cst_93 = arith.constant 1.000000e+00 : f32
    %285 = vector.broadcast %cst_93 : f32 to vector<2x32xf32>
    %286 = arith.addf %285, %284 : vector<2x32xf32>
    %287 = arith.divf %285, %286 : vector<2x32xf32>
    %288 = vector.extract_strided_slice %267 {offsets = [0, 64], sizes = [2, 32], strides = [1, 1]} : vector<2x96xf32> to vector<2x32xf32>
    %289 = vector.extract_strided_slice %271 {offsets = [0, 64], sizes = [2, 32], strides = [1, 1]} : vector<2x96xf32> to vector<2x32xf32>
    %290 = arith.mulf %279, %289 : vector<2x32xf32>
    %291 = arith.addf %288, %290 : vector<2x32xf32>
    %292 = math.tanh %291 : vector<2x32xf32>
    %cst_94 = arith.constant 1.000000e+00 : f32
    %293 = vector.broadcast %cst_94 : f32 to vector<2x32xf32>
    %294 = arith.subf %293, %287 : vector<2x32xf32>
    %295 = arith.mulf %294, %292 : vector<2x32xf32>
    %296 = arith.mulf %287, %255 : vector<2x32xf32>
    %297 = arith.addf %295, %296 : vector<2x32xf32>
    %c0_95 = arith.constant 0 : index
    %298 = arith.index_cast %264 : i32 to index
    %c0_96 = arith.constant 0 : index
    %c0_97 = arith.constant 0 : index
    %299 = vector.load %arg5[%c0_95, %298, %c0_96, %c0_97] : memref<1x8x2x32xf32, #tpu.memory_space<vmem>>, vector<1x1x2x32xf32>
    %300 = vector.shape_cast %299 : vector<1x1x2x32xf32> to vector<2x32xf32>
    %301 = vector.shape_cast %297 : vector<2x32xf32> to vector<1x1x2x32xf32>
    tpu.vector_store %arg5[%c0_95, %298, %c0_96, %c0_97], %301 {strides = array<i32>} : memref<1x8x2x32xf32, #tpu.memory_space<vmem>>, vector<1x1x2x32xf32>,
    %c7_i32_98 = arith.constant 7 : i32
    %c2_i32_99 = arith.constant 2 : i32
    %302 = arith.muli %c2_i32_99, %arg0 : i32
    %c1_i32_100 = arith.constant 1 : i32
    %303 = arith.subi %c1_i32_100, %302 : i32
    %304 = arith.muli %c7_i32_98, %303 : i32
    %c7_i32_101 = arith.constant 7 : i32
    %305 = arith.muli %arg0, %c7_i32_101 : i32
    %306 = arith.addi %304, %305 : i32
    %c0_102 = arith.constant 0 : index
    %307 = arith.index_cast %306 : i32 to index
    %c0_103 = arith.constant 0 : index
    %c0_104 = arith.constant 0 : index
    %308 = vector.load %arg2[%c0_102, %307, %c0_103, %c0_104] : memref<1x8x2x96xf32, #tpu.memory_space<vmem>>, vector<1x1x2x96xf32>
    %309 = vector.shape_cast %308 : vector<1x1x2x96xf32> to vector<2x96xf32>
    %310 = arith.truncf %297 : vector<2x32xf32> to vector<2x32xbf16>
    %cst_105 = arith.constant dense<0.000000e+00> : vector<2x96xf32>
    %311 = tpu.matmul %310, %4, %cst_105 {dimension_numbers = #tpu.dot_dimension_numbers<[1], [0], [0], [1], [0, 0, 1, 1], [], []>} : vector<2x32xbf16>, vector<32x96xbf16>, vector<2x96xf32> -> vector<2x96xf32>
    %312 = vector.broadcast %6 : vector<1x96xf32> to vector<2x96xf32>
    %313 = arith.addf %311, %312 : vector<2x96xf32>
    %314 = vector.extract_strided_slice %309 {offsets = [0, 0], sizes = [2, 32], strides = [1, 1]} : vector<2x96xf32> to vector<2x32xf32>
    %315 = vector.extract_strided_slice %313 {offsets = [0, 0], sizes = [2, 32], strides = [1, 1]} : vector<2x96xf32> to vector<2x32xf32>
    %316 = arith.addf %314, %315 : vector<2x32xf32>
    %317 = arith.negf %316 : vector<2x32xf32>
    %318 = math.exp %317 : vector<2x32xf32>
    %cst_106 = arith.constant 1.000000e+00 : f32
    %319 = vector.broadcast %cst_106 : f32 to vector<2x32xf32>
    %320 = arith.addf %319, %318 : vector<2x32xf32>
    %321 = arith.divf %319, %320 : vector<2x32xf32>
    %322 = vector.extract_strided_slice %309 {offsets = [0, 32], sizes = [2, 32], strides = [1, 1]} : vector<2x96xf32> to vector<2x32xf32>
    %323 = vector.extract_strided_slice %313 {offsets = [0, 32], sizes = [2, 32], strides = [1, 1]} : vector<2x96xf32> to vector<2x32xf32>
    %324 = arith.addf %322, %323 : vector<2x32xf32>
    %325 = arith.negf %324 : vector<2x32xf32>
    %326 = math.exp %325 : vector<2x32xf32>
    %cst_107 = arith.constant 1.000000e+00 : f32
    %327 = vector.broadcast %cst_107 : f32 to vector<2x32xf32>
    %328 = arith.addf %327, %326 : vector<2x32xf32>
    %329 = arith.divf %327, %328 : vector<2x32xf32>
    %330 = vector.extract_strided_slice %309 {offsets = [0, 64], sizes = [2, 32], strides = [1, 1]} : vector<2x96xf32> to vector<2x32xf32>
    %331 = vector.extract_strided_slice %313 {offsets = [0, 64], sizes = [2, 32], strides = [1, 1]} : vector<2x96xf32> to vector<2x32xf32>
    %332 = arith.mulf %321, %331 : vector<2x32xf32>
    %333 = arith.addf %330, %332 : vector<2x32xf32>
    %334 = math.tanh %333 : vector<2x32xf32>
    %cst_108 = arith.constant 1.000000e+00 : f32
    %335 = vector.broadcast %cst_108 : f32 to vector<2x32xf32>
    %336 = arith.subf %335, %329 : vector<2x32xf32>
    %337 = arith.mulf %336, %334 : vector<2x32xf32>
    %338 = arith.mulf %329, %297 : vector<2x32xf32>
    %339 = arith.addf %337, %338 : vector<2x32xf32>
    %c0_109 = arith.constant 0 : index
    %340 = arith.index_cast %306 : i32 to index
    %c0_110 = arith.constant 0 : index
    %c0_111 = arith.constant 0 : index
    %341 = vector.load %arg5[%c0_109, %340, %c0_110, %c0_111] : memref<1x8x2x32xf32, #tpu.memory_space<vmem>>, vector<1x1x2x32xf32>
    %342 = vector.shape_cast %341 : vector<1x1x2x32xf32> to vector<2x32xf32>
    %343 = vector.shape_cast %339 : vector<2x32xf32> to vector<1x1x2x32xf32>
    tpu.vector_store %arg5[%c0_109, %340, %c0_110, %c0_111], %343 {strides = array<i32>} : memref<1x8x2x32xf32, #tpu.memory_space<vmem>>, vector<1x1x2x32xf32>,
    %c8_i32 = arith.constant 8 : i32
    %c0_112 = arith.constant 0 : index
    %c0_113 = arith.constant 0 : index
    %344 = vector.load %arg7[%c0_112, %c0_113] : memref<2x32xf32, #tpu.memory_space<vmem>>, vector<2x32xf32>
    tpu.vector_store %arg7[%c0_112, %c0_113], %339 {strides = array<i32>} : memref<2x32xf32, #tpu.memory_space<vmem>>, vector<2x32xf32>,
    %c1_i32_114 = arith.constant 1 : i32
    %345 = arith.cmpi eq, %arg1, %c1_i32_114 : i32
    %346 = arith.extui %345 : i1 to i32
    %c0_i32_115 = arith.constant 0 : i32
    %347 = arith.cmpi ne, %346, %c0_i32_115 : i32
    scf.if %347 {
      %c0_116 = arith.constant 0 : index
      %c0_117 = arith.constant 0 : index
      %c0_118 = arith.constant 0 : index
      %348 = vector.load %arg6[%c0_116, %c0_117, %c0_118] : memref<1x2x32xf32, #tpu.memory_space<vmem>>, vector<1x2x32xf32>
      %349 = vector.shape_cast %348 : vector<1x2x32xf32> to vector<2x32xf32>
      %350 = vector.shape_cast %339 : vector<2x32xf32> to vector<1x2x32xf32>
      tpu.vector_store %arg6[%c0_116, %c0_117, %c0_118], %350 {strides = array<i32>} : memref<1x2x32xf32, #tpu.memory_space<vmem>>, vector<1x2x32xf32>,
    } else {
    }
    return
  }
  func.func @transform_0(%arg0: i32, %arg1: i32) -> (i32, i32, i32, i32) {
    %c1_i32 = arith.constant 1 : i32
    %0 = arith.muli %arg0, %c1_i32 : i32
    %c2_i32 = arith.constant 2 : i32
    %1 = arith.muli %c2_i32, %arg0 : i32
    %c1_i32_0 = arith.constant 1 : i32
    %2 = arith.subi %c1_i32_0, %1 : i32
    %3 = arith.muli %2, %arg1 : i32
    %4 = arith.addi %0, %3 : i32
    %c0_i32 = arith.constant 0 : i32
    %c0_i32_1 = arith.constant 0 : i32
    %c0_i32_2 = arith.constant 0 : i32
    return %arg0, %4, %c0_i32, %c0_i32_1 : i32, i32, i32, i32
  }
  func.func @transform_1(%arg0: i32, %arg1: i32) -> (i32, i32, i32) {
    %c0_i32 = arith.constant 0 : i32
    %c0_i32_0 = arith.constant 0 : i32
    %c0_i32_1 = arith.constant 0 : i32
    return %arg0, %c0_i32, %c0_i32_0 : i32, i32, i32
  }
  func.func @transform_2(%arg0: i32, %arg1: i32) -> (i32, i32, i32) {
    %c0_i32 = arith.constant 0 : i32
    %c0_i32_0 = arith.constant 0 : i32
    %c0_i32_1 = arith.constant 0 : i32
    return %arg0, %c0_i32, %c0_i32_0 : i32, i32, i32
  }
  func.func @transform_3(%arg0: i32, %arg1: i32) -> (i32, i32, i32, i32) {
    %c1_i32 = arith.constant 1 : i32
    %0 = arith.muli %arg0, %c1_i32 : i32
    %c2_i32 = arith.constant 2 : i32
    %1 = arith.muli %c2_i32, %arg0 : i32
    %c1_i32_0 = arith.constant 1 : i32
    %2 = arith.subi %c1_i32_0, %1 : i32
    %3 = arith.muli %2, %arg1 : i32
    %4 = arith.addi %0, %3 : i32
    %c0_i32 = arith.constant 0 : i32
    %c0_i32_1 = arith.constant 0 : i32
    %c0_i32_2 = arith.constant 0 : i32
    return %arg0, %4, %c0_i32, %c0_i32_1 : i32, i32, i32, i32
  }
  func.func @transform_4(%arg0: i32, %arg1: i32) -> (i32, i32, i32) {
    %c0_i32 = arith.constant 0 : i32
    %c0_i32_0 = arith.constant 0 : i32
    %c0_i32_1 = arith.constant 0 : i32
    return %arg0, %c0_i32, %c0_i32_0 : i32, i32, i32
  }
}

</mosaic_0001>

<bundles_post_ra>
// kernel: bert_gru_sentiment_forward.15
= control target key start
LH: loop header
LB: loop body
LE: loop exit
PB: predicated region body
PF: predicated region fallthrough
CT: control target
= control target key end

     0   :  { %s438_s12 = smov 0   ;;  %s485_s0 = inlined_call_operand.vmem [shape: f32[32,64], index: 0, kind: input, shape index: {}]   ;;  %s486_s1 = inlined_call_operand.vmem [shape: bf16[64,192], index: 1, kind: input, shape index: {}]   ;;  %s487_s2 = inlined_call_operand.vmem [shape: f32[1,192], index: 2, kind: input, shape index: {}]   ;;  %s488_s3 = inlined_call_operand.vmem [shape: bf16[32,192], index: 3, kind: output, shape index: {}]  }
   0x1 LB: > { %s362_s13 = sadd.s32 4294967295, %s415_s12   ;;  %p366_p0 = scmp.ge.s32.totalorder %s415_s12, 1  ;;  %s415_s12 = sphi %s438_s12, %s13_s12  }
   0x2   : > { %p138_p1 = scmp.lt.s32.totalorder %s415_s12, 3 }
   0x4   : > { %p139_p2 = pnand %p366_p0, %p138_p1 }
   0x5   : > { %s367_s16 = sshll.u32 (!%p139_p2), %s362_s13, 1 }
   0x6   : > { %142 = sbr.rel (%p139_p2) target bundleno = 232 (0xe8), region = 32  ;;  %p164_p3 = scmp.lt.s32.totalorder (!%p139_p2), %s367_s16, 3 }
   0xb   : > { %v397_v0 = vld [vmem:[%s486_s1 + $0x34] ss:$8 sps:$4 sm:$0xff]   ;;  %v399_v1 = vld [vmem:[%s486_s1 + $0x30] ss:$8 sps:$4 sm:$0xff]   ;;  %v417_v2 = vmov 0   ;;  %s490_s16 = smov (!%p164_p3, %s367_s16), 3  ;;  %v190_v12 = vlaneseq }
   0xc   : > { %276 = vmatprep.mubr.bf16.mxu0 %v417_v2  ;;  %252 = vmatprep.subr.bf16.mxu0 %v397_v0  ;;  %v400_v3 = vld [vmem:[%s486_s1 + $0x24] ss:$8 sps:$4 sm:$0xff]   ;;  %v402_v4 = vld [vmem:[%s486_s1 + $0x20] ss:$8 sps:$4 sm:$0xff]   ;;  %v403_v5 = vld [vmem:[%s486_s1 + $0x14] ss:$8 sps:$4 sm:$0xff]  }
   0xd   : > { %253 = vmatpush1.bf16.msra.mxu0 %v399_v1  ;;  %s368_s25 = sshll.u32 %s490_s16, 3  ;;  %v405_v6 = vld [vmem:[%s486_s1 + $0x10] ss:$8 sps:$4 sm:$0xff]   ;;  %v406_v7 = vld [vmem:[%s486_s1 + $0x4] ss:$8 sps:$4 sm:$0xff]   ;;  %vm240_vm0 = vcmask 523264  }
   0xe   : > { %254 = vmatprep.subr.bf16.mxu0 %v400_v3  ;;  %s167_s5 = scalar_lea.vmem %s485_s0, %s368_s25  ;;  %v408_v8 = vld [vmem:[%s486_s1] ss:$8 sps:$4 sm:$0xff]   ;;  %v191_v13 = vshrl.u32 %v190_v12, 7  ;;  %vm299_vm1 = vcmask 1043456   ;;  %vm300_vm2 = vcmask 523268   ;;  %s174_s13 = scalar_lea.vmem %s488_s3, %s368_s25 }
   0xf   : > { %v177_v9 = vld [vmem:[%s167_s5] sm:$0xff]  ;;  %v178_v10 = vld [vmem:[%s167_s5 + $0x8] sm:$0xff]  ;;  %vm301_vm3 = vmor %vm300_vm2, %vm299_vm1 }
  0x10   : > { %v179_v11 = vpack.c.bf16 %v178_v10, %v177_v9  ;;  %v192_v14 = vsub.s32 0, %v191_v13  ;;  %v196_v15 = vsub.s32 1, %v191_v13  ;;  %v188_v16 = vld [vmem:[%s487_s2] sm:$0x3] }
  0x11   : > { %255 = vmatpush1.bf16.msra.mxu0 %v402_v4 }
  0x12   : > { %256 = vmatprep.subr.bf16.mxu0 %v403_v5  ;;  %v193_v17 = vrot.slane %v188_v16, %v192_v14  ;;  %v197_v18 = vrot.slane %v188_v16, %v196_v15 }
  0x15   : > { %257 = vmatpush1.bf16.msra.mxu0 %v405_v6 }
  0x16   : > { %258 = vmatprep.subr.bf16.mxu0 %v406_v7 }
  0x19   : > { %259 = vmatpush1.bf16.msra.mxu0 %v408_v8 }
  0x1c   : > { %380 = vmatmul.mubr.msk.bf16.vlgmr.msra.gmra.mxu0 %vm240_vm0, %v179_v11 }
  0xdc   : > { %v278_v19 = vpop.f32.mrf.mxu0 }
  0xdd   : > { %v279_v21 = vadd.f32 %v278_v19, %v193_v17 }
  0xde   : > { %v280_v20 = vpop.f32.mrf.mxu0 }
  0xdf   : > { %v281_v22 = vadd.f32 %v280_v20, %v197_v18 }
  0xe0   : > { %v282_v23 = vpop.f32.mrf.mxu0 }
  0xe1   : > { %v386_v24 = vpack.c.bf16 %v281_v22, %v279_v21  ;;  %v283_v26 = vadd.f32 %v282_v23, %v193_v17 }
  0xe2   : > { %v284_v25 = vpop.f32.mrf.mxu0 }
  0xe3   : > { %302 = vst.msk [vmem:[%s174_s13] sm:$0xff] %vm301_vm3, %v386_v24  ;;  %v285_v27 = vadd.f32 %v284_v25, %v197_v18 }
  0xe5   : > { %v387_v28 = vpack.c.bf16 %v285_v27, %v283_v26 }
  0xe7   : > { %303 = vst.msk [vmem:[%s174_s13 + $0x8] sm:$0xff] %vm301_vm3, %v387_v28 }
  0xe8 PF: > { %s13_s12 = sadd.s32 1, %s415_s12  }
  0xe9   : > { %p10_p4 = scmp.ge.s32.totalorder %s13_s12, 4  }
  0xeb   :  { %12 = sbr.rel (!%p10_p4) target bundleno = 1 (0x1), region = 62 }

// kernel: bert_gru_sentiment_forward.14
= control target key start
LH: loop header
LB: loop body
LE: loop exit
PB: predicated region body
PF: predicated region fallthrough
CT: control target
= control target key end

     0   :  { %s333_s12 = smov 0   ;;  %s369_s0 = inlined_call_operand.vmem [shape: f32[32,64], index: 0, kind: input, shape index: {}]   ;;  %s370_s1 = inlined_call_operand.vmem [shape: f32[1,64], index: 1, kind: input, shape index: {}]   ;;  %s371_s2 = inlined_call_operand.vmem [shape: f32[1,64], index: 2, kind: input, shape index: {}]   ;;  %s372_s3 = inlined_call_operand.vmem [shape: f32[32,64], index: 3, kind: output, shape index: {}]  }
   0x1 LB: > { %s280_s13 = sadd.s32 4294967295, %s311_s12   ;;  %p284_p0 = scmp.ge.s32.totalorder %s311_s12, 1  ;;  %s311_s12 = sphi %s333_s12, %s13_s12  }
   0x2   : > { %p138_p1 = scmp.lt.s32.totalorder %s311_s12, 3 }
   0x4   : > { %p139_p2 = pnand %p284_p0, %p138_p1 }
   0x5   : > { %s285_s14 = sshll.u32 (!%p139_p2), %s280_s13, 1 }
   0x6   : > { %142 = sbr.rel (%p139_p2) target bundleno = 328 (0x148), region = 32  ;;  %p163_p3 = scmp.lt.s32.totalorder (!%p139_p2), %s285_s14, 3 }
   0xb   : > { %s374_s14 = smov (!%p163_p3, %s285_s14), 3  ;;  %vm178_vm0 = vcmask 523264   ;;  %v289_v21 = vld [vmem:[%s370_s1] ss:$0 sm:$0xff] }
   0xc   : > { %s286_s15 = sshll.u32 %s374_s14, 3  ;;  %v290_v23 = vld [vmem:[%s371_s2] ss:$0 sm:$0xff] }
   0xd   : > { %s166_s18 = scalar_lea.vmem %s369_s0, %s286_s15  ;;  %s172_s25 = scalar_lea.vmem %s372_s3, %s286_s15 }
   0xe   : > { %v174_v0 = vld [vmem:[%s166_s18] sm:$0xff]  ;;  %v175_v1 = vld [vmem:[%s166_s18 + $0x8] sm:$0xff] }
   0xf   : > { %v179_v2 = vsel %vm178_vm0, %v174_v0, 0.0  ;;  %v182_v3 = vsel %vm178_vm0, %v175_v1, 0.0 }
  0x10   : > { %180 = vadd.xlane.f32.xlu0 %v179_v2 }
  0x14   : > { %183 = vadd.xlane.f32.xlu0 %v182_v3 }
  0x99   : > { %v181_v4 = vpop.xlane.xlu0 %180 }
  0x9a   : > { %v186_v5 = vmul.f32 0.015625, %v181_v4 }
  0x9c   : > { %v188_v6 = vsub.f32 %v174_v0, %v186_v5 }
  0x9d   : > { %v184_v7 = vpop.xlane.xlu0 %183 }
  0x9e   : > { %v187_v8 = vmul.f32 0.015625, %v184_v7  ;;  %v190_v9 = vmul.f32 %v188_v6, %v188_v6 }
  0xa0   : > { %v189_v10 = vsub.f32 %v175_v1, %v187_v8  ;;  %v192_v11 = vsel %vm178_vm0, %v190_v9, 0.0 }
  0xa1   : > { %193 = vadd.xlane.f32.xlu1 %v192_v11 }
  0xa2   : > { %v191_v12 = vmul.f32 %v189_v10, %v189_v10 }
  0xa4   : > { %v195_v13 = vsel %vm178_vm0, %v191_v12, 0.0 }
  0xa5   : > { %196 = vadd.xlane.f32.xlu1 %v195_v13 }
 0x12a   : > { %v194_v14 = vpop.xlane.xlu1 %193 }
 0x12b   : > { %v198_v15 = vmul.f32 0.015625, %v194_v14 }
 0x12d   : > { %v200_v16 = vadd.f32 1e-12, %v198_v15 }
 0x12e   : > { %v197_v17 = vpop.xlane.xlu1 %196 }
 0x12f   : > { %301 = vrsqrt.f32 %v200_v16  ;;  %v199_v18 = vmul.f32 0.015625, %v197_v17 }
 0x131   : > { %v201_v19 = vadd.f32 1e-12, %v199_v18 }
 0x133   : > { %303 = vrsqrt.f32 %v201_v19 }
 0x13c   : > { %v302_v20 = vpop.eup %301 }
 0x13d   : > { %v204_v22 = vmul.f32 %v302_v20, %v188_v6 }
 0x13f   : > { %v212_v24 = vmul.f32 %v289_v21, %v204_v22 }
 0x140   : > { %v304_v25 = vpop.eup %303 }
 0x141   : > { %v220_v26 = vadd.f32 %v290_v23, %v212_v24  ;;  %v205_v27 = vmul.f32 %v304_v25, %v189_v10 }
 0x143   : > { %222 = vst.msk [vmem:[%s172_s25] sm:$0xff] %vm178_vm0, %v220_v26  ;;  %v213_v28 = vmul.f32 %v289_v21, %v205_v27 }
 0x145   : > { %v221_v29 = vadd.f32 %v290_v23, %v213_v28 }
 0x147   : > { %223 = vst.msk [vmem:[%s172_s25 + $0x8] sm:$0xff] %vm178_vm0, %v221_v29 }
 0x148 PF: > { %s13_s12 = sadd.s32 1, %s311_s12  }
 0x149   : > { %p10_p4 = scmp.ge.s32.totalorder %s13_s12, 4  }
 0x14b   :  { %12 = sbr.rel (!%p10_p4) target bundleno = 1 (0x1), region = 62 }

// kernel: bert_gru_sentiment_forward.17
= control target key start
LH: loop header
LB: loop body
LE: loop exit
PB: predicated region body
PF: predicated region fallthrough
CT: control target
= control target key end

     0   :  { %s591_s21 = smov 0   ;;  %s647_s0 = inlined_call_operand.vmem [shape: f32[32,64], index: 0, kind: input, shape index: {}]   ;;  %s648_s1 = inlined_call_operand.vmem [shape: bf16[32,64], index: 1, kind: input, shape index: {}]   ;;  %s649_s2 = inlined_call_operand.vmem [shape: bf16[64,64], index: 2, kind: input, shape index: {}]   ;;  %s650_s3 = inlined_call_operand.vmem [shape: f32[1,64], index: 3, kind: input, shape index: {}]   ;;  %s651_s4 = inlined_call_operand.vmem [shape: f32[1,64], index: 4, kind: input, shape index: {}]   ;;  %s652_s5 = inlined_call_operand.vmem [shape: f32[1,64], index: 5, kind: input, shape index: {}]   ;;  %s653_s6 = inlined_call_operand.vmem [shape: f32[32,64], index: 6, kind: output, shape index: {}]  }
   0x1 LB: > { %s488_s22 = sadd.s32 4294967295, %s552_s21   ;;  %p492_p0 = scmp.ge.s32.totalorder %s552_s21, 1  ;;  %s552_s21 = sphi %s591_s21, %s16_s21  }
   0x2   : > { %p224_p1 = scmp.lt.s32.totalorder %s552_s21, 3 }
   0x4   : > { %p225_p2 = pnand %p492_p0, %p224_p1 }
   0x5   : > { %s493_s27 = sshll.u32 (!%p225_p2), %s488_s22, 1 }
   0x6   : > { %228 = sbr.rel (%p225_p2) target bundleno = 538 (0x21a), region = 44  ;;  %p260_p3 = scmp.lt.s32.totalorder (!%p225_p2), %s493_s27, 3 }
   0xb   : > { %v537_v0 = vld [vmem:[%s649_s2 + $0x18] sm:$0xff]   ;;  %v554_v1 = vmov 0.0   ;;  %v538_v2 = vld [vmem:[%s649_s2 + $0x10] sm:$0xff]   ;;  %vm555_vm0 = vmmov 0   ;;  %s655_s27 = smov (!%p260_p3, %s493_s27), 3  ;;  %v539_v3 = vld [vmem:[%s649_s2 + $0x8] sm:$0xff]  }
   0xc   : > { %515 = vmatprep.subr.bf16.mxu0 %v554_v1  ;;  %523 = vmatprep.mubr.msk.bf16.mxu0 %vm555_vm0, %v554_v1  ;;  %s496_s30 = sshll.u32 %s655_s27, 2  ;;  %v540_v4 = vld [vmem:[%s649_s2] sm:$0xff]   ;;  %vm324_vm1 = vcmask 523264   ;;  %s494_s12 = sshll.u32 %s655_s27, 3 }
   0xd   : > { %516 = vmatpush3.bf16.msra.mxu0 %v537_v0  ;;  %s269_s9 = scalar_lea.vmem %s648_s1, %s496_s30  ;;  %s263_s15 = scalar_lea.vmem %s647_s0, %s494_s12  ;;  %v499_v6 = vld [vmem:[%s650_s3] ss:$0 sm:$0xff] }
   0xe   : > { %517 = vmatprep.subr.bf16.mxu0 %v554_v1  ;;  %v541_v5 = vld [vmem:[%s269_s9] sm:$0xff]   ;;  %v370_v13 = vld [vmem:[%s263_s15 + $0x8] sm:$0xff]  ;;  %s275_s25 = scalar_lea.vmem %s653_s6, %s494_s12 }
   0xf   : > { %v369_v8 = vld [vmem:[%s263_s15] sm:$0xff] }
  0x10   : > { %v506_v36 = vld [vmem:[%s651_s4] ss:$0 sm:$0xff] }
  0x11   : > { %518 = vmatpush3.bf16.msra.mxu0 %v538_v2  ;;  %v507_v38 = vld [vmem:[%s652_s5] ss:$0 sm:$0xff] }
  0x12   : > { %519 = vmatprep.subr.bf16.mxu0 %v554_v1 }
  0x15   : > { %520 = vmatpush3.bf16.msra.mxu0 %v539_v3 }
  0x16   : > { %521 = vmatprep.subr.bf16.mxu0 %v554_v1 }
  0x19   : > { %522 = vmatpush3.bf16.msra.mxu0 %v540_v4 }
  0x1c   : > { %524 = vmatmul.mubr.msk.bf16.vlgmr.msra.gmra.mxu0 %vm324_vm1, %v541_v5 }
  0xdc   : > { %v362_v7 = vpop.f32.mrf.mxu0 }
  0xdd   : > { %v363_v9 = vadd.f32 %v499_v6, %v362_v7 }
  0xde   : > { %v525_v10 = vpop.f32.mrf.mxu0 }
  0xdf   : > { %v371_v11 = vadd.f32 %v369_v8, %v363_v9 }
  0xe0   : > { %v365_v12 = vpop.f32.mrf.mxu0 }
  0xe1   : > { %v366_v14 = vadd.f32 %v499_v6, %v365_v12  ;;  %v375_v15 = vsel %vm324_vm1, %v371_v11, 0.0 }
  0xe2   : > { %v526_v16 = vpop.f32.mrf.mxu0  ;;  %376 = vadd.xlane.f32.xlu0 %v375_v15 }
  0xe3   : > { %v372_v17 = vadd.f32 %v370_v13, %v366_v14 }
  0xe5   : > { %v378_v18 = vsel %vm324_vm1, %v372_v17, 0.0 }
  0xe6   : > { %379 = vadd.xlane.f32.xlu0 %v378_v18 }
 0x16b   : > { %v377_v19 = vpop.xlane.xlu0 %376 }
 0x16c   : > { %v382_v20 = vmul.f32 0.015625, %v377_v19 }
 0x16e   : > { %v384_v21 = vsub.f32 %v371_v11, %v382_v20 }
 0x16f   : > { %v380_v22 = vpop.xlane.xlu0 %379 }
 0x170   : > { %v383_v23 = vmul.f32 0.015625, %v380_v22  ;;  %v386_v24 = vmul.f32 %v384_v21, %v384_v21 }
 0x172   : > { %v385_v25 = vsub.f32 %v372_v17, %v383_v23  ;;  %v388_v26 = vsel %vm324_vm1, %v386_v24, 0.0 }
 0x173   : > { %389 = vadd.xlane.f32.xlu1 %v388_v26 }
 0x174   : > { %v387_v27 = vmul.f32 %v385_v25, %v385_v25 }
 0x176   : > { %v391_v28 = vsel %vm324_vm1, %v387_v27, 0.0 }
 0x177   : > { %392 = vadd.xlane.f32.xlu1 %v391_v28 }
 0x1fc   : > { %v390_v29 = vpop.xlane.xlu1 %389 }
 0x1fd   : > { %v394_v30 = vmul.f32 0.015625, %v390_v29 }
 0x1ff   : > { %v396_v31 = vadd.f32 1e-12, %v394_v30 }
 0x200   : > { %v393_v32 = vpop.xlane.xlu1 %392 }
 0x201   : > { %542 = vrsqrt.f32 %v396_v31  ;;  %v395_v33 = vmul.f32 0.015625, %v393_v32 }
 0x203   : > { %v397_v34 = vadd.f32 1e-12, %v395_v33 }
 0x205   : > { %544 = vrsqrt.f32 %v397_v34 }
 0x20e   : > { %v543_v35 = vpop.eup %542 }
 0x20f   : > { %v400_v37 = vmul.f32 %v543_v35, %v384_v21 }
 0x211   : > { %v408_v39 = vmul.f32 %v506_v36, %v400_v37 }
 0x212   : > { %v545_v40 = vpop.eup %544 }
 0x213   : > { %v416_v41 = vadd.f32 %v507_v38, %v408_v39  ;;  %v401_v42 = vmul.f32 %v545_v40, %v385_v25 }
 0x215   : > { %418 = vst.msk [vmem:[%s275_s25] sm:$0xff] %vm324_vm1, %v416_v41  ;;  %v409_v43 = vmul.f32 %v506_v36, %v401_v42 }
 0x217   : > { %v417_v44 = vadd.f32 %v507_v38, %v409_v43 }
 0x219   : > { %419 = vst.msk [vmem:[%s275_s25 + $0x8] sm:$0xff] %vm324_vm1, %v417_v44 }
 0x21a PF: > { %s16_s21 = sadd.s32 1, %s552_s21  }
 0x21b   : > { %p13_p4 = scmp.ge.s32.totalorder %s16_s21, 4  }
 0x21d   :  { %15 = sbr.rel (!%p13_p4) target bundleno = 1 (0x1), region = 77 }

// kernel: bert_gru_sentiment_forward.16
= control target key start
LH: loop header
LB: loop body
LE: loop exit
PB: predicated region body
PF: predicated region fallthrough
CT: control target
= control target key end

     0   :  { %s562_s6 = smov 0   ;;  %s611_s0 = inlined_call_operand.vmem [shape: bf16[2,16,192], index: 0, kind: input, shape index: {}]   ;;  %s612_s1 = inlined_call_operand.vmem [shape: bf16[2,16,64], index: 1, kind: output, shape index: {}]  }
   0x1 LB: > { %s448_s7 = sadd.s32 4294967295, %s545_s6   ;;  %p452_p0 = scmp.ge.s32.totalorder %s545_s6, 1  ;;  %s545_s6 = sphi %s562_s6, %s11_s6  }
   0x2   : > { %p87_p1 = scmp.lt.s32.totalorder %s545_s6, 3 }
   0x4   : > { %p88_p2 = pnand %p452_p0, %p87_p1 }
   0x5   : > { %p107_p3 = scmp.lt.s32.totalorder (!%p88_p2), %s448_s7, 1  ;;  %s549_s12 = smov (!%p88_p2), 64  }
   0x6   : > { %91 = sbr.rel (%p88_p2) target bundleno = 1488 (0x5d0), region = 24  ;;  %s550_s13 = smov (!%p88_p2), 32  }
   0x7   : > { %s551_s14 = smov (!%p88_p2), 96  }
   0xb   : > { %v547_v0 = vmov 0.0   ;;  %vm548_vm0 = vmmov 0   ;;  %s614_s7 = smov (!%p107_p3, %s448_s7), 1  ;;  %vm129_vm1 = vcmask 261120   ;;  %vm177_vm2 = vcmask 130048  }
   0xc   : > { %479 = vmatprep.subr.bf16.mxu0 %v547_v0  ;;  %481 = vmatprep.mubr.msk.bf16.mxu0 %vm548_vm0, %v547_v0  ;;  %s467_s8 = sshll.u32 %s614_s7, 4  ;;  %s468_s15 = sshll.u32 %s614_s7, 3  ;;  %vm390_vm3 = vcmask 519168  }
   0xd   : > { %485 = vmatprep.subr.bf16.mxu1 %v547_v0  ;;  %487 = vmatprep.mubr.msk.bf16.mxu1 %vm548_vm0, %v547_v0  ;;  %s578_s11 = scalar_lea.vmem %s611_s0, %s467_s8  ;;  %s116_s18 = scalar_lea.vmem %s612_s1, %s468_s15 }
   0xe   : > { %v521_v1 = vld [vmem:[%s578_s11] ss:$8 sps:$4 sm:$0xff]   ;;  %v522_v20 = vld [vmem:[%s578_s11 + $0x4] ss:$8 sps:$4 sm:$0xff]  }
   0xf   : > { %127 = vrot.lane.b32.xlu0 %v521_v1, %s549_s12  ;;  %486 = vmatpush3.bf16.msra.mxu1 %v522_v20 }
  0x10   : > { %491 = vmatprep.subr.bf16.mxu1 %v547_v0 }
  0x81   : > { %v128_v2 = vpop.permute.xlu0 %127 }
  0x82   : > { %v134_v3 = vsel %vm129_vm1, %v128_v2, 0 }
  0x83   : > { %480 = vmatpush3.bf16.xpose.msra.mxu0 %v134_v3 }
  0x84   : > { %497 = vmatprep.subr.bf16.mxu0 %v547_v0 }
  0x8a   : > { %482 = vmatmul.mubr.msk.bf16.vlgmr.msra.gmra.mxu0 %vm129_vm1, %v521_v1 }
  0x8b   : > { %499 = vmatprep.mubr.msk.bf16.mxu0 %vm548_vm0, %v547_v0 }
 0x14a   : > { %v170_v4 = vpop.f32.mrf.mxu0 }
 0x14b   : > { %v178_v5 = vsel %vm177_vm2, %v170_v4, -inf }
 0x14c   : > { %179 = vmax.xlane.f32.xlu0 %v178_v5  ;;  %v483_v6 = vpop.f32.mrf.mxu0 }
 0x14e   : > { %v173_v7 = vpop.f32.mrf.mxu0 }
 0x14f   : > { %v181_v8 = vsel %vm177_vm2, %v173_v7, -inf }
 0x150   : > { %182 = vmax.xlane.f32.xlu1 %v181_v8  ;;  %v484_v9 = vpop.f32.mrf.mxu0 }
 0x1d5   : > { %v180_v10 = vpop.xlane.xlu0 %179 }
 0x1d6   : > { %v184_v11 = vsub.f32 %v170_v4, %v180_v10 }
 0x1d8   : > { %v186_v12 = vmul.f32 1.442695, %v184_v11 }
 0x1d9   : > { %v183_v13 = vpop.xlane.xlu1 %182 }
 0x1da   : > { %523 = vpow2.f32 %v186_v12  ;;  %v185_v14 = vsub.f32 %v173_v7, %v183_v13 }
 0x1dc   : > { %v188_v15 = vmul.f32 1.442695, %v185_v14 }
 0x1de   : > { %525 = vpow2.f32 %v188_v15 }
 0x1e7   : > { %v524_v16 = vpop.eup %523 }
 0x1e8   : > { %v190_v17 = vsel %vm177_vm2, %v524_v16, 0.0 }
 0x1e9   : > { %191 = vadd.xlane.f32.xlu1 %v190_v17 }
 0x1eb   : > { %v526_v18 = vpop.eup %525 }
 0x1ec   : > { %v193_v19 = vsel %vm177_vm2, %v526_v18, 0.0 }
 0x1ed   : > { %194 = vadd.xlane.f32.xlu1 %v193_v19 }
 0x1fe   : > { %253 = vrot.lane.b32.xlu1 %v521_v1, %s550_s13 }
 0x202   : > { %251 = vrot.lane.b32.xlu1 %v521_v1, %s551_s14 }
 0x272   : > { %v192_v21 = vpop.xlane.xlu1 %191 }
 0x273   : > { %527 = vrcp.f32 %v192_v21 }
 0x276   : > { %v195_v22 = vpop.xlane.xlu1 %194 }
 0x277   : > { %529 = vrcp.f32 %v195_v22 }
 0x27a   : > { %v254_v25 = vpop.permute.xlu1 %253 }
 0x27b   : > { %v259_v28 = vsel %vm129_vm1, %v254_v25, 0 }
 0x27e   : > { %v252_v30 = vpop.permute.xlu1 %251 }
 0x280   : > { %v528_v23 = vpop.eup %527 }
 0x281   : > { %v198_v26 = vmul.f32 %v528_v23, %v524_v16 }
 0x284   : > { %v530_v24 = vpop.eup %529 }
 0x285   : > { %v199_v27 = vmul.f32 %v530_v24, %v526_v18 }
 0x287   : > { %v200_v29 = vpack.c.bf16 %v199_v27, %v198_v26 }
 0x289   : > { %488 = vmatmul.mubr.msk.bf16.vlgmr.msra.gmra.mxu1 %vm177_vm2, %v200_v29 }
 0x28a   : > { %492 = vmatpush3.bf16.xpose.msra.mxu1 %v259_v28  ;;  %493 = vmatprep.mubr.msk.bf16.mxu1 %vm548_vm0, %v547_v0 }
 0x291   : > { %494 = vmatmul.mubr.msk.bf16.vlgmr.msra.gmra.mxu1 %vm129_vm1, %v252_v30 }
 0x349   : > { %v244_v31 = vpop.f32.mrf.mxu1 }
 0x34b   : > { %v489_v32 = vpop.f32.mrf.mxu1 }
 0x34d   : > { %v247_v33 = vpop.f32.mrf.mxu1 }
 0x34f   : > { %v490_v34 = vpop.f32.mrf.mxu1 }
 0x351   : > { %v295_v35 = vpop.f32.mrf.mxu1 }
 0x352   : > { %v302_v36 = vsel %vm177_vm2, %v295_v35, -inf }
 0x353   : > { %303 = vmax.xlane.f32.xlu1 %v302_v36  ;;  %v495_v37 = vpop.f32.mrf.mxu1 }
 0x355   : > { %v298_v38 = vpop.f32.mrf.mxu1 }
 0x356   : > { %v305_v39 = vsel %vm177_vm2, %v298_v38, -inf }
 0x357   : > { %306 = vmax.xlane.f32.xlu0 %v305_v39  ;;  %v496_v40 = vpop.f32.mrf.mxu1 }
 0x3dc   : > { %v304_v41 = vpop.xlane.xlu1 %303 }
 0x3dd   : > { %v308_v42 = vsub.f32 %v295_v35, %v304_v41 }
 0x3df   : > { %v310_v43 = vmul.f32 1.442695, %v308_v42 }
 0x3e0   : > { %v307_v44 = vpop.xlane.xlu0 %306 }
 0x3e1   : > { %531 = vpow2.f32 %v310_v43  ;;  %v309_v45 = vsub.f32 %v298_v38, %v307_v44 }
 0x3e3   : > { %v312_v46 = vmul.f32 1.442695, %v309_v45 }
 0x3e5   : > { %533 = vpow2.f32 %v312_v46 }
 0x3ee   : > { %v532_v47 = vpop.eup %531 }
 0x3ef   : > { %v314_v48 = vsel %vm177_vm2, %v532_v47, 0.0 }
 0x3f0   : > { %315 = vadd.xlane.f32.xlu0 %v314_v48 }
 0x3f2   : > { %v534_v49 = vpop.eup %533 }
 0x3f3   : > { %v317_v50 = vsel %vm177_vm2, %v534_v49, 0.0 }
 0x3f4   : > { %318 = vadd.xlane.f32.xlu0 %v317_v50 }
 0x40a   : > { %325 = vrot.lane.b32.xlu0 %v522_v20, %s551_s14 }
 0x479   : > { %v316_v51 = vpop.xlane.xlu0 %315 }
 0x47a   : > { %535 = vrcp.f32 %v316_v51 }
 0x47d   : > { %v319_v52 = vpop.xlane.xlu0 %318 }
 0x47e   : > { %537 = vrcp.f32 %v319_v52 }
 0x481   : > { %v326_v53 = vpop.permute.xlu0 %325 }
 0x482   : > { %498 = vmatpush3.bf16.msra.mxu0 %v326_v53 }
 0x487   : > { %v536_v54 = vpop.eup %535 }
 0x488   : > { %v322_v56 = vmul.f32 %v536_v54, %v532_v47 }
 0x48b   : > { %v538_v55 = vpop.eup %537 }
 0x48c   : > { %v323_v57 = vmul.f32 %v538_v55, %v534_v49 }
 0x48e   : > { %v324_v58 = vpack.c.bf16 %v323_v57, %v322_v56 }
 0x490   : > { %500 = vmatmul.mubr.msk.bf16.vlgmr.msra.gmra.mxu0 %vm177_vm2, %v324_v58 }
 0x550   : > { %v365_v59 = vpop.f32.mrf.mxu0 }
 0x552   : > { %v501_v60 = vpop.f32.mrf.mxu0 }
 0x554   : > { %v368_v61 = vpop.f32.mrf.mxu0 }
 0x555   : > { %v516_v62 = vpack.i.bf16 %v368_v61, %v365_v59 }
 0x556   : > { %v502_v63 = vpop.f32.mrf.mxu0 }
 0x557   : > { %517 = vrot.lane.b32.xlu0 %v516_v62, %s550_s13 }
 0x5c9   : > { %v518_v0 = vpop.permute.xlu0 %517 }
 0x5ca   : > { %v520_v1 = vunpack.i.h.bf16 %v518_v0  ;;  %v519_v2 = vunpack.i.l.bf16 %v518_v0 }
 0x5cc   : > { %v381_v3 = vsel %vm129_vm1, %v247_v33, %v520_v1  ;;  %v380_v4 = vsel %vm129_vm1, %v244_v31, %v519_v2 }
 0x5cd   : > { %v470_v5 = vpack.c.bf16 %v381_v3, %v381_v3  ;;  %v469_v6 = vpack.c.bf16 %v380_v4, %v380_v4 }
 0x5cf   : > { %392 = vst.msk [vmem:[%s116_s18 + $0x4] sm:$0xf] %vm390_vm3, %v470_v5  ;;  %391 = vst.msk [vmem:[%s116_s18] sm:$0xf] %vm390_vm3, %v469_v6 }
 0x5d0 PF: > { %s11_s6 = sadd.s32 1, %s545_s6  }
 0x5d1   : > { %p8_p4 = scmp.ge.s32.totalorder %s11_s6, 4  }
 0x5d3   :  { %10 = sbr.rel (!%p8_p4) target bundleno = 1 (0x1), region = 54 }

// kernel: bert_gru_sentiment_forward.18
= control target key start
LH: loop header
LB: loop body
LE: loop exit
PB: predicated region body
PF: predicated region fallthrough
CT: control target
= control target key end

     0   :  { %s871_s24 = smov 0   ;;  %s994_s0 = inlined_call_operand.vmem [shape: f32[32,64], index: 0, kind: input, shape index: {}]   ;;  %s995_s1 = inlined_call_operand.vmem [shape: bf16[64,256], index: 1, kind: input, shape index: {}]   ;;  %s996_s2 = inlined_call_operand.vmem [shape: f32[1,256], index: 2, kind: input, shape index: {}]   ;;  %s997_s3 = inlined_call_operand.vmem [shape: bf16[256,64], index: 3, kind: input, shape index: {}]   ;;  %s998_s4 = inlined_call_operand.vmem [shape: f32[1,64], index: 4, kind: input, shape index: {}]   ;;  %s999_s5 = inlined_call_operand.vmem [shape: f32[1,64], index: 5, kind: input, shape index: {}]   ;;  %s1000_s6 = inlined_call_operand.vmem [shape: f32[1,64], index: 6, kind: input, shape index: {}]   ;;  %s1001_s7 = inlined_call_operand.vmem [shape: f32[32,64], index: 7, kind: output, shape index: {}]  }
   0x1 LB: > { %s712_s25 = sadd.s32 4294967295, %s828_s24   ;;  %p716_p0 = scmp.ge.s32.totalorder %s828_s24, 1  ;;  %s828_s24 = sphi %s871_s24, %s17_s24  }
   0x2   : > { %p238_p1 = scmp.lt.s32.totalorder %s828_s24, 3 }
   0x4   : > { %p239_p2 = pnand %p716_p0, %p238_p1 }
   0x5   : > { %s717_s28 = sshll.u32 (!%p239_p2), %s712_s25, 1 }
   0x6   : > { %242 = sbr.rel (%p239_p2) target bundleno = 774 (0x306), region = 48  ;;  %p271_p3 = scmp.lt.s32.totalorder (!%p239_p2), %s717_s28, 3 }
   0xb   : > { %v782_v0 = vld [vmem:[%s995_s1 + $0x34] ss:$8 sps:$4 sm:$0xff]   ;;  %v784_v1 = vld [vmem:[%s995_s1 + $0x30] ss:$8 sps:$4 sm:$0xff]   ;;  %v830_v2 = vmov 0   ;;  %s1003_s28 = smov (!%p271_p3, %s717_s28), 3  ;;  %v296_v28 = vlaneseq }
   0xc   : > { %382 = vmatprep.mubr.bf16.mxu0 %v830_v2  ;;  %358 = vmatprep.subr.bf16.mxu0 %v782_v0  ;;  %v785_v3 = vld [vmem:[%s995_s1 + $0x24] ss:$8 sps:$4 sm:$0xff]   ;;  %v787_v4 = vld [vmem:[%s995_s1 + $0x20] ss:$8 sps:$4 sm:$0xff]   ;;  %v788_v5 = vld [vmem:[%s995_s1 + $0x14] ss:$8 sps:$4 sm:$0xff]  }
   0xd   : > { %359 = vmatpush1.bf16.msra.mxu0 %v784_v1  ;;  %s718_s14 = sshll.u32 %s1003_s28, 3  ;;  %v790_v6 = vld [vmem:[%s995_s1 + $0x10] ss:$8 sps:$4 sm:$0xff]   ;;  %v791_v7 = vld [vmem:[%s995_s1 + $0x4] ss:$8 sps:$4 sm:$0xff]   ;;  %vm346_vm0 = vcmask 523264  }
   0xe   : > { %360 = vmatprep.subr.bf16.mxu0 %v785_v3  ;;  %s274_s17 = scalar_lea.vmem %s994_s0, %s718_s14  ;;  %v793_v8 = vld [vmem:[%s995_s1] ss:$8 sps:$4 sm:$0xff]   ;;  %v794_v12 = vld [vmem:[%s997_s3 + $0x78] sm:$0xff]   ;;  %v796_v14 = vld [vmem:[%s997_s3 + $0x70] sm:$0xff]   ;;  %v297_v29 = vshrl.u32 %v296_v28, 7  ;;  %s280_s27 = scalar_lea.vmem %s1001_s7, %s718_s14 }
   0xf   : > { %v911_v9 = vld [vmem:[%s274_s17] sm:$0xff]  ;;  %v913_v10 = vld [vmem:[%s274_s17 + $0x8] sm:$0xff]  ;;  %v795_v13 = vld [vmem:[%s997_s3 + $0x38] sm:$0xff]   ;;  %751 = vmatprep.subr.bf16.mxu1 %v794_v12 }
  0x10   : > { %v285_v11 = vpack.c.bf16 %v913_v10, %v911_v9  ;;  %752 = vmatpush3.bf16.msra.mxu1 %v795_v13  ;;  %v797_v15 = vld [vmem:[%s997_s3 + $0x30] sm:$0xff]   ;;  %v798_v16 = vld [vmem:[%s997_s3 + $0x68] sm:$0xff]   ;;  %v800_v18 = vld [vmem:[%s997_s3 + $0x60] sm:$0xff]   ;;  %v298_v30 = vsub.s32 0, %v297_v29  ;;  %v302_v32 = vsub.s32 1, %v297_v29 }
  0x11   : > { %361 = vmatpush1.bf16.msra.mxu0 %v787_v4  ;;  %753 = vmatprep.subr.bf16.mxu1 %v796_v14  ;;  %v799_v17 = vld [vmem:[%s997_s3 + $0x28] sm:$0xff]   ;;  %v801_v19 = vld [vmem:[%s997_s3 + $0x20] sm:$0xff]   ;;  %v802_v20 = vld [vmem:[%s997_s3 + $0x58] sm:$0xff]  }
  0x12   : > { %362 = vmatprep.subr.bf16.mxu0 %v788_v5  ;;  %v803_v21 = vld [vmem:[%s997_s3 + $0x18] sm:$0xff]   ;;  %v804_v22 = vld [vmem:[%s997_s3 + $0x50] sm:$0xff]   ;;  %v806_v24 = vld [vmem:[%s997_s3 + $0x48] sm:$0xff]  }
  0x13   : > { %v805_v23 = vld [vmem:[%s997_s3 + $0x10] sm:$0xff]   ;;  %v807_v25 = vld [vmem:[%s997_s3 + $0x8] sm:$0xff]   ;;  %v808_v26 = vld [vmem:[%s997_s3 + $0x40] sm:$0xff]  }
  0x14   : > { %754 = vmatpush3.bf16.msra.mxu1 %v797_v15  ;;  %v809_v27 = vld [vmem:[%s997_s3] sm:$0xff]  }
  0x15   : > { %363 = vmatpush1.bf16.msra.mxu0 %v790_v6  ;;  %755 = vmatprep.subr.bf16.mxu1 %v798_v16  ;;  %v294_v31 = vld [vmem:[%s996_s2] sm:$0x3] }
  0x16   : > { %364 = vmatprep.subr.bf16.mxu0 %v791_v7  ;;  %v299_v33 = vrot.slane %v294_v31, %v298_v30  ;;  %v303_v34 = vrot.slane %v294_v31, %v302_v32 }
  0x18   : > { %756 = vmatpush3.bf16.msra.mxu1 %v799_v17 }
  0x19   : > { %365 = vmatpush1.bf16.msra.mxu0 %v793_v8  ;;  %757 = vmatprep.subr.bf16.mxu1 %v800_v18 }
  0x1c   : > { %729 = vmatmul.mubr.msk.bf16.vlgmr.msra.gmra.mxu0 %vm346_vm0, %v285_v11  ;;  %758 = vmatpush3.bf16.msra.mxu1 %v801_v19 }
  0x1d   : > { %759 = vmatprep.subr.bf16.mxu1 %v802_v20  ;;  %v730_v20 = vld [vmem:[%s998_s4] ss:$0 sm:$0xff] }
  0x20   : > { %760 = vmatpush3.bf16.msra.mxu1 %v803_v21 }
  0x21   : > { %761 = vmatprep.subr.bf16.mxu1 %v804_v22 }
  0x24   : > { %762 = vmatpush3.bf16.msra.mxu1 %v805_v23 }
  0x25   : > { %763 = vmatprep.subr.bf16.mxu1 %v806_v24 }
  0x28   : > { %764 = vmatpush3.bf16.msra.mxu1 %v807_v25 }
  0x29   : > { %765 = vmatprep.subr.bf16.mxu1 %v808_v26 }
  0x2c   : > { %766 = vmatpush3.bf16.msra.mxu1 %v809_v27 }
  0xdc   : > { %v384_v35 = vpop.f32.mrf.mxu0 }
  0xdd   : > { %v385_v36 = vadd.f32 %v384_v35, %v299_v33 }
  0xde   : > { %v386_v37 = vpop.f32.mrf.mxu0 }
  0xdf   : > { %v397_v38 = vmul.f32 0.044715, %v385_v36  ;;  %v387_v39 = vadd.f32 %v386_v37, %v303_v34  ;;  %v393_v12 = vmul.f32 0.5, %v385_v36 }
  0xe0   : > { %v388_v40 = vpop.f32.mrf.mxu0 }
  0xe1   : > { %v401_v41 = vmul.f32 %v397_v38, %v385_v36  ;;  %v398_v42 = vmul.f32 0.044715, %v387_v39  ;;  %v389_v43 = vadd.f32 %v388_v40, %v299_v33  ;;  %v394_v7 = vmul.f32 0.5, %v387_v39 }
  0xe2   : > { %v390_v44 = vpop.f32.mrf.mxu0 }
  0xe3   : > { %v405_v45 = vmul.f32 %v401_v41, %v385_v36  ;;  %v399_v46 = vmul.f32 0.044715, %v389_v43  ;;  %v391_v47 = vadd.f32 %v390_v44, %v303_v34  ;;  %v402_v48 = vmul.f32 %v398_v42, %v387_v39 }
  0xe4   : > { %v395_v5 = vmul.f32 0.5, %v389_v43 }
  0xe5   : > { %v403_v49 = vmul.f32 %v399_v46, %v389_v43  ;;  %v400_v50 = vmul.f32 0.044715, %v391_v47  ;;  %v406_v51 = vmul.f32 %v402_v48, %v387_v39  ;;  %v409_v52 = vadd.f32 %v405_v45, %v385_v36 }
  0xe6   : > { %v396_v8 = vmul.f32 0.5, %v391_v47 }
  0xe7   : > { %v407_v53 = vmul.f32 %v403_v49, %v389_v43  ;;  %v404_v54 = vmul.f32 %v400_v50, %v391_v47  ;;  %v410_v55 = vadd.f32 %v406_v51, %v387_v39  ;;  %v413_v56 = vmul.f32 0.7978846, %v409_v52  ;;  %v748_v49 = vld [vmem:[%s1000_s6] ss:$0 sm:$0xff] }
  0xe9   : > { %v408_v57 = vmul.f32 %v404_v54, %v391_v47  ;;  %v414_v58 = vmul.f32 0.7978846, %v410_v55  ;;  %v411_v59 = vadd.f32 %v407_v53, %v389_v43 }
  0xeb   : > { %v412_v60 = vadd.f32 %v408_v57, %v391_v47  ;;  %810 = vtanh.f32 %v414_v58  ;;  %v415_v61 = vmul.f32 0.7978846, %v411_v59  ;;  %v747_v47 = vld [vmem:[%s999_s5] ss:$0 sm:$0xff] }
  0xec   : > { %812 = vtanh.f32 %v413_v56 }
  0xed   : > { %v416_v62 = vmul.f32 0.7978846, %v412_v60  ;;  %814 = vtanh.f32 %v415_v61 }
  0xef   : > { %816 = vtanh.f32 %v416_v62 }
  0xf8   : > { %v811_v63 = vpop.eup %810 }
  0xf9   : > { %v813_v0 = vpop.eup %812  ;;  %v422_v2 = vadd.f32 1.0, %v811_v63 }
  0xfa   : > { %v815_v1 = vpop.eup %814  ;;  %v421_v6 = vadd.f32 1.0, %v813_v0 }
  0xfb   : > { %v423_v3 = vadd.f32 1.0, %v815_v1  ;;  %v426_v14 = vmul.f32 %v422_v2, %v394_v7 }
  0xfc   : > { %v817_v4 = vpop.eup %816  ;;  %v425_v16 = vmul.f32 %v421_v6, %v393_v12 }
  0xfd   : > { %v424_v11 = vadd.f32 1.0, %v817_v4  ;;  %v427_v13 = vmul.f32 %v423_v3, %v395_v5 }
  0xff   : > { %v428_v15 = vmul.f32 %v424_v11, %v396_v8  ;;  %v429_v18 = vpack.c.bf16 %v427_v13, %v425_v16 }
 0x101   : > { %v430_v17 = vpack.c.bf16 %v428_v15, %v426_v14 }
 0x103   : > { %598 = vmatprep.mubr.bf16.mxu1 %v430_v17 }
 0x104   : > { %599 = vmatmul.mubr.bf16.vlgmr.msra.gmra.mxu1 %v429_v18 }
 0x1c4   : > { %v767_v19 = vpop.f32.mrf.mxu1 }
 0x1c6   : > { %v768_v21 = vpop.f32.mrf.mxu1 }
 0x1c7   : > { %v769_v22 = vadd.f32 %v768_v21, %v767_v19 }
 0x1c8   : > { %v770_v23 = vpop.f32.mrf.mxu1 }
 0x1c9   : > { %v601_v24 = vadd.f32 %v769_v22, %v730_v20 }
 0x1ca   : > { %v771_v25 = vpop.f32.mrf.mxu1 }
 0x1cb   : > { %v772_v26 = vadd.f32 %v771_v25, %v770_v23  ;;  %v607_v27 = vadd.f32 %v601_v24, %v911_v9 }
 0x1cd   : > { %v604_v28 = vadd.f32 %v772_v26, %v730_v20  ;;  %v611_v29 = vsel %vm346_vm0, %v607_v27, 0.0 }
 0x1ce   : > { %612 = vadd.xlane.f32.xlu0 %v611_v29 }
 0x1cf   : > { %v608_v30 = vadd.f32 %v604_v28, %v913_v10 }
 0x1d1   : > { %v614_v31 = vsel %vm346_vm0, %v608_v30, 0.0 }
 0x1d2   : > { %615 = vadd.xlane.f32.xlu0 %v614_v31 }
 0x257   : > { %v613_v32 = vpop.xlane.xlu0 %612 }
 0x258   : > { %v618_v33 = vmul.f32 0.015625, %v613_v32 }
 0x25a   : > { %v620_v34 = vsub.f32 %v607_v27, %v618_v33 }
 0x25b   : > { %v616_v35 = vpop.xlane.xlu0 %615 }
 0x25c   : > { %v619_v36 = vmul.f32 0.015625, %v616_v35  ;;  %v622_v37 = vmul.f32 %v620_v34, %v620_v34 }
 0x25e   : > { %v621_v38 = vsub.f32 %v608_v30, %v619_v36  ;;  %v624_v39 = vsel %vm346_vm0, %v622_v37, 0.0 }
 0x25f   : > { %625 = vadd.xlane.f32.xlu1 %v624_v39 }
 0x260   : > { %v623_v9 = vmul.f32 %v621_v38, %v621_v38 }
 0x262   : > { %v627_v40 = vsel %vm346_vm0, %v623_v9, 0.0 }
 0x263   : > { %628 = vadd.xlane.f32.xlu1 %v627_v40 }
 0x2e8   : > { %v626_v41 = vpop.xlane.xlu1 %625 }
 0x2e9   : > { %v630_v10 = vmul.f32 0.015625, %v626_v41 }
 0x2eb   : > { %v632_v42 = vadd.f32 1e-12, %v630_v10 }
 0x2ec   : > { %v629_v43 = vpop.xlane.xlu1 %628 }
 0x2ed   : > { %818 = vrsqrt.f32 %v632_v42  ;;  %v631_v44 = vmul.f32 0.015625, %v629_v43 }
 0x2ef   : > { %v633_v45 = vadd.f32 1e-12, %v631_v44 }
 0x2f1   : > { %820 = vrsqrt.f32 %v633_v45 }
 0x2fa   : > { %v819_v46 = vpop.eup %818 }
 0x2fb   : > { %v636_v48 = vmul.f32 %v819_v46, %v620_v34 }
 0x2fd   : > { %v644_v50 = vmul.f32 %v747_v47, %v636_v48 }
 0x2fe   : > { %v821_v51 = vpop.eup %820 }
 0x2ff   : > { %v652_v52 = vadd.f32 %v748_v49, %v644_v50  ;;  %v637_v53 = vmul.f32 %v821_v51, %v621_v38 }
 0x301   : > { %654 = vst.msk [vmem:[%s280_s27] sm:$0xff] %vm346_vm0, %v652_v52  ;;  %v645_v54 = vmul.f32 %v747_v47, %v637_v53 }
 0x303   : > { %v653_v55 = vadd.f32 %v748_v49, %v645_v54 }
 0x305   : > { %655 = vst.msk [vmem:[%s280_s27 + $0x8] sm:$0xff] %vm346_vm0, %v653_v55 }
 0x306 PF: > { %s17_s24 = sadd.s32 1, %s828_s24  }
 0x307   : > { %p14_p4 = scmp.ge.s32.totalorder %s17_s24, 4  }
 0x309   :  { %16 = sbr.rel (!%p14_p4) target bundleno = 1 (0x1), region = 78 }

// kernel: bert_gru_sentiment_forward.25
= control target key start
LH: loop header
LB: loop body
LE: loop exit
PB: predicated region body
PF: predicated region fallthrough
CT: control target
= control target key end

     0   :  { %s660_s15 = smov 0   ;;  %s662_s16 = smov 0   ;;  %s759_s0 = inlined_call_operand.vmem [shape: f32[2,32,32], index: 0, kind: input, shape index: {}]   ;;  %s760_s1 = inlined_call_operand.vmem [shape: bf16[32,192], index: 1, kind: input, shape index: {}]   ;;  %s761_s2 = inlined_call_operand.vmem [shape: bf16[32,192], index: 2, kind: input, shape index: {}]   ;;  %s762_s3 = inlined_call_operand.vmem [shape: f32[1,192], index: 3, kind: input, shape index: {}]   ;;  %s763_s4 = inlined_call_operand.vmem [shape: f32[2,32,96], index: 4, kind: output, shape index: {}]  }
   0x1   :  { %s664_s17 = smov 0  }
   0x2 LB: > { %s540_s18 = sadd.s32 4294967295, %s631_s17   ;;  %s677_s19 = sadd.s32 1, %s631_s17   ;;  %s631_s17 = sphi %s664_s17, %s767_s17   ;;  %s627_s16 = sphi %s662_s16, %s766_s16   ;;  %s623_s15 = sphi %s660_s15, %s765_s15  }
   0x3   : > { %s18_s20 = ssub.s32 %s631_s17, %s677_s19  ;;  %s21_s21 = sadd.s32 1, %s627_s16 }
   0x4   : > { %p19_p0 = scmp.eq.s32.totalorder %s18_s20, 0  ;;  %p28_p1 = scmp.ne.s32.totalorder %s627_s16, %s623_s15 }
   0x5   : > { %p29_p2 = scmp.eq.s32.totalorder %s631_s17, 0  ;;  %p121_p3 = scmp.eq.s32.totalorder %s540_s18, 1 }
   0x6   : > { %s688_s22 = scalar_select %p19_p0, %s627_s16, %s21_s21  }
   0x7   : > { %p30_p4 = por %p29_p2, %p28_p1  ;;  %p690_p5 = por %p121_p3, %p28_p1 }
   0x8   : > { %p543_p6 = scmp.ge.s32.totalorder %s631_s17, 2 }
   0xa   : > { %152 = sbr.rel (%p543_p6) target bundleno = 21 (0x15), region = 28 }
   0xf   : > { %155 = sbr.rel (!%p30_p4) target bundleno = 21 (0x15), region = 32  ;;  %s157_s24 = sand.u32 (%p30_p4), 1, %s627_s16  }
  0x10   : > { %s569_s25 = sshll.u32 (%p30_p4), %s631_s17, 4  ;;  %s544_s26 = sshll.u32 (%p30_p4), %s157_s24, 5 }
  0x11   : > { %s162_s29 = scalar_lea.vmem (%p30_p4), %s759_s0, %s569_s25  ;;  %s159_s30 = scalar_lea.vmem (%p30_p4), [#allocation2], %s544_s26 }
  0x12   : > { %v197_v0 = vld [vmem:[%s162_s29] sm:$0xff] (%p30_p4)  ;;  %v199_v1 = vld [vmem:[%s162_s29 + $0x8] sm:$0xff] (%p30_p4) }
  0x13   : > { %v201_v2 = vld [vmem:[%s162_s29 + $0x20] sm:$0xff] (%p30_p4)  ;;  %198 = vst [vmem:[%s159_s30] sm:$0xff] (%p30_p4), %v197_v0  ;;  %200 = vst [vmem:[%s159_s30 + $0x8] sm:$0xff] (%p30_p4), %v199_v1  ;;  %v203_v3 = vld [vmem:[%s162_s29 + $0x28] sm:$0xff] (%p30_p4) }
  0x14   : > { %202 = vst [vmem:[%s159_s30 + $0x10] sm:$0xff] %v201_v2  ;;  %204 = vst [vmem:[%s159_s30 + $0x18] sm:$0xff] %v203_v3 }
  0x15 PF: > { %p547_p7 = scmp.ge.s32.totalorder %s631_s17, 1  ;;  %p209_p8 = scmp.lt.s32.totalorder %s631_s17, 3 }
  0x17   : > { %p210_p9 = pnand %p547_p7, %p209_p8 }
  0x18   : > { %s216_s7 = sand.u32 (!%p210_p9), 1, %s623_s15   ;;  %s634_s6 = smov (!%p210_p9), 32  }
  0x19   : > { %213 = sbr.rel (%p210_p9) target bundleno = 370 (0x172), region = 70  ;;  %s709_s10 = sshll.u32 (!%p210_p9), %s216_s7, 5 }
  0x1a   : > { %s218_s29 = scalar_lea.vmem (!%p210_p9), [#allocation2], %s709_s10  ;;  %s239_s7 = scalar_lea.vmem (!%p210_p9), [#allocation3], %s709_s10 }
  0x1e   : > { %v597_v4 = vld [vmem:[%s761_s2 + $0x14] ss:$8 sps:$4 sm:$0xff]   ;;  %v633_v6 = vmov 0   ;;  %v601_v7 = vld [vmem:[%s761_s2 + $0x10] ss:$8 sps:$4 sm:$0xff]   ;;  %v243_v15 = vld [vmem:[%s218_s29] sm:$0xff]  ;;  %v393_v19 = vlaneseq }
  0x1f   : > { %v599_v5 = vld [vmem:[%s760_s1 + $0x14] ss:$8 sps:$4 sm:$0xff]   ;;  %314 = vmatprep.mubr.bf16.mxu0 %v633_v6  ;;  %380 = vmatprep.mubr.bf16.mxu1 %v633_v6  ;;  %v602_v8 = vld [vmem:[%s760_s1 + $0x10] ss:$8 sps:$4 sm:$0xff]   ;;  %v603_v9 = vld [vmem:[%s761_s2 + $0x4] ss:$8 sps:$4 sm:$0xff]  }
  0x20   : > { %294 = vmatprep.subr.bf16.mxu0 %v597_v4  ;;  %360 = vmatprep.subr.bf16.mxu1 %v599_v5  ;;  %v605_v10 = vld [vmem:[%s760_s1 + $0x4] ss:$8 sps:$4 sm:$0xff]   ;;  %v607_v11 = vld [vmem:[%s761_s2] ss:$8 sps:$4 sm:$0xff]   ;;  %v550_v13 = vld [vmem:[%s218_s29 + $0x10] sm:$0xff]  ;;  %vm278_vm0 = vcmask 261120  }
  0x21   : > { %295 = vmatpush1.bf16.msra.mxu0 %v601_v7  ;;  %361 = vmatpush1.bf16.msra.mxu1 %v602_v8  ;;  %v608_v12 = vld [vmem:[%s760_s1] ss:$8 sps:$4 sm:$0xff]   ;;  %v551_v14 = vld [vmem:[%s218_s29 + $0x18] sm:$0xff]  ;;  %v394_v20 = vshrl.u32 %v393_v19, 7  ;;  %vm407_vm1 = vcmask 785408   ;;  %s570_s8 = sshll.u32 (%p690_p5), %s540_s18, 4 }
  0x22   : > { %296 = vmatprep.subr.bf16.mxu0 %v603_v9  ;;  %362 = vmatprep.subr.bf16.mxu1 %v605_v10  ;;  %v244_v16 = vld [vmem:[%s218_s29 + $0x8] sm:$0xff]  ;;  %v253_v17 = vpack.c.bf16 %v551_v14, %v550_v13  ;;  %v391_v22 = vld [vmem:[%s762_s3] sm:$0x3]  ;;  %s438_s11 = scalar_lea.vmem (%p690_p5), %s763_s4, %s570_s8 }
  0x23   : > { %v245_v18 = vpack.c.bf16 %v244_v16, %v243_v15  ;;  %v395_v21 = vsub.s32 0, %v394_v20  ;;  %v399_v23 = vsub.s32 1, %v394_v20 }
  0x25   : > { %297 = vmatpush1.bf16.msra.mxu0 %v607_v11  ;;  %363 = vmatpush1.bf16.msra.mxu1 %v608_v12  ;;  %v396_v24 = vrot.slane %v391_v22, %v395_v21  ;;  %v400_v31 = vrot.slane %v391_v22, %v399_v23 }
  0x28   : > { %556 = vmatmul.mubr.msk.bf16.vlgmr.msra.gmra.mxu0 %vm278_vm0, %v253_v17  ;;  %561 = vmatmul.mubr.msk.bf16.vlgmr.msra.gmra.mxu1 %vm278_vm0, %v245_v18 }
  0xe8   : > { %v316_v25 = vpop.f32.mrf.mxu0  ;;  %v382_v26 = vpop.f32.mrf.mxu1 }
  0xe9   : > { %v383_v27 = vadd.f32 %v382_v26, %v316_v25 }
  0xea   : > { %v318_v28 = vpop.f32.mrf.mxu0  ;;  %v384_v29 = vpop.f32.mrf.mxu1 }
  0xeb   : > { %v385_v30 = vadd.f32 %v384_v29, %v318_v28  ;;  %v403_v32 = vadd.f32 %v396_v24, %v383_v27 }
  0xec   : > { %v320_v33 = vpop.f32.mrf.mxu0  ;;  %v386_v34 = vpop.f32.mrf.mxu1 }
  0xed   : > { %v387_v35 = vadd.f32 %v386_v34, %v320_v33  ;;  %414 = vrot.lane.b32.xlu0 %v403_v32, %s634_s6  ;;  %408 = vst.msk [vmem:[%s239_s7] sm:$0xff] %vm407_vm1, %v403_v32  ;;  %v404_v38 = vadd.f32 %v400_v31, %v385_v30 }
  0xee   : > { %v322_v36 = vpop.f32.mrf.mxu0  ;;  %v388_v37 = vpop.f32.mrf.mxu1 }
  0xef   : > { %v389_v39 = vadd.f32 %v388_v37, %v322_v36  ;;  %v405_v40 = vadd.f32 %v396_v24, %v387_v35 }
  0xf1   : > { %418 = vrot.lane.b32.xlu1 %v405_v40, %s634_s6  ;;  %409 = vst.msk [vmem:[%s239_s7 + $0x8] sm:$0xff] %vm407_vm1, %v405_v40  ;;  %416 = vrot.lane.b32.xlu0 %v404_v38, %s634_s6  ;;  %v406_v41 = vadd.f32 %v400_v31, %v389_v39 }
  0xf4   : > { %v473_v48 = vld [vmem:[%s239_s7] sm:$0xff] (%p690_p5) }
  0xf5   : > { %420 = vrot.lane.b32.xlu1 %v406_v41, %s634_s6  ;;  %474 = vst [vmem:[%s438_s11] sm:$0xff] (%p690_p5), %v473_v48 }
  0xf8   : > { %v475_v49 = vld [vmem:[%s239_s7 + $0x8] sm:$0xff] (%p690_p5) }
  0xf9   : > { %476 = vst [vmem:[%s438_s11 + $0x8] sm:$0xff] (%p690_p5), %v475_v49 }
 0x15f   : > { %v415_v42 = vpop.permute.xlu0 %414 }
 0x163   : > { %v419_v43 = vpop.permute.xlu1 %418  ;;  %v417_v44 = vpop.permute.xlu0 %416 }
 0x164   : > { %v422_v45 = vsel %vm278_vm0, %v415_v42, %v417_v44 }
 0x165   : > { %562 = vst.msk [vmem:[%s239_s7 + $0x10] sm:$0xff] %vm407_vm1, %v422_v45  ;;  %435 = sbr.rel (!%p690_p5) target bundleno = 370 (0x172), region = 78 }
 0x167   : > { %v421_v46 = vpop.permute.xlu1 %420 }
 0x168   : > { %v423_v47 = vsel %vm278_vm0, %v419_v43, %v421_v46 }
 0x169   : > { %563 = vst.msk [vmem:[%s239_s7 + $0x18] sm:$0xff] %vm407_vm1, %v423_v47 }
 0x16c   : > { %v477_v50 = vld [vmem:[%s239_s7 + $0x10] sm:$0xff] }
 0x16d   : > { %478 = vst [vmem:[%s438_s11 + $0x20] sm:$0xff] %v477_v50 }
 0x170   : > { %v479_v51 = vld [vmem:[%s239_s7 + $0x18] sm:$0xff] }
 0x171   : > { %480 = vst [vmem:[%s438_s11 + $0x28] sm:$0xff] %v479_v51 }
 0x172 PF: > { %p11_p10 = scmp.ge.s32.totalorder %s677_s19, 4   ;;  %s765_s15 = smov %s627_s16 }
 0x173   : > { %s766_s16 = smov %s688_s22  ;;  %s767_s17 = smov %s677_s19 }
 0x174   :  { %13 = sbr.rel (!%p11_p10) target bundleno = 2 (0x2), region = 149 }

// kernel: bert_gru_sentiment_forward.23
= control target key start
LH: loop header
LB: loop body
LE: loop exit
PB: predicated region body
PF: predicated region fallthrough
CT: control target
= control target key end

     0   :  { %s516_s12 = smov 0   ;;  %s518_s13 = smov 0   ;;  %s597_s0 = inlined_call_operand.vmem [shape: f32[32,64], index: 0, kind: input, shape index: {}]   ;;  %s598_s1 = inlined_call_operand.vmem [shape: bf16[64,192], index: 1, kind: input, shape index: {}]   ;;  %s599_s2 = inlined_call_operand.vmem [shape: f32[1,192], index: 2, kind: input, shape index: {}]   ;;  %s600_s3 = inlined_call_operand.vmem [shape: f32[2,32,96], index: 3, kind: output, shape index: {}]  }
   0x1   :  { %s520_s14 = smov 0  }
   0x2 LB: > { %s529_s15 = sadd.s32 4294967295, %s492_s14   ;;  %s531_s16 = sadd.s32 1, %s492_s14   ;;  %s492_s14 = sphi %s520_s14, %s604_s14   ;;  %s488_s13 = sphi %s518_s13, %s603_s13   ;;  %s484_s12 = sphi %s516_s12, %s602_s12  }
   0x3   : > { %s85_s17 = ssub.s32 %s492_s14, %s531_s16  ;;  %s88_s18 = sadd.s32 1, %s488_s13 }
   0x4   : > { %p86_p0 = scmp.eq.s32.totalorder %s85_s17, 0  ;;  %p98_p1 = scmp.ne.s32.totalorder %s488_s13, %s484_s12 }
   0x5   : > { %p99_p2 = scmp.eq.s32.totalorder %s529_s15, 1  ;;  %p411_p3 = scmp.ge.s32.totalorder %s492_s14, 1 }
   0x6   : > { %s539_s19 = scalar_select %p86_p0, %s488_s13, %s88_s18  }
   0x7   : > { %p541_p4 = por %p99_p2, %p98_p1  ;;  %p138_p5 = scmp.lt.s32.totalorder %s492_s14, 3 }
   0x9   : > { %p139_p6 = pnand %p411_p3, %p138_p5 }
   0xa   : > { %s413_s23 = sshll.u32 (!%p139_p6), %s529_s15, 1  ;;  %s158_s21 = sand.u32 (!%p139_p6), 1, %s484_s12  }
   0xb   : > { %142 = sbr.rel (%p139_p6) target bundleno = 361 (0x169), region = 32  ;;  %p162_p7 = scmp.lt.s32.totalorder (!%p139_p6), %s413_s23, 3 }
   0xc   : > { %s412_s24 = sshll.u32 (!%p139_p6), %s158_s21, 5  ;;  %s495_s26 = smov (!%p139_p6), 32  }
   0xd   : > { %s160_s25 = scalar_lea.vmem (!%p139_p6), [#allocation2], %s412_s24 }
  0x10   : > { %v458_v0 = vld [vmem:[%s598_s1 + $0x34] ss:$8 sps:$4 sm:$0xff]   ;;  %v460_v1 = vld [vmem:[%s598_s1 + $0x30] ss:$8 sps:$4 sm:$0xff]   ;;  %v494_v2 = vmov 0   ;;  %s606_s23 = smov (!%p162_p7, %s413_s23), 3  ;;  %v182_v12 = vlaneseq }
  0x11   : > { %268 = vmatprep.mubr.bf16.mxu0 %v494_v2  ;;  %244 = vmatprep.subr.bf16.mxu0 %v458_v0  ;;  %v461_v3 = vld [vmem:[%s598_s1 + $0x24] ss:$8 sps:$4 sm:$0xff]   ;;  %v463_v4 = vld [vmem:[%s598_s1 + $0x20] ss:$8 sps:$4 sm:$0xff]   ;;  %v464_v5 = vld [vmem:[%s598_s1 + $0x14] ss:$8 sps:$4 sm:$0xff]  }
  0x12   : > { %245 = vmatpush1.bf16.msra.mxu0 %v460_v1  ;;  %s414_s5 = sshll.u32 %s606_s23, 3  ;;  %v466_v6 = vld [vmem:[%s598_s1 + $0x10] ss:$8 sps:$4 sm:$0xff]   ;;  %v467_v7 = vld [vmem:[%s598_s1 + $0x4] ss:$8 sps:$4 sm:$0xff]   ;;  %vm232_vm0 = vcmask 523264  }
  0x13   : > { %246 = vmatprep.subr.bf16.mxu0 %v461_v3  ;;  %s165_s14 = scalar_lea.vmem %s597_s0, %s414_s5  ;;  %v469_v8 = vld [vmem:[%s598_s1] ss:$8 sps:$4 sm:$0xff]   ;;  %v183_v13 = vshrl.u32 %v182_v12, 7  ;;  %vm279_vm1 = vcmask 785408   ;;  %vm294_vm2 = vcmask 261120   ;;  %s431_s12 = sshll.u32 (%p541_p4), %s529_s15, 4 }
  0x14   : > { %v169_v9 = vld [vmem:[%s165_s14] sm:$0xff]  ;;  %v170_v10 = vld [vmem:[%s165_s14 + $0x8] sm:$0xff]  ;;  %s311_s29 = scalar_lea.vmem (%p541_p4), %s600_s3, %s431_s12 }
  0x15   : > { %v171_v11 = vpack.c.bf16 %v170_v10, %v169_v9  ;;  %v184_v14 = vsub.s32 0, %v183_v13  ;;  %v180_v15 = vld [vmem:[%s599_s2] sm:$0x3]  ;;  %v188_v17 = vsub.s32 1, %v183_v13 }
  0x16   : > { %247 = vmatpush1.bf16.msra.mxu0 %v463_v4 }
  0x17   : > { %248 = vmatprep.subr.bf16.mxu0 %v464_v5  ;;  %v185_v16 = vrot.slane %v180_v15, %v184_v14  ;;  %v189_v20 = vrot.slane %v180_v15, %v188_v17 }
  0x1a   : > { %249 = vmatpush1.bf16.msra.mxu0 %v466_v6 }
  0x1b   : > { %250 = vmatprep.subr.bf16.mxu0 %v467_v7 }
  0x1e   : > { %251 = vmatpush1.bf16.msra.mxu0 %v469_v8 }
  0x21   : > { %423 = vmatmul.mubr.msk.bf16.vlgmr.msra.gmra.mxu0 %vm232_vm0, %v171_v11 }
  0xe1   : > { %v270_v18 = vpop.f32.mrf.mxu0 }
  0xe2   : > { %v271_v19 = vadd.f32 %v270_v18, %v185_v16 }
  0xe3   : > { %v272_v21 = vpop.f32.mrf.mxu0 }
  0xe4   : > { %280 = vst.msk [vmem:[%s160_s25] sm:$0xff] %vm279_vm1, %v271_v19  ;;  %286 = vrot.lane.b32.xlu0 %v271_v19, %s495_s26  ;;  %v273_v23 = vadd.f32 %v272_v21, %v189_v20 }
  0xe5   : > { %v274_v22 = vpop.f32.mrf.mxu0 }
  0xe6   : > { %v275_v24 = vadd.f32 %v274_v22, %v185_v16 }
  0xe7   : > { %v276_v25 = vpop.f32.mrf.mxu0 }
  0xe8   : > { %281 = vst.msk [vmem:[%s160_s25 + $0x8] sm:$0xff] %vm279_vm1, %v275_v24  ;;  %290 = vrot.lane.b32.xlu1 %v275_v24, %s495_s26  ;;  %288 = vrot.lane.b32.xlu0 %v273_v23, %s495_s26  ;;  %v277_v26 = vadd.f32 %v276_v25, %v189_v20 }
  0xeb   : > { %v346_v33 = vld [vmem:[%s160_s25] sm:$0xff] (%p541_p4) }
  0xec   : > { %292 = vrot.lane.b32.xlu1 %v277_v26, %s495_s26  ;;  %347 = vst [vmem:[%s311_s29] sm:$0xff] (%p541_p4), %v346_v33 }
  0xef   : > { %v348_v34 = vld [vmem:[%s160_s25 + $0x8] sm:$0xff] (%p541_p4) }
  0xf0   : > { %349 = vst [vmem:[%s311_s29 + $0x8] sm:$0xff] (%p541_p4), %v348_v34 }
 0x156   : > { %v287_v27 = vpop.permute.xlu0 %286 }
 0x15a   : > { %v291_v28 = vpop.permute.xlu1 %290  ;;  %v289_v29 = vpop.permute.xlu0 %288 }
 0x15b   : > { %v295_v30 = vsel %vm294_vm2, %v287_v27, %v289_v29 }
 0x15c   : > { %424 = vst.msk [vmem:[%s160_s25 + $0x10] sm:$0xff] %vm279_vm1, %v295_v30  ;;  %308 = sbr.rel (!%p541_p4) target bundleno = 361 (0x169), region = 36 }
 0x15e   : > { %v293_v31 = vpop.permute.xlu1 %292 }
 0x15f   : > { %v296_v32 = vsel %vm294_vm2, %v291_v28, %v293_v31 }
 0x160   : > { %425 = vst.msk [vmem:[%s160_s25 + $0x18] sm:$0xff] %vm279_vm1, %v296_v32 }
 0x163   : > { %v350_v35 = vld [vmem:[%s160_s25 + $0x10] sm:$0xff] }
 0x164   : > { %351 = vst [vmem:[%s311_s29 + $0x20] sm:$0xff] %v350_v35 }
 0x167   : > { %v352_v36 = vld [vmem:[%s160_s25 + $0x18] sm:$0xff] }
 0x168   : > { %353 = vst [vmem:[%s311_s29 + $0x28] sm:$0xff] %v352_v36 }
 0x169 PF: > { %p10_p8 = scmp.ge.s32.totalorder %s531_s16, 4   ;;  %s602_s12 = smov %s488_s13 }
 0x16a   : > { %s603_s13 = smov %s539_s19  ;;  %s604_s14 = smov %s531_s16 }
 0x16b   :  { %12 = sbr.rel (!%p10_p8) target bundleno = 2 (0x2), region = 101 }

// kernel: bert_gru_sentiment_forward.27
= control target key start
LH: loop header
LB: loop body
LE: loop exit
PB: predicated region body
PF: predicated region fallthrough
CT: control target
= control target key end

     0   :  { %v228_v1 = vmov 0.0   ;;  %vm229_vm0 = vmmov 0   ;;  %s275_s0 = inlined_call_operand.vmem [shape: f32[2,2,32], index: 0, kind: input, shape index: {}]   ;;  %s276_s1 = inlined_call_operand.vmem [shape: bf16[2,32,3], index: 1, kind: input, shape index: {}]   ;;  %s277_s2 = inlined_call_operand.vmem [shape: f32[1,3], index: 2, kind: input, shape index: {}]   ;;  %s278_s3 = inlined_call_operand.hbm [shape: f32[2,3], index: 3, kind: output, shape index: {}]  }
   0x1   :  { %v202_v0 = vld [vmem:[%s276_s1 + $0x18] sm:$0xff]   ;;  %183 = vmatprep.subr.bf16.mxu0 %v228_v1  ;;  %191 = vmatprep.subr.bf16.mxu1 %v228_v1  ;;  %v203_v2 = vld [vmem:[%s276_s1 + $0x8] sm:$0xff]   ;;  %v204_v3 = vld [vmem:[%s276_s1 + $0x10] sm:$0xff]  }
   0x2   :  { %184 = vmatpush3.bf16.msra.mxu0 %v202_v0  ;;  %187 = vmatprep.mubr.msk.bf16.mxu0 %vm229_vm0, %v228_v1  ;;  %v205_v4 = vld [vmem:[%s276_s1] sm:$0xff]  }
   0x3   :  { %192 = vmatpush3.bf16.msra.mxu1 %v203_v2  ;;  %185 = vmatprep.subr.bf16.mxu0 %v228_v1  ;;  %v165_v5 = vld [vmem:[%s275_s0 + $0x2] sm:$0x3]  ;;  %v16_v6 = vld [vmem:[%s275_s0] sm:$0x3] }
   0x4   :  { %193 = vmatprep.subr.bf16.mxu1 %v228_v1  ;;  %195 = vmatprep.mubr.msk.bf16.mxu1 %vm229_vm0, %v228_v1 }
   0x5   :  { %8 = vsyncpa [#allocation3], 0  ;;  %v24_v7 = vpack.c.bf16 %v165_v5, %v165_v5  ;;  %vm42_vm1 = vcmask 261120   ;;  %v17_v8 = vpack.c.bf16 %v16_v6, %v16_v6  ;;  %v176_v11 = vld [vmem:[%s277_s2] ss:$0 sm:$0xff]  ;;  %s230_s25 = smov [#allocation2]  }
   0x6   :  { %186 = vmatpush3.bf16.msra.mxu0 %v204_v3  ;;  %s157_s26 = sshll.u32 %s230_s25, 4  ;;  %vm149_vm2 = vcmask 17408   ;;  %s158_s26 = int_to_ptr.vmem [resolvable:$true] %s157_s26 }
   0x7   :  { %194 = vmatpush3.bf16.msra.mxu1 %v205_v4  ;;  %s206_s0 = scalar_lea.vmem %s158_s26, 32  ;;  %p211_p1 = scmp.lt.s32.totalorder %s158_s26, %s158_s26 }
   0x8   :  { %p207_p0 = scmp.ne.s32.totalorder %s158_s26, %s206_s0  ;;  %p212_p2 = scmp.lt.s32.totalorder %s206_s0, %s206_s0 }
   0x9   :  { %188 = vmatmul.mubr.msk.bf16.vlgmr.msra.gmra.mxu0 %vm42_vm1, %v24_v7 }
   0xa   :  { %196 = vmatmul.mubr.msk.bf16.vlgmr.msra.gmra.mxu1 %vm42_vm1, %v17_v8  ;;  %p213_p3 = por %p212_p2, %p211_p1 }
   0xc   :  { %p214_p4 = pnand %p213_p3, %p207_p0 }
  0xc9   :  { %v80_v9 = vpop.f32.mrf.mxu0 }
  0xca   :  { %v135_v10 = vpop.f32.mrf.mxu1 }
  0xcb   :  { %v136_v12 = vadd.f32 %v135_v10, %v80_v9  ;;  %v189_v13 = vpop.f32.mrf.mxu0 }
  0xcc   :  { %v197_v14 = vpop.f32.mrf.mxu1 }
  0xcd   :  { %v148_v15 = vadd.f32 %v176_v11, %v136_v12  ;;  %v83_v16 = vpop.f32.mrf.mxu0 }
  0xce   :  { %v138_v17 = vpop.f32.mrf.mxu1 }
  0xcf   :  { %v190_v18 = vpop.f32.mrf.mxu0  ;;  %150 = vst.msk [vmem:[#allocation2] sm:$0x3] %vm149_vm2, %v148_v15 }
  0xd0   :  { %v198_v19 = vpop.f32.mrf.mxu1 }
  0xd1   :  { %217 = shalt.err (!%p214_p4)
}
  0xd2   :  { %160 = dma.vmem_to_hbm [thread:$0]  %s158_s26, 32, %s278_s3, [#allocation3]  }
  0xd3   :  { %226 = dma.done.wait [#allocation3], 32  }
  0xd4   :  { %227 = vsyncadd [#allocation3], 4294967264 }
  0xd5   :  { %164 = vsyncpa [#allocation3], 1 }

// kernel: bert_gru_sentiment_forward.24
= control target key start
LH: loop header
LB: loop body
LE: loop exit
PB: predicated region body
PF: predicated region fallthrough
CT: control target
= control target key end

     0   :  { %10 = vsyncpa [#allocation4], 0  ;;  %s2084_s0 = inlined_call_operand.vmem [shape: f32[2,16,2,96], index: 0, kind: input, shape index: {}]   ;;  %s2085_s1 = inlined_call_operand.vmem [shape: bf16[2,32,96], index: 1, kind: input, shape index: {}]   ;;  %s2086_s2 = inlined_call_operand.vmem [shape: f32[2,1,96], index: 2, kind: input, shape index: {}]   ;;  %s2087_s3 = inlined_call_operand.vmem [shape: f32[2,16,2,32], index: 3, kind: output, shape index: {0}]   ;;  %s2088_s4 = inlined_call_operand.hbm [shape: f32[2,2,32], index: 4, kind: output, shape index: {1}]  }
   0x1   :  { %12 = vsyncpa [#allocation4 + $0x1], 0  ;;  %s1685_s15 = smov 0   ;;  %s1687_s16 = smov 0  }
   0x2   :  { %s1689_s17 = smov 0   ;;  %s1691_s18 = smov 0  }
   0x3   :  { %s1693_s19 = smov 0   ;;  %s1695_s20 = smov 0  }
   0x4   :  { %s1697_s21 = smov 0   ;;  %s1699_s22 = smov 0  }
   0x5 LB: > { %2098 = sst [smem:[#allocation6_spill]] %s1631_s17  ;;  %s1287_s23 = sadd.s32 4294967295, %s1651_s22   ;;  %s1651_s22 = sphi %s1699_s22, %s18_s22   ;;  %s1647_s21 = sphi %s1697_s21, %s2122_s21   ;;  %s1643_s20 = sphi %s1695_s20, %s2118_s20   ;;  %s1639_s19 = sphi %s1693_s19, %s2117_s19   ;;  %s1635_s18 = sphi %s1691_s18, %s2116_s18   ;;  %s1631_s17 = sphi %s1689_s17, %s2115_s17   ;;  %s1627_s16 = sphi %s1687_s16, %s2121_s16   ;;  %s1623_s15 = sphi %s1685_s15, %s2120_s15  }
   0x6   : > { %2099 = sst [smem:[#allocation7_spill]] %s1643_s20  ;;  %s1288_s24 = sadd.s32 4294967294, %s1651_s22  }
   0x7   : > { %2100 = sst [smem:[#allocation8_spill]] %s1647_s21  ;;  %s27_s25 = sadd.s32 1, %s1643_s20 }
   0x8   : > { %p28_p0 = scmp.ge.s32.totalorder %s27_s25, 2  ;;  %s30_s26 = sadd.s32 1, %s1647_s21 }
   0x9   : > { %p171_p1 = scmp.ne.s32.totalorder %s1631_s17, %s1627_s16  ;;  %p172_p2 = scmp.eq.s32.totalorder %s1287_s23, 3 }
   0xa   : > { %s2124_s25 = smov (%p28_p0, %s27_s25), 0  ;;  %s2126_s26 = smov (!%p28_p0, %s30_s26), %s1647_s21 }
   0xb   : > { %2101 = sst [smem:[#allocation9_spill]] %s2124_s25  ;;  %p1734_p3 = por %p172_p2, %p171_p1 }
   0xc   : > { %p177_p4 = scmp.ne.s32.totalorder %s1627_s16, %s1623_s15  ;;  %p32_p5 = scmp.ge.s32.totalorder %s2126_s26, 2 }
   0xd   : > { %p178_p6 = scmp.eq.s32.totalorder %s1288_s24, 3  ;;  %p1295_p7 = scmp.ge.s32.totalorder %s1651_s22, 1 }
   0xe   : > { %p231_p8 = scmp.lt.s32.totalorder %s1651_s22, 5  ;;  %s2128_s26 = smov (%p32_p5, %s2126_s26), 0 }
   0xf   : > { %2103 = sst [smem:[#allocation10_spill]] %s2128_s26  ;;  %p1744_p9 = por %p178_p6, %p177_p4 }
  0x10   : > { %p232_p10 = pnand %p1295_p7, %p231_p8  ;;  %s158_s29 = ssub.s32 %s1647_s21, %s2128_s26 }
  0x11   : > { %s2104_s28 = scalar_select %p1744_p9, 1, 0 }
  0x12   : > { %s161_s30 = sadd.s32 1, %s1631_s17  ;;  %p159_p11 = scmp.eq.s32.totalorder %s158_s29, 0 }
  0x13   : > { %2105 = sst [smem:[#allocation11_spill]] %s2104_s28  ;;  %235 = sbr.rel (%p232_p10) target bundleno = 5506 (0x1582), region = 32 }
  0x14   : > { %s1752_s5 = scalar_select %p159_p11, %s1631_s17, %s161_s30  }
  0x15   : > { %s2089_s6 = sand.u32 (!%p232_p10), 1, %s1627_s16   ;;  %s1297_s7 = sshll.u32 (!%p232_p10), %s1639_s19, 1 }
  0x16   : > { %2106 = sst [smem:[#allocation12_spill]] %s1752_s5  ;;  %s1758_s8 = sshll.u32 (!%p232_p10), %s2089_s6, 1 }
  0x17   : > { %s1760_s9 = ssub.s32 (!%p232_p10), 1, %s1297_s7  ;;  %p291_p12 = scmp.lt.s32.totalorder (!%p232_p10), %s1639_s19, 1 }
  0x18   : > { %s288_s10 = smul.u32 %s1635_s18, %s1760_s9  ;;  %p1307_p0 = scmp.ne.s32.totalorder %s1635_s18, 0 }
  0x19   : > { %s1767_s13 = scalar_select %p291_p12, %s1639_s19, 1 }
  0x1a   : > { %s289_s11 = sadd.s32 %s1639_s19, %s288_s10 }
  0x1b   : > { %s1298_s12 = sshll.u32 %s289_s11, 3  ;;  %s1299_s14 = sshll.u32 %s1767_s13, 4 }
  0x1c   : > { %p293_p13 = scmp.lt.s32.totalorder %s1298_s12, 15  ;;  %s311_s29 = scalar_lea.vmem %s2086_s2, %s1767_s13 }
  0x1d   : > { %s308_s7 = scalar_lea.vmem %s2085_s1, %s1299_s14  ;;  %334 = sbr.rel (%p1307_p0) target bundleno = 36 (0x24), region = 36 }
  0x1e   : > { %s2130_s12 = smov (!%p293_p13, %s1298_s12), 15 }
  0x1f   : > { %s296_s26 = sadd.s32 %s1299_s14, %s2130_s12 }
  0x20   : > { %s1300_s25 = sshll.u32 %s296_s26, 1 }
  0x21   : > { %s1780_s11 = scalar_lea.vmem %s2084_s0, %s1300_s25  ;;  %s1785_s17 = scalar_lea.vmem %s2087_s3, %s1300_s25 }
  0x22   : > { %vm335_vm0 = vcmask 254976   ;;  %v1653_v0 = vmov 0.0  }
  0x23   : > { %336 = vst.msk [vmem:[#allocation2] sm:$0x3] %vm335_vm0, %v1653_v0 }
  0x24 PF: > { %v1789_v1 = vld [vmem:[%s308_s7 + $0x8] sm:$0xff]   ;;  %v1654_v2 = vmov 0.0   ;;  %v1794_v3 = vld [vmem:[%s308_s7] sm:$0xff]   ;;  %vm1655_vm1 = vmmov 0   ;;  %vm366_vm2 = vcmask 261120   ;;  %s1656_s25 = smov 64  }
  0x25   : > { %1368 = vmatprep.subr.bf16.mxu0 %v1654_v2  ;;  %1376 = vmatprep.subr.bf16.mxu1 %v1654_v2  ;;  %v1819_v6 = vld [vmem:[%s311_s29] ss:$0 sm:$0xff]  ;;  %s1308_s26 = smul.u32 14, %s1639_s19  ;;  %s1657_s6 = smov 96   ;;  %vm445_vm3 = vcmask 254976  }
  0x26   : > { %1369 = vmatpush3.bf16.msra.mxu0 %v1789_v1  ;;  %1372 = vmatprep.mubr.msk.bf16.mxu0 %vm1655_vm1, %v1654_v2  ;;  %s1658_s12 = smov 32   ;;  %s1844_s13 = smul.u32 7, %s1639_s19 }
  0x27   : > { %1370 = vmatprep.subr.bf16.mxu0 %v1654_v2  ;;  %1377 = vmatpush3.bf16.msra.mxu1 %v1789_v1  ;;  %s345_s5 = scalar_lea.vmem %s1780_s11, %s1308_s26  ;;  %s1318_s29 = sshll.u32 %s1760_s9, 1 }
  0x28   : > { %1378 = vmatprep.subr.bf16.mxu1 %v1654_v2  ;;  %1380 = vmatprep.mubr.msk.bf16.mxu1 %vm1655_vm1, %v1654_v2  ;;  %v346_v12 = vld [vmem:[%s345_s5] sm:$0x3]  ;;  %s449_s14 = sadd.s32 %s1844_s13, %s1760_s9  ;;  %s1871_s30 = sadd.s32 %s1318_s29, %s1844_s13 }
  0x29   : > { %s1848_s23 = sshll.u32 %s449_s14, 1  ;;  %s1319_s7 = sshll.u32 %s1871_s30, 1 }
  0x2a   : > { %v342_v4 = vld [vmem:[#allocation2] sm:$0x3]  ;;  %1371 = vmatpush3.bf16.msra.mxu0 %v1794_v3  ;;  %s451_s24 = scalar_lea.vmem %s1780_s11, %s1848_s23  ;;  %s535_s10 = scalar_lea.vmem %s1780_s11, %s1319_s7 }
  0x2b   : > { %v347_v5 = vpack.c.bf16 %v342_v4, %v342_v4  ;;  %1379 = vmatpush3.bf16.msra.mxu1 %v1794_v3  ;;  %1384 = vmatprep.subr.bf16.mxu0 %v1654_v2  ;;  %v452_v36 = vld [vmem:[%s451_s24] sm:$0x3]  ;;  %s616_s20 = smul.u32 3, %s1760_s9  ;;  %s1325_s14 = sshll.u32 %s1760_s9, 2 }
  0x2c   : > { %1392 = vmatprep.subr.bf16.mxu1 %v1654_v2  ;;  %v536_v59 = vld [vmem:[%s535_s10] sm:$0x3]  ;;  %s1920_s24 = sadd.s32 %s1325_s14, %s1844_s13  ;;  %p1338_p1 = scmp.ne.s32.totalorder %s1635_s18, 1 }
  0x2d   : > { %1373 = vmatmul.mubr.msk.bf16.vlgmr.msra.gmra.mxu0 %vm366_vm2, %v347_v5  ;;  %s1896_s21 = sadd.s32 %s616_s20, %s1844_s13  ;;  %s2097_s29 = sshll.u32 %s1920_s24, 1 }
  0x2e   : > { %1385 = vmatpush3.bf16.msra.mxu0 %v1789_v1  ;;  %1388 = vmatprep.mubr.msk.bf16.mxu0 %vm1655_vm1, %v1654_v2  ;;  %s1322_s5 = sshll.u32 %s1896_s21, 1  ;;  %s703_s10 = scalar_lea.vmem %s1780_s11, %s2097_s29 }
  0x2f   : > { %1386 = vmatprep.subr.bf16.mxu0 %v1654_v2  ;;  %s784_s20 = smul.u32 5, %s1760_s9  ;;  %s2110_s21 = scalar_lea.vmem (!%p1338_p1), [#allocation3], %s1758_s8 }
  0x32   : > { %1387 = vmatpush3.bf16.msra.mxu0 %v1794_v3 }
  0x33   : > { %1400 = vmatprep.subr.bf16.mxu0 %v1654_v2 }
  0xed   : > { %v404_v7 = vpop.f32.mrf.mxu0 }
  0xee   : > { %v405_v8 = vadd.f32 %v1819_v6, %v404_v7 }
  0xef   : > { %v1374_v9 = vpop.f32.mrf.mxu0 }
  0xf0   : > { %418 = vrot.lane.b32.xlu0 %v405_v8, %s1656_s25  ;;  %v410_v13 = vadd.f32 %v405_v8, %v346_v12 }
  0xf1   : > { %v407_v10 = vpop.f32.mrf.mxu0 }
  0xf2   : > { %v1313_v14 = vmul.f32 -1.442695, %v410_v13 }
  0xf3   : > { %v1375_v11 = vpop.f32.mrf.mxu0 }
  0xf4   : > { %1511 = vpow2.f32 %v1313_v14 }
 0x101   : > { %v1512_v15 = vpop.eup %1511 }
 0x102   : > { %v414_v16 = vadd.f32 1.0, %v1512_v15 }
 0x104   : > { %1513 = vrcp.f32 %v414_v16 }
 0x111   : > { %v1514_v17 = vpop.eup %1513 }
 0x112   : > { %v428_v24 = vsub.f32 1.0, %v1514_v17 }
 0x162   : > { %v419_v18 = vpop.permute.xlu0 %418 }
 0x163   : > { %v421_v19 = vmul.f32 %v1514_v17, %v419_v18 }
 0x165   : > { %423 = vrot.lane.b32.xlu0 %v421_v19, %s1656_s25 }
 0x1d7   : > { %v424_v20 = vpop.permute.xlu0 %423 }
 0x1d8   : > { %v426_v21 = vadd.f32 %v424_v20, %v346_v12 }
 0x1da   : > { %1515 = vtanh.f32 %v426_v21 }
 0x1e7   : > { %v1516_v22 = vpop.eup %1515 }
 0x1e8   : > { %430 = vrot.lane.b32.xlu1 %v1516_v22, %s1657_s6 }
 0x1ec   : > { %435 = vrot.lane.b32.xlu1 %v342_v4, %s1658_s12  ;;  %s619_s12 = scalar_lea.vmem %s1780_s11, %s1322_s5 }
 0x1ed   : > { %v620_v22 = vld [vmem:[%s619_s12] sm:$0x3]  ;;  %s1944_s12 = sadd.s32 %s784_s20, %s1844_s13  ;;  %s868_s20 = smul.u32 6, %s1760_s9 }
 0x1ee   : > { %s2095_s14 = sshll.u32 %s1944_s12, 1 }
 0x25a   : > { %v431_v23 = vpop.permute.xlu1 %430 }
 0x25b   : > { %v433_v26 = vmul.f32 %v431_v23, %v428_v24 }
 0x25e   : > { %v436_v25 = vpop.permute.xlu1 %435 }
 0x25f   : > { %v438_v27 = vmul.f32 %v1514_v17, %v436_v25 }
 0x261   : > { %v1829_v28 = vadd.f32 %v438_v27, %v433_v26 }
 0x263   : > { %v453_v29 = vpack.c.bf16 %v1829_v28, %v1829_v28 }
 0x265   : > { %455 = vrot.lane.b32.xlu0 %v453_v29, %s1657_s6 }
 0x2d7   : > { %v456_v30 = vpop.permute.xlu0 %455 }
 0x2d8   : > { %1381 = vmatmul.mubr.msk.bf16.vlgmr.msra.gmra.mxu1 %vm366_vm2, %v456_v30 }
 0x2d9   : > { %1393 = vmatpush3.bf16.msra.mxu1 %v1789_v1  ;;  %1396 = vmatprep.mubr.msk.bf16.mxu1 %vm1655_vm1, %v1654_v2 }
 0x2da   : > { %1394 = vmatprep.subr.bf16.mxu1 %v1654_v2 }
 0x2dd   : > { %1395 = vmatpush3.bf16.msra.mxu1 %v1794_v3 }
 0x2de   : > { %1408 = vmatprep.subr.bf16.mxu1 %v1654_v2 }
 0x398   : > { %v494_v31 = vpop.f32.mrf.mxu1 }
 0x399   : > { %v495_v32 = vadd.f32 %v1819_v6, %v494_v31 }
 0x39a   : > { %v1382_v33 = vpop.f32.mrf.mxu1 }
 0x39b   : > { %508 = vrot.lane.b32.xlu1 %v495_v32, %s1656_s25  ;;  %v500_v37 = vadd.f32 %v495_v32, %v452_v36 }
 0x39c   : > { %v497_v34 = vpop.f32.mrf.mxu1 }
 0x39d   : > { %v1317_v38 = vmul.f32 -1.442695, %v500_v37 }
 0x39e   : > { %v1383_v35 = vpop.f32.mrf.mxu1 }
 0x39f   : > { %1517 = vpow2.f32 %v1317_v38 }
 0x3ac   : > { %v1518_v39 = vpop.eup %1517 }
 0x3ad   : > { %v504_v40 = vadd.f32 1.0, %v1518_v39 }
 0x3af   : > { %1519 = vrcp.f32 %v504_v40 }
 0x3bc   : > { %v1520_v41 = vpop.eup %1519 }
 0x3bd   : > { %v518_v47 = vsub.f32 1.0, %v1520_v41  ;;  %v524_v49 = vmul.f32 %v1520_v41, %v1829_v28 }
 0x40d   : > { %v509_v42 = vpop.permute.xlu1 %508 }
 0x40e   : > { %v511_v43 = vmul.f32 %v1520_v41, %v509_v42 }
 0x410   : > { %513 = vrot.lane.b32.xlu0 %v511_v43, %s1656_s25 }
 0x482   : > { %v514_v44 = vpop.permute.xlu0 %513 }
 0x483   : > { %v516_v45 = vadd.f32 %v514_v44, %v452_v36 }
 0x485   : > { %1521 = vtanh.f32 %v516_v45 }
 0x492   : > { %v1522_v46 = vpop.eup %1521 }
 0x493   : > { %520 = vrot.lane.b32.xlu1 %v1522_v46, %s1657_s6  ;;  %v704_v46 = vld [vmem:[%s703_s10] sm:$0x3]  ;;  %s787_s10 = scalar_lea.vmem %s1780_s11, %s2095_s14 }
 0x505   : > { %v521_v48 = vpop.permute.xlu1 %520 }
 0x506   : > { %v523_v50 = vmul.f32 %v521_v48, %v518_v47 }
 0x508   : > { %v1855_v51 = vadd.f32 %v524_v49, %v523_v50 }
 0x50a   : > { %v537_v52 = vpack.c.bf16 %v1855_v51, %v1855_v51 }
 0x50c   : > { %539 = vrot.lane.b32.xlu0 %v537_v52, %s1657_s6 }
 0x57e   : > { %v540_v53 = vpop.permute.xlu0 %539 }
 0x57f   : > { %1389 = vmatmul.mubr.msk.bf16.vlgmr.msra.gmra.mxu0 %vm366_vm2, %v540_v53 }
 0x580   : > { %1401 = vmatpush3.bf16.msra.mxu0 %v1789_v1  ;;  %1404 = vmatprep.mubr.msk.bf16.mxu0 %vm1655_vm1, %v1654_v2 }
 0x581   : > { %1402 = vmatprep.subr.bf16.mxu0 %v1654_v2 }
 0x584   : > { %1403 = vmatpush3.bf16.msra.mxu0 %v1794_v3 }
 0x585   : > { %1416 = vmatprep.subr.bf16.mxu0 %v1654_v2 }
 0x63f   : > { %v578_v54 = vpop.f32.mrf.mxu0 }
 0x640   : > { %v579_v55 = vadd.f32 %v1819_v6, %v578_v54 }
 0x641   : > { %v1390_v56 = vpop.f32.mrf.mxu0 }
 0x642   : > { %592 = vrot.lane.b32.xlu1 %v579_v55, %s1656_s25  ;;  %v584_v60 = vadd.f32 %v579_v55, %v536_v59 }
 0x643   : > { %v581_v57 = vpop.f32.mrf.mxu0 }
 0x644   : > { %v1321_v61 = vmul.f32 -1.442695, %v584_v60 }
 0x645   : > { %v1391_v58 = vpop.f32.mrf.mxu0 }
 0x646   : > { %1523 = vpow2.f32 %v1321_v61 }
 0x653   : > { %v1524_v62 = vpop.eup %1523 }
 0x654   : > { %v588_v63 = vadd.f32 1.0, %v1524_v62 }
 0x656   : > { %1525 = vrcp.f32 %v588_v63 }
 0x663   : > { %v1526_v0 = vpop.eup %1525 }
 0x664   : > { %v602_v10 = vsub.f32 1.0, %v1526_v0  ;;  %v608_v12 = vmul.f32 %v1526_v0, %v1855_v51 }
 0x6b4   : > { %v593_v4 = vpop.permute.xlu1 %592 }
 0x6b5   : > { %v595_v5 = vmul.f32 %v1526_v0, %v593_v4 }
 0x6b7   : > { %597 = vrot.lane.b32.xlu0 %v595_v5, %s1656_s25 }
 0x729   : > { %v598_v7 = vpop.permute.xlu0 %597 }
 0x72a   : > { %v600_v8 = vadd.f32 %v598_v7, %v536_v59 }
 0x72c   : > { %1527 = vtanh.f32 %v600_v8 }
 0x739   : > { %v1528_v9 = vpop.eup %1527 }
 0x73a   : > { %604 = vrot.lane.b32.xlu1 %v1528_v9, %s1657_s6 }
 0x7ac   : > { %v605_v11 = vpop.permute.xlu1 %604 }
 0x7ad   : > { %v607_v13 = vmul.f32 %v605_v11, %v602_v10 }
 0x7af   : > { %v1880_v14 = vadd.f32 %v608_v12, %v607_v13 }
 0x7b1   : > { %v621_v15 = vpack.c.bf16 %v1880_v14, %v1880_v14 }
 0x7b3   : > { %623 = vrot.lane.b32.xlu0 %v621_v15, %s1657_s6 }
 0x825   : > { %v624_v16 = vpop.permute.xlu0 %623 }
 0x826   : > { %1397 = vmatmul.mubr.msk.bf16.vlgmr.msra.gmra.mxu1 %vm366_vm2, %v624_v16 }
 0x827   : > { %1409 = vmatpush3.bf16.msra.mxu1 %v1789_v1  ;;  %1412 = vmatprep.mubr.msk.bf16.mxu1 %vm1655_vm1, %v1654_v2 }
 0x828   : > { %1410 = vmatprep.subr.bf16.mxu1 %v1654_v2 }
 0x82b   : > { %1411 = vmatpush3.bf16.msra.mxu1 %v1794_v3 }
 0x82c   : > { %1424 = vmatprep.subr.bf16.mxu1 %v1654_v2 }
 0x8e6   : > { %v662_v17 = vpop.f32.mrf.mxu1 }
 0x8e7   : > { %v663_v18 = vadd.f32 %v1819_v6, %v662_v17 }
 0x8e8   : > { %v1398_v19 = vpop.f32.mrf.mxu1 }
 0x8e9   : > { %676 = vrot.lane.b32.xlu1 %v663_v18, %s1656_s25  ;;  %v668_v23 = vadd.f32 %v663_v18, %v620_v22 }
 0x8ea   : > { %v665_v20 = vpop.f32.mrf.mxu1 }
 0x8eb   : > { %v1324_v24 = vmul.f32 -1.442695, %v668_v23 }
 0x8ec   : > { %v1399_v21 = vpop.f32.mrf.mxu1 }
 0x8ed   : > { %1529 = vpow2.f32 %v1324_v24 }
 0x8fa   : > { %v1530_v25 = vpop.eup %1529 }
 0x8fb   : > { %v672_v26 = vadd.f32 1.0, %v1530_v25 }
 0x8fd   : > { %1531 = vrcp.f32 %v672_v26 }
 0x90a   : > { %v1532_v27 = vpop.eup %1531 }
 0x90b   : > { %v686_v34 = vsub.f32 1.0, %v1532_v27  ;;  %v692_v36 = vmul.f32 %v1532_v27, %v1880_v14 }
 0x95b   : > { %v677_v29 = vpop.permute.xlu1 %676 }
 0x95c   : > { %v679_v30 = vmul.f32 %v1532_v27, %v677_v29 }
 0x95e   : > { %681 = vrot.lane.b32.xlu0 %v679_v30, %s1656_s25 }
 0x9d0   : > { %v682_v31 = vpop.permute.xlu0 %681 }
 0x9d1   : > { %v684_v32 = vadd.f32 %v682_v31, %v620_v22 }
 0x9d3   : > { %1533 = vtanh.f32 %v684_v32 }
 0x9e0   : > { %v1534_v33 = vpop.eup %1533 }
 0x9e1   : > { %688 = vrot.lane.b32.xlu1 %v1534_v33, %s1657_s6 }
 0xa53   : > { %v689_v35 = vpop.permute.xlu1 %688 }
 0xa54   : > { %v691_v37 = vmul.f32 %v689_v35, %v686_v34 }
 0xa56   : > { %v1905_v38 = vadd.f32 %v692_v36, %v691_v37 }
 0xa58   : > { %v705_v39 = vpack.c.bf16 %v1905_v38, %v1905_v38 }
 0xa5a   : > { %707 = vrot.lane.b32.xlu0 %v705_v39, %s1657_s6 }
 0xacc   : > { %v708_v40 = vpop.permute.xlu0 %707 }
 0xacd   : > { %1405 = vmatmul.mubr.msk.bf16.vlgmr.msra.gmra.mxu0 %vm366_vm2, %v708_v40 }
 0xace   : > { %1417 = vmatpush3.bf16.msra.mxu0 %v1789_v1  ;;  %1420 = vmatprep.mubr.msk.bf16.mxu0 %vm1655_vm1, %v1654_v2 }
 0xacf   : > { %1418 = vmatprep.subr.bf16.mxu0 %v1654_v2 }
 0xad2   : > { %1419 = vmatpush3.bf16.msra.mxu0 %v1794_v3 }
 0xb8d   : > { %v746_v41 = vpop.f32.mrf.mxu0 }
 0xb8e   : > { %v747_v42 = vadd.f32 %v1819_v6, %v746_v41 }
 0xb8f   : > { %v1406_v43 = vpop.f32.mrf.mxu0 }
 0xb90   : > { %760 = vrot.lane.b32.xlu1 %v747_v42, %s1656_s25  ;;  %v752_v47 = vadd.f32 %v747_v42, %v704_v46 }
 0xb91   : > { %v749_v44 = vpop.f32.mrf.mxu0 }
 0xb92   : > { %v1328_v48 = vmul.f32 -1.442695, %v752_v47 }
 0xb93   : > { %v1407_v45 = vpop.f32.mrf.mxu0 }
 0xb94   : > { %1535 = vpow2.f32 %v1328_v48 }
 0xba1   : > { %v1536_v49 = vpop.eup %1535 }
 0xba2   : > { %v756_v50 = vadd.f32 1.0, %v1536_v49 }
 0xba4   : > { %1537 = vrcp.f32 %v756_v50 }
 0xbb1   : > { %v1538_v52 = vpop.eup %1537 }
 0xbb2   : > { %v770_v58 = vsub.f32 1.0, %v1538_v52  ;;  %v776_v60 = vmul.f32 %v1538_v52, %v1905_v38 }
 0xc02   : > { %v761_v53 = vpop.permute.xlu1 %760 }
 0xc03   : > { %v763_v54 = vmul.f32 %v1538_v52, %v761_v53 }
 0xc05   : > { %765 = vrot.lane.b32.xlu0 %v763_v54, %s1656_s25 }
 0xc77   : > { %v766_v55 = vpop.permute.xlu0 %765 }
 0xc78   : > { %v768_v56 = vadd.f32 %v766_v55, %v704_v46 }
 0xc7a   : > { %1539 = vtanh.f32 %v768_v56 }
 0xc87   : > { %v1540_v57 = vpop.eup %1539 }
 0xc88   : > { %772 = vrot.lane.b32.xlu1 %v1540_v57, %s1657_s6 }
 0xcfa   : > { %v773_v59 = vpop.permute.xlu1 %772 }
 0xcfb   : > { %v775_v61 = vmul.f32 %v773_v59, %v770_v58 }
 0xcfd   : > { %v1929_v62 = vadd.f32 %v776_v60, %v775_v61 }
 0xcff   : > { %v789_v63 = vpack.c.bf16 %v1929_v62, %v1929_v62 }
 0xd01   : > { %791 = vrot.lane.b32.xlu0 %v789_v63, %s1657_s6 }
 0xd73   : > { %v792_v0 = vpop.permute.xlu0 %791 }
 0xd74   : > { %1413 = vmatmul.mubr.msk.bf16.vlgmr.msra.gmra.mxu1 %vm366_vm2, %v792_v0 }
 0xd75   : > { %1425 = vmatpush3.bf16.msra.mxu1 %v1789_v1  ;;  %1428 = vmatprep.mubr.msk.bf16.mxu1 %vm1655_vm1, %v1654_v2  ;;  %v788_v1 = vld [vmem:[%s787_s10] sm:$0x3]  ;;  %s1963_s10 = sadd.s32 %s868_s20, %s1844_s13 }
 0xd76   : > { %1426 = vmatprep.subr.bf16.mxu1 %v1654_v2  ;;  %s2096_s28 = sshll.u32 %s1963_s10, 1 }
 0xd77   : > { %s871_s14 = scalar_lea.vmem %s1780_s11, %s2096_s28 }
 0xd78   : > { %v872_v32 = vld [vmem:[%s871_s14] sm:$0x3]  ;;  %s952_s14 = smul.u32 7, %s1760_s9  ;;  %s444_s9 = scalar_lea.vmem %s1785_s17, %s1308_s26 }
 0xd79   : > { %1427 = vmatpush3.bf16.msra.mxu1 %v1794_v3  ;;  %s698_s26 = scalar_lea.vmem %s1785_s17, %s1322_s5 }
 0xd7a   : > { %s1978_s20 = sadd.s32 %s952_s14, %s1844_s13  ;;  %s2107_s13 = sshll.u32 %s1920_s24, 1 }
 0xd7b   : > { %s1335_s28 = sshll.u32 %s1978_s20, 1 }
 0xd7c   : > { %s955_s29 = scalar_lea.vmem %s1780_s11, %s1335_s28  ;;  %s530_s11 = scalar_lea.vmem %s1785_s17, %s1848_s23 }
 0xd7d   : > { %v956_v57 = vld [vmem:[%s955_s29] sm:$0x3]  ;;  %s782_s29 = scalar_lea.vmem %s1785_s17, %s2107_s13  ;;  %s2108_s23 = sshll.u32 %s1944_s12, 1 }
 0xd7e   : > { %s866_s30 = scalar_lea.vmem %s1785_s17, %s2108_s23 }
 0xe34   : > { %v830_v4 = vpop.f32.mrf.mxu1 }
 0xe35   : > { %v831_v5 = vadd.f32 %v1819_v6, %v830_v4 }
 0xe36   : > { %v1414_v7 = vpop.f32.mrf.mxu1 }
 0xe37   : > { %844 = vrot.lane.b32.xlu1 %v831_v5, %s1656_s25  ;;  %v836_v2 = vadd.f32 %v831_v5, %v788_v1 }
 0xe38   : > { %v833_v8 = vpop.f32.mrf.mxu1 }
 0xe39   : > { %v1331_v10 = vmul.f32 -1.442695, %v836_v2 }
 0xe3a   : > { %v1415_v9 = vpop.f32.mrf.mxu1 }
 0xe3b   : > { %1541 = vpow2.f32 %v1331_v10 }
 0xe48   : > { %v1542_v3 = vpop.eup %1541 }
 0xe49   : > { %v840_v11 = vadd.f32 1.0, %v1542_v3 }
 0xe4b   : > { %1543 = vrcp.f32 %v840_v11 }
 0xe58   : > { %v1544_v12 = vpop.eup %1543 }
 0xe59   : > { %v854_v19 = vsub.f32 1.0, %v1544_v12  ;;  %v860_v21 = vmul.f32 %v1544_v12, %v1929_v62 }
 0xea9   : > { %v845_v13 = vpop.permute.xlu1 %844 }
 0xeaa   : > { %v847_v15 = vmul.f32 %v1544_v12, %v845_v13 }
 0xeac   : > { %849 = vrot.lane.b32.xlu0 %v847_v15, %s1656_s25 }
 0xf1e   : > { %v850_v16 = vpop.permute.xlu0 %849 }
 0xf1f   : > { %v852_v17 = vadd.f32 %v850_v16, %v788_v1 }
 0xf21   : > { %1545 = vtanh.f32 %v852_v17 }
 0xf2e   : > { %v1546_v18 = vpop.eup %1545 }
 0xf2f   : > { %856 = vrot.lane.b32.xlu1 %v1546_v18, %s1657_s6 }
 0xfa1   : > { %v857_v20 = vpop.permute.xlu1 %856 }
 0xfa2   : > { %v859_v22 = vmul.f32 %v857_v20, %v854_v19 }
 0xfa4   : > { %v1953_v23 = vadd.f32 %v860_v21, %v859_v22 }
 0xfa6   : > { %v873_v24 = vpack.c.bf16 %v1953_v23, %v1953_v23 }
 0xfa8   : > { %875 = vrot.lane.b32.xlu0 %v873_v24, %s1657_s6 }
0x101a   : > { %v876_v25 = vpop.permute.xlu0 %875 }
0x101b   : > { %1421 = vmatmul.mubr.msk.bf16.vlgmr.msra.gmra.mxu0 %vm366_vm2, %v876_v25 }
0x10db   : > { %v914_v26 = vpop.f32.mrf.mxu0 }
0x10dc   : > { %v915_v27 = vadd.f32 %v1819_v6, %v914_v26 }
0x10dd   : > { %v1422_v29 = vpop.f32.mrf.mxu0 }
0x10de   : > { %928 = vrot.lane.b32.xlu1 %v915_v27, %s1656_s25  ;;  %v920_v33 = vadd.f32 %v915_v27, %v872_v32 }
0x10df   : > { %v917_v30 = vpop.f32.mrf.mxu0 }
0x10e0   : > { %v1334_v34 = vmul.f32 -1.442695, %v920_v33 }
0x10e1   : > { %v1423_v31 = vpop.f32.mrf.mxu0 }
0x10e2   : > { %1547 = vpow2.f32 %v1334_v34 }
0x10ef   : > { %v1548_v35 = vpop.eup %1547 }
0x10f0   : > { %v924_v36 = vadd.f32 1.0, %v1548_v35 }
0x10f2   : > { %1549 = vrcp.f32 %v924_v36 }
0x10ff   : > { %v1550_v37 = vpop.eup %1549 }
0x1100   : > { %v938_v44 = vsub.f32 1.0, %v1550_v37  ;;  %v944_v46 = vmul.f32 %v1550_v37, %v1953_v23 }
0x1150   : > { %v929_v39 = vpop.permute.xlu1 %928 }
0x1151   : > { %v931_v40 = vmul.f32 %v1550_v37, %v929_v39 }
0x1153   : > { %933 = vrot.lane.b32.xlu0 %v931_v40, %s1656_s25 }
0x11c5   : > { %v934_v41 = vpop.permute.xlu0 %933 }
0x11c6   : > { %v936_v42 = vadd.f32 %v934_v41, %v872_v32 }
0x11c8   : > { %1551 = vtanh.f32 %v936_v42 }
0x11d5   : > { %v1552_v43 = vpop.eup %1551 }
0x11d6   : > { %940 = vrot.lane.b32.xlu1 %v1552_v43, %s1657_s6 }
0x1248   : > { %v941_v45 = vpop.permute.xlu1 %940 }
0x1249   : > { %v943_v47 = vmul.f32 %v941_v45, %v938_v44 }
0x124b   : > { %v945_v48 = vadd.f32 %v944_v46, %v943_v47 }
0x124d   : > { %v957_v49 = vpack.c.bf16 %v945_v48, %v945_v48 }
0x124f   : > { %959 = vrot.lane.b32.xlu0 %v957_v49, %s1657_s6 }
0x12c1   : > { %v960_v50 = vpop.permute.xlu0 %959 }
0x12c2   : > { %1429 = vmatmul.mubr.msk.bf16.vlgmr.msra.gmra.mxu1 %vm366_vm2, %v960_v50 }
0x1382   : > { %v998_v52 = vpop.f32.mrf.mxu1 }
0x1383   : > { %v999_v53 = vadd.f32 %v1819_v6, %v998_v52 }
0x1384   : > { %v1430_v54 = vpop.f32.mrf.mxu1 }
0x1385   : > { %1012 = vrot.lane.b32.xlu1 %v999_v53, %s1656_s25  ;;  %v1004_v58 = vadd.f32 %v999_v53, %v956_v57 }
0x1386   : > { %v1001_v55 = vpop.f32.mrf.mxu1 }
0x1387   : > { %v1337_v59 = vmul.f32 -1.442695, %v1004_v58 }
0x1388   : > { %v1431_v56 = vpop.f32.mrf.mxu1 }
0x1389   : > { %1553 = vpow2.f32 %v1337_v59 }
0x1396   : > { %v1554_v6 = vpop.eup %1553 }
0x1397   : > { %v1008_v60 = vadd.f32 1.0, %v1554_v6 }
0x1399   : > { %1555 = vrcp.f32 %v1008_v60 }
0x13a6   : > { %v1556_v61 = vpop.eup %1555 }
0x13a7   : > { %v1028_v9 = vmul.f32 %v1556_v61, %v945_v48 }
0x13f7   : > { %v1013_v63 = vpop.permute.xlu1 %1012 }
0x13f8   : > { %v1015_v0 = vmul.f32 %v1556_v61, %v1013_v63 }
0x13fa   : > { %1017 = vrot.lane.b32.xlu0 %v1015_v0, %s1656_s25  ;;  %s614_s25 = scalar_lea.vmem %s1785_s17, %s1319_s7  ;;  %s2109_s7 = sshll.u32 %s1963_s10, 1 }
0x13fb   : > { %s950_s14 = scalar_lea.vmem %s1785_s17, %s2109_s7 }
0x13fe   : > { %441 = vrot.lane.b32.xlu0 %v1829_v28, %s1657_s6 }
0x1402   : > { %611 = vrot.lane.b32.xlu0 %v1880_v14, %s1657_s6  ;;  %v1022_v14 = vsub.f32 1.0, %v1556_v61 }
0x1406   : > { %779 = vrot.lane.b32.xlu0 %v1929_v62, %s1657_s6 }
0x140a   : > { %947 = vrot.lane.b32.xlu0 %v945_v48, %s1657_s6 }
0x146c   : > { %v1018_v4 = vpop.permute.xlu0 %1017 }
0x146d   : > { %v1020_v5 = vadd.f32 %v1018_v4, %v956_v57 }
0x146f   : > { %1557 = vtanh.f32 %v1020_v5 }
0x1470   : > { %v442_v7 = vpop.permute.xlu0 %441 }
0x1471   : > { %446 = vst.msk [vmem:[%s444_s9] sm:$0x3] %vm445_vm3, %v442_v7 }
0x1474   : > { %v612_v8 = vpop.permute.xlu0 %611 }
0x147c   : > { %v1558_v28 = vpop.eup %1557 }
0x147d   : > { %1024 = vrot.lane.b32.xlu1 %v1558_v28, %s1657_s6 }
0x1481   : > { %527 = vrot.lane.b32.xlu1 %v1855_v51, %s1657_s6 }
0x1485   : > { %695 = vrot.lane.b32.xlu1 %v1905_v38, %s1657_s6  ;;  %v780_v38 = vpop.permute.xlu0 %779 }
0x1489   : > { %863 = vrot.lane.b32.xlu1 %v1953_v23, %s1657_s6  ;;  %v948_v11 = vpop.permute.xlu0 %947 }
0x14ef   : > { %v1025_v62 = vpop.permute.xlu1 %1024 }
0x14f0   : > { %v1027_v1 = vmul.f32 %v1025_v62, %v1022_v14 }
0x14f2   : > { %v1029_v51 = vadd.f32 %v1028_v9, %v1027_v1 }
0x14f3   : > { %v528_v2 = vpop.permute.xlu1 %527 }
0x14f4   : > { %531 = vst.msk [vmem:[%s530_s11] sm:$0x3] %vm445_vm3, %v528_v2  ;;  %1031 = vrot.lane.b32.xlu1 %v1029_v51, %s1657_s6  ;;  %s1034_s6 = scalar_lea.vmem %s1785_s17, %s1335_s28 }
0x14f5   : > { %615 = vst.msk [vmem:[%s614_s25] sm:$0x3] %vm445_vm3, %v612_v8 }
0x14f7   : > { %v696_v10 = vpop.permute.xlu1 %695 }
0x14f8   : > { %699 = vst.msk [vmem:[%s698_s26] sm:$0x3] %vm445_vm3, %v696_v10 }
0x14f9   : > { %783 = vst.msk [vmem:[%s782_s29] sm:$0x3] %vm445_vm3, %v780_v38 }
0x14fb   : > { %v864_v3 = vpop.permute.xlu1 %863 }
0x14fc   : > { %867 = vst.msk [vmem:[%s866_s30] sm:$0x3] %vm445_vm3, %v864_v3 }
0x14fd   : > { %951 = vst.msk [vmem:[%s950_s14] sm:$0x3] %vm445_vm3, %v948_v11 }
0x1563   : > { %1040 = sbr.rel (%p1338_p1) target bundleno = 5481 (0x1569), region = 40 }
0x1566   : > { %v1032_v12 = vpop.permute.xlu1 %1031 }
0x1567   : > { %1035 = vst.msk [vmem:[%s1034_s6] sm:$0x3] %vm445_vm3, %v1032_v12  ;;  %1036 = vst.msk [vmem:[#allocation2] sm:$0x3] %vm445_vm3, %v1032_v12 }
0x1568   : > { %1041 = vst.msk [vmem:[%s2110_s21] sm:$0x3] %vm445_vm3, %v1032_v12 }
0x1569 PF: > { %s1340_s5 = sshll.u32 %s1639_s19, 5  ;;  %s2111_s12 = scalar_lea.vmem [#allocation3], %s1758_s8 }
0x156a   : > { %s1075_s28 = scalar_lea.hbm %s2088_s4, %s1340_s5  ;;  %s1077_s10 = sshll.u32 %s2111_s12, 4  ;;  %s1078_s10 = int_to_ptr.vmem [resolvable:$true] %s1077_s10 }
0x156b   : > { %s2112_s20 = sand.u32 1, %s1627_s16   ;;  %s1559_s9 = scalar_lea.vmem %s1078_s10, 32 }
0x156c   : > { %s1056_s18 = scalar_lea.sflag [#allocation4], %s2112_s20  ;;  %p1560_p2 = scmp.ne.s32.totalorder %s1078_s10, %s1559_s9 }
0x156d   : > { %s1659_s11 = smov [#allocation3]  }
0x156e   : > { %p1561_p4 = pnand %p1560_p2, %p1734_p3  ;;  %s1563_s25 = sshll.u32 %s1659_s11, 4  ;;  %s1564_s25 = int_to_ptr.vmem [resolvable:$false] %s1563_s25 }
0x156f   : > { %s1565_s26 = scalar_lea.vmem %s1564_s25, 64  ;;  %p1566_p6 = scmp.lt.s32.totalorder %s1078_s10, %s1564_s25 }
0x1570   : > { %p1562_p5 = pneg %p1561_p4  ;;  %p1567_p7 = scmp.lt.s32.totalorder %s1565_s26, %s1559_s9 }
0x1572   : > { %p1568_p8 = por %p1567_p7, %p1566_p6 }
0x1574   : > { %p1569_p10 = pnand %p1568_p8, %p1562_p5 }
0x1576   : > { %1572 = shalt.err (!%p1569_p10)
}
0x1577   : > { %s1573_s19 = scalar_lea.hbm %s1075_s28, 32  ;;  %s1577_s29 = scalar_lea.hbm %s2088_s4, 64 }
0x1578   : > { %p1574_p11 = scmp.ne.s32.totalorder %s1075_s28, %s1573_s19  ;;  %p1578_p0 = scmp.lt.s32.totalorder %s1075_s28, %s2088_s4 }
0x1579   : > { %p1579_p1 = scmp.lt.s32.totalorder %s1577_s29, %s1573_s19 }
0x157a   : > { %p1575_p12 = pnand %p1574_p11, %p1734_p3 }
0x157b   : > { %p1580_p2 = por %p1579_p1, %p1578_p0 }
0x157c   : > { %p1576_p13 = pneg %p1575_p12 }
0x157e   : > { %p1581_p4 = pnand %p1580_p2, %p1576_p13 }
0x1580   : > { %1584 = shalt.err (!%p1581_p4)
}
0x1581   : > { %1432 = dma.vmem_to_hbm [thread:$0]  (%p1734_p3), %s1078_s10, 32, %s1075_s28, %s1056_s18  }
0x1582 PF: > { %p1438_p5 = scmp.ge.s32.totalorder %s1651_s22, 2  ;;  %s1105_s14 = sand.u32 1, %s1623_s15  }
0x1583   : > { %s1106_s6 = scalar_lea.sflag [#allocation4], %s1105_s14 }
0x1584   : > { %p1435_p6 = pnand %p1438_p5, %p1744_p9 }
0x1586   : > { %p1436_p7 = pneg %p1435_p6 }
0x1588   : > { %1618 = dma.done.wait (%p1436_p7), %s1106_s6, 32  }
0x1589   : > { %1620 = vsyncadd (%p1436_p7), %s1106_s6, 4294967264  ;;  %s18_s22 = sadd.s32 1, %s1651_s22   ;;  %s2114_s21 = sld [smem:[#allocation6_spill]] }
0x158a   : > { %p15_p8 = scmp.ge.s32.totalorder %s18_s22, 6   ;;  %s2115_s17 = sld [smem:[#allocation12_spill]] }
0x158b   : > { %s2116_s18 = sld [smem:[#allocation7_spill]]  ;;  %s2120_s15 = smov %s1627_s16 }
0x158c   : > { %s2117_s19 = sld [smem:[#allocation8_spill]] }
0x158d   : > { %s2118_s20 = sld [smem:[#allocation9_spill]] }
0x158e   : > { %s2119_s27 = sld [smem:[#allocation10_spill]] }
0x158f   : > { %s2121_s16 = smov %s2114_s21 }
0x1590   :  { %17 = sbr.rel (!%p15_p8) target bundleno = 5 (0x5), region = 109 }
0x1594   : > { %s2122_s21 = smov %s2119_s27 }
0x1595   :  { %1111 = vsyncpa [#allocation4], 1 }
0x1596   :  { %1113 = vsyncpa [#allocation4 + $0x1], 1 }

// kernel: bert_gru_sentiment_forward.26
= control target key start
LH: loop header
LB: loop body
LE: loop exit
PB: predicated region body
PF: predicated region fallthrough
CT: control target
= control target key end

     0   :  { %10 = vsyncpa [#allocation4], 0  ;;  %s2077_s0 = inlined_call_operand.vmem [shape: f32[2,16,2,96], index: 0, kind: input, shape index: {}]   ;;  %s2078_s1 = inlined_call_operand.vmem [shape: bf16[2,32,96], index: 1, kind: input, shape index: {}]   ;;  %s2079_s2 = inlined_call_operand.vmem [shape: f32[2,1,96], index: 2, kind: input, shape index: {}]   ;;  %s2080_s3 = inlined_call_operand.hbm [shape: f32[2,16,2,32], index: 3, kind: output, shape index: {0}]   ;;  %s2081_s4 = inlined_call_operand.vmem [shape: f32[2,2,32], index: 4, kind: output, shape index: {1}]  }
   0x1   :  { %12 = vsyncpa [#allocation4 + $0x1], 0  ;;  %s1651_s15 = smov 0   ;;  %s1653_s16 = smov 0  }
   0x2   :  { %s1655_s17 = smov 0   ;;  %s1657_s18 = smov 0  }
   0x3   :  { %s1659_s19 = smov 0   ;;  %s1661_s20 = smov 0  }
   0x4   :  { %s1663_s21 = smov 0   ;;  %s1665_s22 = smov 0  }
   0x5 LB: > { %2094 = sst [smem:[#allocation6_spill]] %s1588_s15  ;;  %s1251_s23 = sadd.s32 4294967295, %s1616_s22   ;;  %s1616_s22 = sphi %s1665_s22, %s18_s22   ;;  %s1612_s21 = sphi %s1663_s21, %s2116_s21   ;;  %s1608_s20 = sphi %s1661_s20, %s2115_s20   ;;  %s1604_s19 = sphi %s1659_s19, %s2114_s19   ;;  %s1600_s18 = sphi %s1657_s18, %s2113_s18   ;;  %s1596_s17 = sphi %s1655_s17, %s2112_s17   ;;  %s1592_s16 = sphi %s1653_s16, %s2118_s16   ;;  %s1588_s15 = sphi %s1651_s15, %s2117_s15  }
   0x6   : > { %2095 = sst [smem:[#allocation7_spill]] %s1596_s17  ;;  %s27_s24 = sadd.s32 1, %s1608_s20 }
   0x7   : > { %2096 = sst [smem:[#allocation8_spill]] %s1608_s20  ;;  %s30_s25 = sadd.s32 1, %s1612_s21 }
   0x8   : > { %2097 = sst [smem:[#allocation9_spill]] %s1612_s21  ;;  %p28_p0 = scmp.ge.s32.totalorder %s27_s24, 2 }
   0x9   : > { %s1255_s26 = sshll.u32 %s1612_s21, 1  ;;  %s1252_s27 = sadd.s32 4294967294, %s1616_s22  }
   0xa   : > { %s123_s28 = ssub.s32 1, %s1255_s26  ;;  %s2120_s24 = smov (%p28_p0, %s27_s24), 0 }
   0xb   : > { %2098 = sst [smem:[#allocation10_spill]] %s2120_s24  ;;  %s2122_s25 = smov (!%p28_p0, %s30_s25), %s1612_s21 }
   0xc   : > { %s124_s29 = smul.u32 %s1608_s20, %s123_s28  ;;  %p145_p1 = scmp.ne.s32.totalorder %s1596_s17, %s1592_s16 }
   0xd   : > { %p32_p2 = scmp.ge.s32.totalorder %s2122_s25, 2  ;;  %p146_p3 = scmp.eq.s32.totalorder %s1251_s23, 3 }
   0xe   : > { %p151_p4 = scmp.ne.s32.totalorder %s1592_s16, %s1588_s15  ;;  %p152_p6 = scmp.eq.s32.totalorder %s1252_s27, 3 }
   0xf   : > { %s2124_s25 = smov (%p32_p2, %s2122_s25), 0  ;;  %p1706_p5 = por %p146_p3, %p145_p1 }
  0x10   : > { %2099 = sst [smem:[#allocation11_spill]] %s2124_s25  ;;  %s125_s5 = sadd.s32 %s1612_s21, %s124_s29 }
  0x11   : > { %s1256_s6 = sshll.u32 %s2124_s25, 1  ;;  %p1712_p7 = por %p152_p6, %p151_p4 }
  0x12   : > { %s127_s7 = ssub.s32 1, %s1256_s6  ;;  %p1259_p8 = scmp.ge.s32.totalorder %s1616_s22, 1 }
  0x13   : > { %s2101_s8 = scalar_select %p1712_p7, 1, 0 }
  0x14   : > { %s128_s9 = smul.u32 %s127_s7, %s2120_s24  ;;  %s130_s10 = ssub.s32 %s1612_s21, %s2124_s25 }
  0x15   : > { %2102 = sst [smem:[#allocation12_spill]] %s2101_s8  ;;  %p231_p9 = scmp.lt.s32.totalorder %s1616_s22, 5 }
  0x16   : > { %s129_s11 = sadd.s32 %s128_s9, %s2124_s25  ;;  %s135_s14 = sadd.s32 1, %s1596_s17 }
  0x17   : > { %s131_s12 = ssub.s32 %s125_s5, %s129_s11  ;;  %p232_p10 = pnand %p1259_p8, %p231_p9 }
  0x18   : > { %s132_s13 = sor.u32 %s131_s12, %s130_s10  ;;  %s2082_s26 = sand.u32 (!%p232_p10), 1, %s1592_s16  }
  0x19   : > { %p133_p11 = scmp.eq.s32.totalorder %s132_s13, 0  ;;  %235 = sbr.rel (%p232_p10) target bundleno = 5516 (0x158c), region = 32 }
  0x1a   : > { %s1261_s27 = sshll.u32 (!%p232_p10), %s1604_s19, 1  ;;  %s1260_s28 = sshll.u32 (!%p232_p10), %s2082_s26, 4 }
  0x1b   : > { %s1724_s23 = scalar_select %p133_p11, %s1596_s17, %s135_s14  }
  0x1c   : > { %s1730_s29 = ssub.s32 (!%p232_p10), 1, %s1261_s27  ;;  %p282_p12 = scmp.lt.s32.totalorder (!%p232_p10), %s1604_s19, 1 }
  0x1d   : > { %2103 = sst [smem:[#allocation13_spill]] %s1724_s23  ;;  %s279_s5 = smul.u32 (!%p232_p10), %s1600_s18, %s1730_s29 }
  0x1e   : > { %s1739_s9 = scalar_select %p282_p12, %s1604_s19, 1 }
  0x1f   : > { %s280_s6 = sadd.s32 %s1604_s19, %s279_s5  ;;  %s1762_s11 = scalar_lea.vmem [#allocation3], %s1260_s28 }
  0x20   : > { %s1736_s7 = sshll.u32 %s280_s6, 3  ;;  %s1263_s10 = sshll.u32 %s1739_s9, 4 }
  0x21   : > { %p284_p13 = scmp.lt.s32.totalorder %s1736_s7, 15  ;;  %s302_s13 = scalar_lea.vmem %s2079_s2, %s1739_s9 }
  0x22   : > { %s299_s5 = scalar_lea.vmem %s2078_s1, %s1263_s10  ;;  %s1267_s6 = sshll.u32 %s1739_s9, 1 }
  0x23   : > { %s285_s14 = scalar_select %p284_p13, %s1736_s7, 15 }
  0x24   : > { %s1755_s20 = scalar_lea.vmem %s2081_s4, %s1267_s6  ;;  %p1268_p0 = scmp.ne.s32.totalorder %s1600_s18, 0 }
  0x25   : > { %s287_s25 = sadd.s32 %s1263_s10, %s285_s14 }
  0x26   : > { %s1264_s23 = sshll.u32 %s287_s25, 1  ;;  %316 = sbr.rel (%p1268_p0) target bundleno = 45 (0x2d), region = 36 }
  0x27   : > { %s1760_s15 = scalar_lea.vmem %s2077_s0, %s1264_s23 }
  0x2b   : > { %vm317_vm0 = vcmask 254976   ;;  %v1618_v0 = vmov 0.0  }
  0x2c   : > { %318 = vst.msk [vmem:[#allocation2] sm:$0x3] %vm317_vm0, %v1618_v0 }
  0x2d PF: > { %v1765_v1 = vld [vmem:[%s299_s5 + $0x8] sm:$0xff]   ;;  %v1619_v2 = vmov 0.0   ;;  %v1770_v3 = vld [vmem:[%s299_s5] sm:$0xff]   ;;  %vm1620_vm1 = vmmov 0   ;;  %vm348_vm2 = vcmask 261120   ;;  %s1621_s24 = smov 64  }
  0x2e   : > { %1332 = vmatprep.subr.bf16.mxu0 %v1619_v2  ;;  %1340 = vmatprep.subr.bf16.mxu1 %v1619_v2  ;;  %v1795_v6 = vld [vmem:[%s302_s13] ss:$0 sm:$0xff]  ;;  %s1269_s25 = smul.u32 14, %s1604_s19  ;;  %s1622_s23 = smov 96   ;;  %vm427_vm3 = vcmask 254976  }
  0x2f   : > { %1333 = vmatpush3.bf16.msra.mxu0 %v1765_v1  ;;  %1336 = vmatprep.mubr.msk.bf16.mxu0 %vm1620_vm1, %v1619_v2  ;;  %s2090_s26 = smov 32   ;;  %s1821_s28 = smul.u32 7, %s1604_s19 }
  0x30   : > { %1334 = vmatprep.subr.bf16.mxu0 %v1619_v2  ;;  %1341 = vmatpush3.bf16.msra.mxu1 %v1765_v1  ;;  %s327_s8 = scalar_lea.vmem %s1760_s15, %s1269_s25  ;;  %s1279_s13 = sshll.u32 %s1730_s29, 1 }
  0x31   : > { %1342 = vmatprep.subr.bf16.mxu1 %v1619_v2  ;;  %1344 = vmatprep.mubr.msk.bf16.mxu1 %vm1620_vm1, %v1619_v2  ;;  %v328_v12 = vld [vmem:[%s327_s8] sm:$0x3]  ;;  %s431_s9 = sadd.s32 %s1821_s28, %s1730_s29  ;;  %s1848_s14 = sadd.s32 %s1279_s13, %s1821_s28 }
  0x32   : > { %s1825_s10 = sshll.u32 %s431_s9, 1  ;;  %s1280_s27 = sshll.u32 %s1848_s14, 1 }
  0x33   : > { %v324_v4 = vld [vmem:[#allocation2] sm:$0x3]  ;;  %1335 = vmatpush3.bf16.msra.mxu0 %v1770_v3  ;;  %s433_s12 = scalar_lea.vmem %s1760_s15, %s1825_s10  ;;  %s517_s5 = scalar_lea.vmem %s1760_s15, %s1280_s27 }
  0x34   : > { %v329_v5 = vpack.c.bf16 %v324_v4, %v324_v4  ;;  %1343 = vmatpush3.bf16.msra.mxu1 %v1770_v3  ;;  %1348 = vmatprep.subr.bf16.mxu0 %v1619_v2  ;;  %v434_v36 = vld [vmem:[%s433_s12] sm:$0x3]  ;;  %s598_s6 = smul.u32 3, %s1730_s29  ;;  %s1286_s9 = sshll.u32 %s1730_s29, 2 }
  0x35   : > { %1356 = vmatprep.subr.bf16.mxu1 %v1619_v2  ;;  %v518_v59 = vld [vmem:[%s517_s5] sm:$0x3]  ;;  %s1897_s12 = sadd.s32 %s1286_s9, %s1821_s28  ;;  %p1299_p1 = scmp.ne.s32.totalorder %s1600_s18, 1 }
  0x36   : > { %1337 = vmatmul.mubr.msk.bf16.vlgmr.msra.gmra.mxu0 %vm348_vm2, %v329_v5  ;;  %s1873_s17 = sadd.s32 %s598_s6, %s1821_s28  ;;  %s2093_s13 = sshll.u32 %s1897_s12, 1 }
  0x37   : > { %1349 = vmatpush3.bf16.msra.mxu0 %v1765_v1  ;;  %1352 = vmatprep.mubr.msk.bf16.mxu0 %vm1620_vm1, %v1619_v2  ;;  %s1283_s21 = sshll.u32 %s1873_s17, 1  ;;  %s685_s5 = scalar_lea.vmem %s1760_s15, %s2093_s13 }
  0x38   : > { %1350 = vmatprep.subr.bf16.mxu0 %v1619_v2  ;;  %s601_s8 = scalar_lea.vmem %s1760_s15, %s1283_s21  ;;  %s766_s6 = smul.u32 5, %s1730_s29 }
  0x3b   : > { %1351 = vmatpush3.bf16.msra.mxu0 %v1770_v3 }
  0x3c   : > { %1364 = vmatprep.subr.bf16.mxu0 %v1619_v2 }
  0xf6   : > { %v386_v7 = vpop.f32.mrf.mxu0 }
  0xf7   : > { %v387_v8 = vadd.f32 %v1795_v6, %v386_v7 }
  0xf8   : > { %v1338_v9 = vpop.f32.mrf.mxu0 }
  0xf9   : > { %400 = vrot.lane.b32.xlu0 %v387_v8, %s1621_s24  ;;  %v392_v13 = vadd.f32 %v387_v8, %v328_v12 }
  0xfa   : > { %v389_v10 = vpop.f32.mrf.mxu0 }
  0xfb   : > { %v1274_v14 = vmul.f32 -1.442695, %v392_v13 }
  0xfc   : > { %v1339_v11 = vpop.f32.mrf.mxu0 }
  0xfd   : > { %1476 = vpow2.f32 %v1274_v14 }
 0x10a   : > { %v1477_v15 = vpop.eup %1476 }
 0x10b   : > { %v396_v16 = vadd.f32 1.0, %v1477_v15 }
 0x10d   : > { %1478 = vrcp.f32 %v396_v16 }
 0x11a   : > { %v1479_v17 = vpop.eup %1478 }
 0x11b   : > { %v410_v24 = vsub.f32 1.0, %v1479_v17 }
 0x16b   : > { %v401_v18 = vpop.permute.xlu0 %400 }
 0x16c   : > { %v403_v19 = vmul.f32 %v1479_v17, %v401_v18 }
 0x16e   : > { %405 = vrot.lane.b32.xlu0 %v403_v19, %s1621_s24 }
 0x1e0   : > { %v406_v20 = vpop.permute.xlu0 %405 }
 0x1e1   : > { %v408_v21 = vadd.f32 %v406_v20, %v328_v12 }
 0x1e3   : > { %1480 = vtanh.f32 %v408_v21 }
 0x1f0   : > { %v1481_v22 = vpop.eup %1480 }
 0x1f1   : > { %412 = vrot.lane.b32.xlu1 %v1481_v22, %s1622_s23  ;;  %v602_v22 = vld [vmem:[%s601_s8] sm:$0x3]  ;;  %s1921_s8 = sadd.s32 %s766_s6, %s1821_s28  ;;  %s850_s6 = smul.u32 6, %s1730_s29 }
 0x1f2   : > { %s2091_s9 = sshll.u32 %s1921_s8, 1 }
 0x1f5   : > { %417 = vrot.lane.b32.xlu1 %v324_v4, %s2090_s26 }
 0x263   : > { %v413_v23 = vpop.permute.xlu1 %412 }
 0x264   : > { %v415_v26 = vmul.f32 %v413_v23, %v410_v24 }
 0x267   : > { %v418_v25 = vpop.permute.xlu1 %417 }
 0x268   : > { %v420_v27 = vmul.f32 %v1479_v17, %v418_v25 }
 0x26a   : > { %v1806_v28 = vadd.f32 %v420_v27, %v415_v26 }
 0x26c   : > { %v435_v29 = vpack.c.bf16 %v1806_v28, %v1806_v28 }
 0x26e   : > { %437 = vrot.lane.b32.xlu0 %v435_v29, %s1622_s23 }
 0x2e0   : > { %v438_v30 = vpop.permute.xlu0 %437 }
 0x2e1   : > { %1345 = vmatmul.mubr.msk.bf16.vlgmr.msra.gmra.mxu1 %vm348_vm2, %v438_v30 }
 0x2e2   : > { %1357 = vmatpush3.bf16.msra.mxu1 %v1765_v1  ;;  %1360 = vmatprep.mubr.msk.bf16.mxu1 %vm1620_vm1, %v1619_v2 }
 0x2e3   : > { %1358 = vmatprep.subr.bf16.mxu1 %v1619_v2 }
 0x2e6   : > { %1359 = vmatpush3.bf16.msra.mxu1 %v1770_v3 }
 0x2e7   : > { %1372 = vmatprep.subr.bf16.mxu1 %v1619_v2 }
 0x3a1   : > { %v476_v31 = vpop.f32.mrf.mxu1 }
 0x3a2   : > { %v477_v32 = vadd.f32 %v1795_v6, %v476_v31 }
 0x3a3   : > { %v1346_v33 = vpop.f32.mrf.mxu1 }
 0x3a4   : > { %490 = vrot.lane.b32.xlu1 %v477_v32, %s1621_s24  ;;  %v482_v37 = vadd.f32 %v477_v32, %v434_v36 }
 0x3a5   : > { %v479_v34 = vpop.f32.mrf.mxu1 }
 0x3a6   : > { %v1278_v38 = vmul.f32 -1.442695, %v482_v37 }
 0x3a7   : > { %v1347_v35 = vpop.f32.mrf.mxu1 }
 0x3a8   : > { %1482 = vpow2.f32 %v1278_v38 }
 0x3b5   : > { %v1483_v39 = vpop.eup %1482 }
 0x3b6   : > { %v486_v40 = vadd.f32 1.0, %v1483_v39 }
 0x3b8   : > { %1484 = vrcp.f32 %v486_v40 }
 0x3c5   : > { %v1485_v41 = vpop.eup %1484 }
 0x3c6   : > { %v500_v47 = vsub.f32 1.0, %v1485_v41  ;;  %v506_v49 = vmul.f32 %v1485_v41, %v1806_v28 }
 0x416   : > { %v491_v42 = vpop.permute.xlu1 %490 }
 0x417   : > { %v493_v43 = vmul.f32 %v1485_v41, %v491_v42 }
 0x419   : > { %495 = vrot.lane.b32.xlu0 %v493_v43, %s1621_s24 }
 0x48b   : > { %v496_v44 = vpop.permute.xlu0 %495 }
 0x48c   : > { %v498_v45 = vadd.f32 %v496_v44, %v434_v36 }
 0x48e   : > { %1486 = vtanh.f32 %v498_v45 }
 0x49b   : > { %v1487_v46 = vpop.eup %1486 }
 0x49c   : > { %502 = vrot.lane.b32.xlu1 %v1487_v46, %s1622_s23  ;;  %v686_v46 = vld [vmem:[%s685_s5] sm:$0x3]  ;;  %s769_s5 = scalar_lea.vmem %s1760_s15, %s2091_s9 }
 0x50e   : > { %v503_v48 = vpop.permute.xlu1 %502 }
 0x50f   : > { %v505_v50 = vmul.f32 %v503_v48, %v500_v47 }
 0x511   : > { %v1832_v51 = vadd.f32 %v506_v49, %v505_v50 }
 0x513   : > { %v519_v52 = vpack.c.bf16 %v1832_v51, %v1832_v51 }
 0x515   : > { %521 = vrot.lane.b32.xlu0 %v519_v52, %s1622_s23 }
 0x587   : > { %v522_v53 = vpop.permute.xlu0 %521 }
 0x588   : > { %1353 = vmatmul.mubr.msk.bf16.vlgmr.msra.gmra.mxu0 %vm348_vm2, %v522_v53 }
 0x589   : > { %1365 = vmatpush3.bf16.msra.mxu0 %v1765_v1  ;;  %1368 = vmatprep.mubr.msk.bf16.mxu0 %vm1620_vm1, %v1619_v2 }
 0x58a   : > { %1366 = vmatprep.subr.bf16.mxu0 %v1619_v2 }
 0x58d   : > { %1367 = vmatpush3.bf16.msra.mxu0 %v1770_v3 }
 0x58e   : > { %1380 = vmatprep.subr.bf16.mxu0 %v1619_v2 }
 0x648   : > { %v560_v54 = vpop.f32.mrf.mxu0 }
 0x649   : > { %v561_v55 = vadd.f32 %v1795_v6, %v560_v54 }
 0x64a   : > { %v1354_v56 = vpop.f32.mrf.mxu0 }
 0x64b   : > { %574 = vrot.lane.b32.xlu1 %v561_v55, %s1621_s24  ;;  %v566_v60 = vadd.f32 %v561_v55, %v518_v59 }
 0x64c   : > { %v563_v57 = vpop.f32.mrf.mxu0 }
 0x64d   : > { %v1282_v61 = vmul.f32 -1.442695, %v566_v60 }
 0x64e   : > { %v1355_v58 = vpop.f32.mrf.mxu0 }
 0x64f   : > { %1488 = vpow2.f32 %v1282_v61 }
 0x65c   : > { %v1489_v62 = vpop.eup %1488 }
 0x65d   : > { %v570_v63 = vadd.f32 1.0, %v1489_v62 }
 0x65f   : > { %1490 = vrcp.f32 %v570_v63 }
 0x66c   : > { %v1491_v0 = vpop.eup %1490 }
 0x66d   : > { %v584_v10 = vsub.f32 1.0, %v1491_v0  ;;  %v590_v12 = vmul.f32 %v1491_v0, %v1832_v51 }
 0x6bd   : > { %v575_v4 = vpop.permute.xlu1 %574 }
 0x6be   : > { %v577_v5 = vmul.f32 %v1491_v0, %v575_v4 }
 0x6c0   : > { %579 = vrot.lane.b32.xlu0 %v577_v5, %s1621_s24 }
 0x732   : > { %v580_v7 = vpop.permute.xlu0 %579 }
 0x733   : > { %v582_v8 = vadd.f32 %v580_v7, %v518_v59 }
 0x735   : > { %1492 = vtanh.f32 %v582_v8 }
 0x742   : > { %v1493_v9 = vpop.eup %1492 }
 0x743   : > { %586 = vrot.lane.b32.xlu1 %v1493_v9, %s1622_s23 }
 0x7b5   : > { %v587_v11 = vpop.permute.xlu1 %586 }
 0x7b6   : > { %v589_v13 = vmul.f32 %v587_v11, %v584_v10 }
 0x7b8   : > { %v1857_v14 = vadd.f32 %v590_v12, %v589_v13 }
 0x7ba   : > { %v603_v15 = vpack.c.bf16 %v1857_v14, %v1857_v14 }
 0x7bc   : > { %605 = vrot.lane.b32.xlu0 %v603_v15, %s1622_s23 }
 0x82e   : > { %v606_v16 = vpop.permute.xlu0 %605 }
 0x82f   : > { %1361 = vmatmul.mubr.msk.bf16.vlgmr.msra.gmra.mxu1 %vm348_vm2, %v606_v16 }
 0x830   : > { %1373 = vmatpush3.bf16.msra.mxu1 %v1765_v1  ;;  %1376 = vmatprep.mubr.msk.bf16.mxu1 %vm1620_vm1, %v1619_v2 }
 0x831   : > { %1374 = vmatprep.subr.bf16.mxu1 %v1619_v2 }
 0x834   : > { %1375 = vmatpush3.bf16.msra.mxu1 %v1770_v3 }
 0x835   : > { %1388 = vmatprep.subr.bf16.mxu1 %v1619_v2 }
 0x8ef   : > { %v644_v17 = vpop.f32.mrf.mxu1 }
 0x8f0   : > { %v645_v18 = vadd.f32 %v1795_v6, %v644_v17 }
 0x8f1   : > { %v1362_v19 = vpop.f32.mrf.mxu1 }
 0x8f2   : > { %658 = vrot.lane.b32.xlu1 %v645_v18, %s1621_s24  ;;  %v650_v23 = vadd.f32 %v645_v18, %v602_v22 }
 0x8f3   : > { %v647_v20 = vpop.f32.mrf.mxu1 }
 0x8f4   : > { %v1285_v24 = vmul.f32 -1.442695, %v650_v23 }
 0x8f5   : > { %v1363_v21 = vpop.f32.mrf.mxu1 }
 0x8f6   : > { %1494 = vpow2.f32 %v1285_v24 }
 0x903   : > { %v1495_v25 = vpop.eup %1494 }
 0x904   : > { %v654_v26 = vadd.f32 1.0, %v1495_v25 }
 0x906   : > { %1496 = vrcp.f32 %v654_v26 }
 0x913   : > { %v1497_v27 = vpop.eup %1496 }
 0x914   : > { %v668_v34 = vsub.f32 1.0, %v1497_v27  ;;  %v674_v36 = vmul.f32 %v1497_v27, %v1857_v14 }
 0x964   : > { %v659_v29 = vpop.permute.xlu1 %658 }
 0x965   : > { %v661_v30 = vmul.f32 %v1497_v27, %v659_v29 }
 0x967   : > { %663 = vrot.lane.b32.xlu0 %v661_v30, %s1621_s24 }
 0x9d9   : > { %v664_v31 = vpop.permute.xlu0 %663 }
 0x9da   : > { %v666_v32 = vadd.f32 %v664_v31, %v602_v22 }
 0x9dc   : > { %1498 = vtanh.f32 %v666_v32 }
 0x9e9   : > { %v1499_v33 = vpop.eup %1498 }
 0x9ea   : > { %670 = vrot.lane.b32.xlu1 %v1499_v33, %s1622_s23 }
 0xa5c   : > { %v671_v35 = vpop.permute.xlu1 %670 }
 0xa5d   : > { %v673_v37 = vmul.f32 %v671_v35, %v668_v34 }
 0xa5f   : > { %v1882_v38 = vadd.f32 %v674_v36, %v673_v37 }
 0xa61   : > { %v687_v39 = vpack.c.bf16 %v1882_v38, %v1882_v38 }
 0xa63   : > { %689 = vrot.lane.b32.xlu0 %v687_v39, %s1622_s23 }
 0xad5   : > { %v690_v40 = vpop.permute.xlu0 %689 }
 0xad6   : > { %1369 = vmatmul.mubr.msk.bf16.vlgmr.msra.gmra.mxu0 %vm348_vm2, %v690_v40 }
 0xad7   : > { %1381 = vmatpush3.bf16.msra.mxu0 %v1765_v1  ;;  %1384 = vmatprep.mubr.msk.bf16.mxu0 %vm1620_vm1, %v1619_v2 }
 0xad8   : > { %1382 = vmatprep.subr.bf16.mxu0 %v1619_v2 }
 0xadb   : > { %1383 = vmatpush3.bf16.msra.mxu0 %v1770_v3 }
 0xb96   : > { %v728_v41 = vpop.f32.mrf.mxu0 }
 0xb97   : > { %v729_v42 = vadd.f32 %v1795_v6, %v728_v41 }
 0xb98   : > { %v1370_v43 = vpop.f32.mrf.mxu0 }
 0xb99   : > { %742 = vrot.lane.b32.xlu1 %v729_v42, %s1621_s24  ;;  %v734_v47 = vadd.f32 %v729_v42, %v686_v46 }
 0xb9a   : > { %v731_v44 = vpop.f32.mrf.mxu0 }
 0xb9b   : > { %v1289_v48 = vmul.f32 -1.442695, %v734_v47 }
 0xb9c   : > { %v1371_v45 = vpop.f32.mrf.mxu0 }
 0xb9d   : > { %1500 = vpow2.f32 %v1289_v48 }
 0xbaa   : > { %v1501_v49 = vpop.eup %1500 }
 0xbab   : > { %v738_v50 = vadd.f32 1.0, %v1501_v49 }
 0xbad   : > { %1502 = vrcp.f32 %v738_v50 }
 0xbba   : > { %v1503_v52 = vpop.eup %1502 }
 0xbbb   : > { %v752_v58 = vsub.f32 1.0, %v1503_v52  ;;  %v758_v60 = vmul.f32 %v1503_v52, %v1882_v38 }
 0xc0b   : > { %v743_v53 = vpop.permute.xlu1 %742 }
 0xc0c   : > { %v745_v54 = vmul.f32 %v1503_v52, %v743_v53 }
 0xc0e   : > { %747 = vrot.lane.b32.xlu0 %v745_v54, %s1621_s24 }
 0xc80   : > { %v748_v55 = vpop.permute.xlu0 %747 }
 0xc81   : > { %v750_v56 = vadd.f32 %v748_v55, %v686_v46 }
 0xc83   : > { %1504 = vtanh.f32 %v750_v56 }
 0xc90   : > { %v1505_v57 = vpop.eup %1504 }
 0xc91   : > { %754 = vrot.lane.b32.xlu1 %v1505_v57, %s1622_s23 }
 0xd03   : > { %v755_v59 = vpop.permute.xlu1 %754 }
 0xd04   : > { %v757_v61 = vmul.f32 %v755_v59, %v752_v58 }
 0xd06   : > { %v1906_v62 = vadd.f32 %v758_v60, %v757_v61 }
 0xd08   : > { %v771_v63 = vpack.c.bf16 %v1906_v62, %v1906_v62 }
 0xd0a   : > { %773 = vrot.lane.b32.xlu0 %v771_v63, %s1622_s23 }
 0xd7c   : > { %v774_v0 = vpop.permute.xlu0 %773 }
 0xd7d   : > { %1377 = vmatmul.mubr.msk.bf16.vlgmr.msra.gmra.mxu1 %vm348_vm2, %v774_v0 }
 0xd7e   : > { %1389 = vmatpush3.bf16.msra.mxu1 %v1765_v1  ;;  %1392 = vmatprep.mubr.msk.bf16.mxu1 %vm1620_vm1, %v1619_v2  ;;  %v770_v1 = vld [vmem:[%s769_s5] sm:$0x3]  ;;  %s1940_s5 = sadd.s32 %s850_s6, %s1821_s28 }
 0xd7f   : > { %1390 = vmatprep.subr.bf16.mxu1 %v1619_v2  ;;  %s2092_s26 = sshll.u32 %s1940_s5, 1 }
 0xd80   : > { %s853_s9 = scalar_lea.vmem %s1760_s15, %s2092_s26 }
 0xd81   : > { %v854_v32 = vld [vmem:[%s853_s9] sm:$0x3]  ;;  %s934_s9 = smul.u32 7, %s1730_s29  ;;  %s512_s29 = scalar_lea.vmem %s1762_s11, %s1825_s10 [#allocation3] }
 0xd82   : > { %1391 = vmatpush3.bf16.msra.mxu1 %v1770_v3  ;;  %s2105_s10 = sshll.u32 %s1921_s8, 1 }
 0xd83   : > { %s1955_s6 = sadd.s32 %s934_s9, %s1821_s28  ;;  %s2104_s28 = sshll.u32 %s1897_s12, 1 }
 0xd84   : > { %s1296_s26 = sshll.u32 %s1955_s6, 1  ;;  %s848_s14 = scalar_lea.vmem %s1762_s11, %s2105_s10 [#allocation3] }
 0xd85   : > { %s937_s13 = scalar_lea.vmem %s1760_s15, %s1296_s26  ;;  %s426_s15 = scalar_lea.vmem %s1762_s11, %s1269_s25 [#allocation3] }
 0xd86   : > { %v938_v57 = vld [vmem:[%s937_s13] sm:$0x3]  ;;  %s680_s25 = scalar_lea.vmem %s1762_s11, %s1283_s21 [#allocation3]  ;;  %s764_s13 = scalar_lea.vmem %s1762_s11, %s2104_s28 [#allocation3] }
 0xe3d   : > { %v812_v4 = vpop.f32.mrf.mxu1 }
 0xe3e   : > { %v813_v5 = vadd.f32 %v1795_v6, %v812_v4 }
 0xe3f   : > { %v1378_v7 = vpop.f32.mrf.mxu1 }
 0xe40   : > { %826 = vrot.lane.b32.xlu1 %v813_v5, %s1621_s24  ;;  %v818_v2 = vadd.f32 %v813_v5, %v770_v1 }
 0xe41   : > { %v815_v8 = vpop.f32.mrf.mxu1 }
 0xe42   : > { %v1292_v10 = vmul.f32 -1.442695, %v818_v2 }
 0xe43   : > { %v1379_v9 = vpop.f32.mrf.mxu1 }
 0xe44   : > { %1506 = vpow2.f32 %v1292_v10 }
 0xe51   : > { %v1507_v3 = vpop.eup %1506 }
 0xe52   : > { %v822_v11 = vadd.f32 1.0, %v1507_v3 }
 0xe54   : > { %1508 = vrcp.f32 %v822_v11 }
 0xe61   : > { %v1509_v12 = vpop.eup %1508 }
 0xe62   : > { %v836_v19 = vsub.f32 1.0, %v1509_v12  ;;  %v842_v21 = vmul.f32 %v1509_v12, %v1906_v62 }
 0xeb2   : > { %v827_v13 = vpop.permute.xlu1 %826 }
 0xeb3   : > { %v829_v15 = vmul.f32 %v1509_v12, %v827_v13 }
 0xeb5   : > { %831 = vrot.lane.b32.xlu0 %v829_v15, %s1621_s24 }
 0xf27   : > { %v832_v16 = vpop.permute.xlu0 %831 }
 0xf28   : > { %v834_v17 = vadd.f32 %v832_v16, %v770_v1 }
 0xf2a   : > { %1510 = vtanh.f32 %v834_v17 }
 0xf37   : > { %v1511_v18 = vpop.eup %1510 }
 0xf38   : > { %838 = vrot.lane.b32.xlu1 %v1511_v18, %s1622_s23 }
 0xfaa   : > { %v839_v20 = vpop.permute.xlu1 %838 }
 0xfab   : > { %v841_v22 = vmul.f32 %v839_v20, %v836_v19 }
 0xfad   : > { %v1930_v23 = vadd.f32 %v842_v21, %v841_v22 }
 0xfaf   : > { %v855_v24 = vpack.c.bf16 %v1930_v23, %v1930_v23 }
 0xfb1   : > { %857 = vrot.lane.b32.xlu0 %v855_v24, %s1622_s23 }
0x1023   : > { %v858_v25 = vpop.permute.xlu0 %857 }
0x1024   : > { %1385 = vmatmul.mubr.msk.bf16.vlgmr.msra.gmra.mxu0 %vm348_vm2, %v858_v25 }
0x10e4   : > { %v896_v26 = vpop.f32.mrf.mxu0 }
0x10e5   : > { %v897_v27 = vadd.f32 %v1795_v6, %v896_v26 }
0x10e6   : > { %v1386_v29 = vpop.f32.mrf.mxu0 }
0x10e7   : > { %910 = vrot.lane.b32.xlu1 %v897_v27, %s1621_s24  ;;  %v902_v33 = vadd.f32 %v897_v27, %v854_v32 }
0x10e8   : > { %v899_v30 = vpop.f32.mrf.mxu0 }
0x10e9   : > { %v1295_v34 = vmul.f32 -1.442695, %v902_v33 }
0x10ea   : > { %v1387_v31 = vpop.f32.mrf.mxu0 }
0x10eb   : > { %1512 = vpow2.f32 %v1295_v34 }
0x10f8   : > { %v1513_v35 = vpop.eup %1512 }
0x10f9   : > { %v906_v36 = vadd.f32 1.0, %v1513_v35 }
0x10fb   : > { %1514 = vrcp.f32 %v906_v36 }
0x1108   : > { %v1515_v37 = vpop.eup %1514 }
0x1109   : > { %v920_v44 = vsub.f32 1.0, %v1515_v37  ;;  %v926_v46 = vmul.f32 %v1515_v37, %v1930_v23 }
0x1159   : > { %v911_v39 = vpop.permute.xlu1 %910 }
0x115a   : > { %v913_v40 = vmul.f32 %v1515_v37, %v911_v39 }
0x115c   : > { %915 = vrot.lane.b32.xlu0 %v913_v40, %s1621_s24 }
0x11ce   : > { %v916_v41 = vpop.permute.xlu0 %915 }
0x11cf   : > { %v918_v42 = vadd.f32 %v916_v41, %v854_v32 }
0x11d1   : > { %1516 = vtanh.f32 %v918_v42 }
0x11de   : > { %v1517_v43 = vpop.eup %1516 }
0x11df   : > { %922 = vrot.lane.b32.xlu1 %v1517_v43, %s1622_s23 }
0x1251   : > { %v923_v45 = vpop.permute.xlu1 %922 }
0x1252   : > { %v925_v47 = vmul.f32 %v923_v45, %v920_v44 }
0x1254   : > { %v927_v48 = vadd.f32 %v926_v46, %v925_v47 }
0x1256   : > { %v939_v49 = vpack.c.bf16 %v927_v48, %v927_v48 }
0x1258   : > { %941 = vrot.lane.b32.xlu0 %v939_v49, %s1622_s23 }
0x12ca   : > { %v942_v50 = vpop.permute.xlu0 %941 }
0x12cb   : > { %1393 = vmatmul.mubr.msk.bf16.vlgmr.msra.gmra.mxu1 %vm348_vm2, %v942_v50 }
0x138b   : > { %v980_v52 = vpop.f32.mrf.mxu1 }
0x138c   : > { %v981_v53 = vadd.f32 %v1795_v6, %v980_v52 }
0x138d   : > { %v1394_v54 = vpop.f32.mrf.mxu1 }
0x138e   : > { %994 = vrot.lane.b32.xlu1 %v981_v53, %s1621_s24  ;;  %v986_v58 = vadd.f32 %v981_v53, %v938_v57 }
0x138f   : > { %v983_v55 = vpop.f32.mrf.mxu1 }
0x1390   : > { %v1298_v59 = vmul.f32 -1.442695, %v986_v58 }
0x1391   : > { %v1395_v56 = vpop.f32.mrf.mxu1 }
0x1392   : > { %1518 = vpow2.f32 %v1298_v59 }
0x139f   : > { %v1519_v6 = vpop.eup %1518 }
0x13a0   : > { %v990_v60 = vadd.f32 1.0, %v1519_v6 }
0x13a2   : > { %1520 = vrcp.f32 %v990_v60 }
0x13af   : > { %v1521_v61 = vpop.eup %1520 }
0x13b0   : > { %v1010_v9 = vmul.f32 %v1521_v61, %v927_v48 }
0x1400   : > { %v995_v63 = vpop.permute.xlu1 %994 }
0x1401   : > { %v997_v0 = vmul.f32 %v1521_v61, %v995_v63 }
0x1403   : > { %999 = vrot.lane.b32.xlu0 %v997_v0, %s1621_s24  ;;  %s596_s24 = scalar_lea.vmem %s1762_s11, %s1280_s27 [#allocation3]  ;;  %s2106_s27 = sshll.u32 %s1940_s5, 1 }
0x1404   : > { %s932_s9 = scalar_lea.vmem %s1762_s11, %s2106_s27 [#allocation3] }
0x1407   : > { %423 = vrot.lane.b32.xlu0 %v1806_v28, %s1622_s23 }
0x140b   : > { %593 = vrot.lane.b32.xlu0 %v1857_v14, %s1622_s23  ;;  %v1004_v14 = vsub.f32 1.0, %v1521_v61 }
0x140f   : > { %761 = vrot.lane.b32.xlu0 %v1906_v62, %s1622_s23 }
0x1413   : > { %929 = vrot.lane.b32.xlu0 %v927_v48, %s1622_s23 }
0x1475   : > { %v1000_v4 = vpop.permute.xlu0 %999 }
0x1476   : > { %v1002_v5 = vadd.f32 %v1000_v4, %v938_v57 }
0x1478   : > { %1522 = vtanh.f32 %v1002_v5 }
0x1479   : > { %v424_v7 = vpop.permute.xlu0 %423 }
0x147a   : > { %428 = vst.msk [vmem:[%s426_s15] sm:$0x3] %vm427_vm3, %v424_v7 }
0x147d   : > { %v594_v8 = vpop.permute.xlu0 %593 }
0x1485   : > { %v1523_v28 = vpop.eup %1522 }
0x1486   : > { %1006 = vrot.lane.b32.xlu1 %v1523_v28, %s1622_s23 }
0x148a   : > { %509 = vrot.lane.b32.xlu1 %v1832_v51, %s1622_s23 }
0x148e   : > { %677 = vrot.lane.b32.xlu1 %v1882_v38, %s1622_s23  ;;  %v762_v38 = vpop.permute.xlu0 %761 }
0x1492   : > { %845 = vrot.lane.b32.xlu1 %v1930_v23, %s1622_s23  ;;  %v930_v11 = vpop.permute.xlu0 %929 }
0x14f8   : > { %v1007_v62 = vpop.permute.xlu1 %1006 }
0x14f9   : > { %v1009_v1 = vmul.f32 %v1007_v62, %v1004_v14 }
0x14fb   : > { %v1011_v51 = vadd.f32 %v1010_v9, %v1009_v1 }
0x14fc   : > { %v510_v2 = vpop.permute.xlu1 %509 }
0x14fd   : > { %513 = vst.msk [vmem:[%s512_s29] sm:$0x3] %vm427_vm3, %v510_v2  ;;  %1013 = vrot.lane.b32.xlu1 %v1011_v51, %s1622_s23  ;;  %s1016_s23 = scalar_lea.vmem %s1762_s11, %s1296_s26 [#allocation3] }
0x14fe   : > { %597 = vst.msk [vmem:[%s596_s24] sm:$0x3] %vm427_vm3, %v594_v8 }
0x1500   : > { %v678_v10 = vpop.permute.xlu1 %677 }
0x1501   : > { %681 = vst.msk [vmem:[%s680_s25] sm:$0x3] %vm427_vm3, %v678_v10 }
0x1502   : > { %765 = vst.msk [vmem:[%s764_s13] sm:$0x3] %vm427_vm3, %v762_v38 }
0x1504   : > { %v846_v3 = vpop.permute.xlu1 %845 }
0x1505   : > { %849 = vst.msk [vmem:[%s848_s14] sm:$0x3] %vm427_vm3, %v846_v3 }
0x1506   : > { %933 = vst.msk [vmem:[%s932_s9] sm:$0x3] %vm427_vm3, %v930_v11 }
0x156c   : > { %1022 = sbr.rel (%p1299_p1) target bundleno = 5490 (0x1572), region = 40 }
0x156f   : > { %v1014_v12 = vpop.permute.xlu1 %1013 }
0x1570   : > { %1017 = vst.msk [vmem:[%s1016_s23] sm:$0x3] %vm427_vm3, %v1014_v12  ;;  %1018 = vst.msk [vmem:[#allocation2] sm:$0x3] %vm427_vm3, %v1014_v12 }
0x1571   : > { %1023 = vst.msk [vmem:[%s1755_s20] sm:$0x3] %vm427_vm3, %v1014_v12 }
0x1572 PF: > { %s1303_s17 = sshll.u32 %s1604_s19, 4  ;;  %s1048_s26 = sshll.u32 %s1762_s11, 4  ;;  %s2015_s26 = int_to_ptr.vmem [resolvable:$true] %s1048_s26 }
0x1573   : > { %s1045_s21 = sadd.s32 %s1303_s17, %s1736_s7  ;;  %s2107_s20 = sand.u32 1, %s1592_s16  }
0x1574   : > { %s1304_s12 = sshll.u32 %s1045_s21, 5  ;;  %s2024_s6 = scalar_lea.sflag [#allocation4], %s2107_s20 }
0x1575   : > { %s2020_s18 = scalar_lea.hbm %s2080_s3, %s1304_s12  ;;  %s1524_s15 = scalar_lea.vmem %s2015_s26, 256 }
0x1576   : > { %p1525_p2 = scmp.ne.s32.totalorder %s2015_s26, %s1524_s15  ;;  %s1624_s19 = smov [#allocation3]  }
0x1577   : > { %s1528_s7 = sshll.u32 %s1624_s19, 4  ;;  %s1529_s7 = int_to_ptr.vmem [resolvable:$false] %s1528_s7 }
0x1578   : > { %p1526_p3 = pnand %p1525_p2, %p1706_p5  ;;  %s1530_s11 = scalar_lea.vmem %s1529_s7, 512 }
0x1579   : > { %p1531_p6 = scmp.lt.s32.totalorder %s2015_s26, %s1529_s7  ;;  %p1532_p8 = scmp.lt.s32.totalorder %s1530_s11, %s1524_s15 }
0x157a   : > { %p1527_p4 = pneg %p1526_p3 }
0x157b   : > { %p1533_p9 = por %p1532_p8, %p1531_p6 }
0x157d   : > { %p1534_p10 = pnand %p1533_p9, %p1527_p4 }
0x157f   : > { %1537 = shalt.err (!%p1534_p10)
}
0x1580   : > { %s1538_s29 = scalar_lea.hbm %s2020_s18, 256  ;;  %s1542_s28 = scalar_lea.hbm %s2080_s3, 1024 }
0x1581   : > { %p1539_p11 = scmp.ne.s32.totalorder %s2020_s18, %s1538_s29  ;;  %p1543_p0 = scmp.lt.s32.totalorder %s2020_s18, %s2080_s3 }
0x1582   : > { %p1544_p1 = scmp.lt.s32.totalorder %s1542_s28, %s1538_s29 }
0x1583   : > { %p1540_p12 = pnand %p1539_p11, %p1706_p5 }
0x1584   : > { %p1545_p2 = por %p1544_p1, %p1543_p0 }
0x1585   : > { %p1541_p13 = pneg %p1540_p12 }
0x1587   : > { %p1546_p3 = pnand %p1545_p2, %p1541_p13 }
0x1589   : > { %1549 = shalt.err (!%p1546_p3)
}
0x158a   : > { %s1625_s14 = smov 2   ;;  %s2108_s27 = smov 32  }
0x158b   : > { %1396 = dma.vmem_to_hbm [thread:$0]  (%p1706_p5), %s2015_s26, 256, %s2020_s18, %s2024_s6, %s2108_s27, %s2108_s27, %s1625_s14  }
0x158c PF: > { %s2109_s9 = sld [smem:[#allocation6_spill]]  ;;  %p1402_p4 = scmp.ge.s32.totalorder %s1616_s22, 2 }
0x158e   : > { %p1399_p6 = pnand %p1402_p4, %p1712_p7 }
0x1590   : > { %p1400_p8 = pneg %p1399_p6 }
0x1592   : > { %s1066_s17 = sand.u32 1, %s2109_s9  }
0x1593   : > { %s1067_s21 = scalar_lea.sflag [#allocation4], %s1066_s17 }
0x1594   : > { %1583 = dma.done.wait (%p1400_p8), %s1067_s21, 256  }
0x1595   : > { %1585 = vsyncadd (%p1400_p8), %s1067_s21, 4294967040  ;;  %s18_s22 = sadd.s32 1, %s1616_s22   ;;  %s2111_s30 = sld [smem:[#allocation7_spill]] }
0x1596   : > { %p15_p9 = scmp.ge.s32.totalorder %s18_s22, 6   ;;  %s2112_s17 = sld [smem:[#allocation13_spill]] }
0x1597   : > { %s2113_s18 = sld [smem:[#allocation8_spill]]  ;;  %s2117_s15 = smov %s1592_s16 }
0x1598   : > { %s2114_s19 = sld [smem:[#allocation9_spill]]  ;;  %17 = sbr.rel (!%p15_p9) target bundleno = 5 (0x5), region = 109 }
0x1599   : > { %s2115_s20 = sld [smem:[#allocation10_spill]] }
0x159a   : > { %s2116_s21 = sld [smem:[#allocation11_spill]] }
0x159b   : > { %s2118_s16 = smov %s2111_s30 }
0x159d   :  { %1079 = vsyncpa [#allocation4], 1 }
0x159e   :  { %1081 = vsyncpa [#allocation4 + $0x1], 1 }

</bundles_post_ra>
